<compile_context>
chip_gen: v7x
topology: tpu7x:2x2x1
jax: 0.10.0
libtpu: 0.0.40
codegen_flags: <defaults>
</compile_context>

<pallas_src>
import functools

import jax
import jax.numpy as jnp
from jax import lax
from jax.experimental import pallas as pl
from jax.experimental.pallas import tpu as pltpu


# --------------------------------------------------------------------------
# Fused per-pair kernel body (one grid step == one graph pair).
# --------------------------------------------------------------------------
def _fused_rgcn_kernel(a_ref, x_ref, conv_ref, head_ref, out_ref, *,
                       num_relations, n1, n2, bins,
                       conv_layout, head_layout):
    f32 = jnp.float32
    R = num_relations

    def sl(ref, layout, name):
        off, rows, cols = layout[name]           # all static, 8-row-aligned
        return ref[off:off + rows, 0:cols]

    x = x_ref[0].astype(f32)                      # (N, in_dim), rows = [g1 ; g2]

    # ---- 3 x RGCNConv (mean aggregation) on the block-diagonal pair graph ----
    # out = x @ root + bias + sum_r (A_r @ x) @ W_r, expressed as one stacked-K
    # matmul: cat = [x | A_0 x | ... | A_{R-1} x]  @  [root; W_0; ...; W_{R-1}].
    def conv_layer(x, wname, bname, relu):
        w = sl(conv_ref, conv_layout, wname)      # ((R+1)*in_c, out_c)
        b = sl(conv_ref, conv_layout, bname)      # (1, out_c)
        pieces = [x] + [jnp.dot(a_ref[0, r], x, preferred_element_type=f32)
                        for r in range(R)]
        cat = jnp.concatenate(pieces, axis=1)     # (N, (R+1)*in_c)
        out = jnp.dot(cat, w, preferred_element_type=f32) + b
        return jnp.maximum(out, 0.0) if relu else out

    h = conv_layer(x, 'w1', 'b1', True)           # + dropout (identity, inference)
    h = conv_layer(h, 'w2', 'b2', True)
    af = conv_layer(h, 'w3', 'b3', False)         # (N1+N2, F)
    af1 = af[:n1]                                 # (N1, F)
    af2 = af[n1:]                                 # (N2, F)

    # ---- similarity matmul + torch.histc-style normalized histogram ----
    s = lax.dot_general(af1, af2, (((1,), (1,)), ((), ())),
                        preferred_element_type=f32)            # (N1, N2)
    smin = jnp.min(s, keepdims=True)                           # (1, 1)
    smax = jnp.max(s, keepdims=True)                           # (1, 1)
    width = (smax - smin) / bins
    safe_w = jnp.where(width > 0, width, 1.0)
    # TODO(synk): torch.histc's degenerate min==max range handling differs; an
    # all-equal score matrix puts all mass in bin 0 here.
    idx = jnp.clip(jnp.floor((s - smin) / safe_w), 0, bins - 1).astype(jnp.int32)
    bin_iota = lax.broadcasted_iota(jnp.int32, (1, bins), 1)
    acc = jnp.zeros((n1, bins), f32)
    for j in range(n2):        # static unroll: cheap VPU compare+add per column
        acc = acc + (idx[:, j:j + 1] == bin_iota).astype(f32)
    hist = jnp.sum(acc, axis=0, keepdims=True) * (1.0 / (n1 * n2))   # (1, bins)

    # ---- mean pooling ----
    p1 = jnp.sum(af1, axis=0, keepdims=True) * (1.0 / n1)            # (1, F)
    p2 = jnp.sum(af2, axis=0, keepdims=True) * (1.0 / n2)            # (1, F)

    # ---- TensorNetworkModule (NTN) ----
    # term1[k] = p1^T W[:, :, k] p2 via constant expansion/summation matrices
    # (rexp/ssum) prepared in glue -> no in-kernel reshape/relayout.
    w_a = sl(head_ref, head_layout, 'w_a')        # (F, F*K)
    rexp = sl(head_ref, head_layout, 'rexp')      # (F, F*K)
    ssum = sl(head_ref, head_layout, 'ssum')      # (F*K, K)
    wbT = sl(head_ref, head_layout, 'wbT')        # (2F, K)
    ntn_b = sl(head_ref, head_layout, 'ntn_b')    # (1, K)
    fc1_wT = sl(head_ref, head_layout, 'fc1_wT')  # (2K, B)
    fc1_b = sl(head_ref, head_layout, 'fc1_b')    # (1, B)
    sc_wT = sl(head_ref, head_layout, 'sc_wT')    # (B, 1)
    sc_b = sl(head_ref, head_layout, 'sc_b')      # (1, 1)

    tmp = jnp.dot(p1, w_a, preferred_element_type=f32)               # (1, F*K)
    e2rep = jnp.dot(p2, rexp, preferred_element_type=f32)            # (1, F*K)
    term1 = jnp.dot(tmp * e2rep, ssum, preferred_element_type=f32)   # (1, K)
    p12 = jnp.concatenate([p1, p2], axis=1)                          # (1, 2F)
    block = jnp.dot(p12, wbT, preferred_element_type=f32)            # (1, K)
    ntn = jnp.maximum(term1 + block + ntn_b, 0.0)                    # (1, K)

    # ---- fully_connected_first(tanh) + scoring(sigmoid) ----
    sim = jnp.concatenate([ntn, hist], axis=1)                       # (1, 2K)
    hid = jnp.tanh(jnp.dot(sim, fc1_wT, preferred_element_type=f32) + fc1_b)
    logit = jnp.dot(hid, sc_wT, preferred_element_type=f32) + sc_b   # (1, 1)
    score = jax.nn.sigmoid(logit)
    out_ref[0] = jnp.concatenate([score, logit], axis=1)             # (1, 2)


# --------------------------------------------------------------------------
# Wrapper: batched over pairs via a 'parallel' grid axis.
# --------------------------------------------------------------------------
def rgcn_forward(packed, A_blk, X, *, n1, n2, bins, num_relations):
    conv_slab, conv_layout, head_slab, head_layout = packed
    B, R, N, _ = A_blk.shape
    in_dim = X.shape[-1]
    kernel = functools.partial(
        _fused_rgcn_kernel, num_relations=num_relations, n1=n1, n2=n2,
        bins=bins, conv_layout=conv_layout, head_layout=head_layout)
    out = pl.pallas_call(
        kernel,
        out_shape=jax.ShapeDtypeStruct((B, 1, 2), jnp.float32),
        grid_spec=pltpu.PrefetchScalarGridSpec(
            num_scalar_prefetch=0,
            grid=(B,),
            in_specs=[
                pl.BlockSpec((1, R, N, N), lambda b: (b, 0, 0, 0)),
                pl.BlockSpec((1, N, in_dim), lambda b: (b, 0, 0)),
                pl.BlockSpec(conv_slab.shape, lambda b: (0, 0)),   # resident
                pl.BlockSpec(head_slab.shape, lambda b: (0, 0)),   # resident
            ],
            out_specs=pl.BlockSpec((1, 1, 2), lambda b: (b, 0, 0)),
        ),
        compiler_params=pltpu.CompilerParams(
            dimension_semantics=("parallel",)),
    )(A_blk, X, conv_slab, head_slab)
    return out[:, 0, 0], out[:, 0, 1]          # (score, logit) per pair


# --------------------------------------------------------------------------
# Glue: dense relation aggregation, parameter init and slab packing.
# --------------------------------------------------------------------------
def build_agg(edge_index, edge_type, num_nodes, num_relations):
    # A[r, i, j] = 1/deg_r(i) for edge j -> i of relation r  (PyG mean aggr)
    # TODO(synk): edge-list scatter has no clean dense Pallas mapping; kept in JAX glue.
    src, dst = edge_index[0], edge_index[1]
    A = jnp.zeros((num_relations, num_nodes, num_nodes), jnp.float32)
    A = A.at[edge_type, dst, src].add(1.0)
    deg = jnp.sum(A, axis=2, keepdims=True)
    A = jnp.where(deg > 0, A / jnp.where(deg > 0, deg, 1.0), 0.0)
    return A


def block_diag_pair(A1, A2):
    R, n1, _ = A1.shape
    _, n2, _ = A2.shape
    N = n1 + n2
    A = jnp.zeros((R, N, N), jnp.float32)
    A = A.at[:, :n1, :n1].set(A1)
    A = A.at[:, n1:, n1:].set(A2)
    return A


def pack_rows(entries, width):
    """Row-pack 2D arrays into a single (rows, width) f32 slab (8-row aligned)."""
    layout, rows = {}, 0
    for name, a in entries:
        r, c = a.shape
        layout[name] = (rows, r, c)
        rows += ((r + 7) // 8) * 8
    slab = jnp.zeros((rows, width), jnp.float32)
    for name, a in entries:
        o, r, c = layout[name]
        slab = slab.at[o:o + r, :c].set(a.astype(jnp.float32))
    return slab, layout


def init_params(key, in_dim, out_dim, K, bins, B, R):
    assert bins == K, "fully_connected_first expects tensor_neurons*2 = K + bins"
    hidden1, hidden2 = 64, 32
    F = out_dim
    ks = jax.random.split(key, 4)

    def g(k, shape, scale=0.2):
        return (scale * jax.random.normal(k, shape)).astype(jnp.float32)

    dims = [(in_dim, hidden1), (hidden1, hidden2), (hidden2, out_dim)]
    convs = []
    for i, (ci, co) in enumerate(dims):
        kw, kr, kb = jax.random.split(ks[i], 3)
        w = g(kw, (R, ci, co))          # per-relation weights
        root = g(kr, (ci, co))          # root/self weight
        bias = g(kb, (1, co))
        # stacked weight for the in-kernel stacked-K matmul: [root; W_0; ...; W_{R-1}]
        wfull = jnp.concatenate([root] + [w[r] for r in range(R)], axis=0)
        convs.append({'wfull': wfull, 'bias': bias})

    k3, k4, k5, k6, k7, k8, k9 = jax.random.split(ks[3], 7)
    head = {
        'weight_matrix': g(k3, (F, F, K)),        # TensorNetworkModule.weight_matrix
        'weight_matrix_block': g(k4, (K, 2 * F)),
        'ntn_bias': g(k5, (K, 1)),
        'fc1_w': g(k6, (B, 2 * K)),               # fully_connected_first
        'fc1_b': g(k7, (1, B)),
        'sc_w': g(k8, (1, B)),                    # scoring_layer
        'sc_b': g(k9, (1, 1)),
    }
    return {'convs': convs, 'head': head}


def pack_params(raw, F, K):
    conv_entries = []
    for i, c in enumerate(raw['convs']):
        conv_entries.append((f'w{i + 1}', c['wfull']))
        conv_entries.append((f'b{i + 1}', c['bias']))
    conv_width = max(a.shape[1] for _, a in conv_entries)
    conv_slab, conv_layout = pack_rows(conv_entries, conv_width)

    hp = raw['head']
    # constant expansion / strided-sum matrices (avoid in-kernel reshape)
    rexp = jnp.zeros((F, F * K), jnp.float32).at[
        jnp.repeat(jnp.arange(F), K), jnp.arange(F * K)].set(1.0)
    ssum = jnp.zeros((F * K, K), jnp.float32).at[
        jnp.arange(F * K), jnp.tile(jnp.arange(K), F)].set(1.0)
    head_entries = [
        ('w_a', hp['weight_matrix'].reshape(F, F * K)),
        ('rexp', rexp),
        ('ssum', ssum),
        ('wbT', hp['weight_matrix_block'].T),
        ('ntn_b', hp['ntn_bias'].T),
        ('fc1_wT', hp['fc1_w'].T),
        ('fc1_b', hp['fc1_b']),
        ('sc_wT', hp['sc_w'].T),
        ('sc_b', hp['sc_b']),
    ]
    head_width = max(a.shape[1] for _, a in head_entries)
    head_slab, head_layout = pack_rows(head_entries, head_width)
    return conv_slab, conv_layout, head_slab, head_layout


# --------------------------------------------------------------------------
# Pure-JAX reference (same math, unpacked params) for a lightweight check.
# --------------------------------------------------------------------------
def reference_forward(raw, x1, A1, x2, A2, bins):
    f32 = jnp.float32
    R = A1.shape[0]

    def conv_pass(A, x):
        for li, c in enumerate(raw['convs']):
            pieces = [x] + [A[r] @ x for r in range(R)]
            x = jnp.concatenate(pieces, axis=1) @ c['wfull'] + c['bias']
            if li != len(raw['convs']) - 1:
                x = jnp.maximum(x, 0.0)
        return x

    af1 = conv_pass(A1, x1.astype(f32))
    af2 = conv_pass(A2, x2.astype(f32))
    n1, n2 = af1.shape[0], af2.shape[0]
    s = af1 @ af2.T
    smin, smax = jnp.min(s), jnp.max(s)
    width = (smax - smin) / bins
    safe_w = jnp.where(width > 0, width, 1.0)
    idx = jnp.clip(jnp.floor((s - smin) / safe_w), 0, bins - 1).astype(jnp.int32)
    hist = jnp.zeros((bins,), f32).at[idx.reshape(-1)].add(1.0)
    hist = (hist / (n1 * n2)).reshape(1, bins)
    p1 = jnp.mean(af1, axis=0, keepdims=True)
    p2 = jnp.mean(af2, axis=0, keepdims=True)
    hp = raw['head']
    term1 = jnp.einsum('i,ijk,j->k', p1[0], hp['weight_matrix'], p2[0])[None, :]
    block = (hp['weight_matrix_block'] @ jnp.concatenate([p1, p2], axis=1).T).T
    ntn = jnp.maximum(term1 + block + hp['ntn_bias'].T, 0.0)
    sim = jnp.concatenate([ntn, hist], axis=1)
    h = jnp.tanh(sim @ hp['fc1_w'].T + hp['fc1_b'])
    logit = h @ hp['sc_w'].T + hp['sc_b']
    return jax.nn.sigmoid(logit).reshape(-1), logit.reshape(-1)


if __name__ == "__main__":
    key = jax.random.PRNGKey(0)
    in_dim, out_dim = 16, 16            # args.in_dim, args.out_dim (== filters_3)
    tensor_neurons = bins = 16          # args.tensor_neurons, args.bins
    bottleneck = 16                     # args.bottle_neck_neurons
    num_relations = 6
    n_pairs = 4                         # batched graph pairs -> parallel grid axis
    N1, N2, E1, E2 = 20, 16, 48, 40

    raw = init_params(jax.random.fold_in(key, 1000), in_dim, out_dim,
                      tensor_neurons, bins, bottleneck, num_relations)
    packed = pack_params(raw, out_dim, tensor_neurons)

    A_list, X_list, perpair = [], [], []
    for p in range(n_pairs):
        kp = jax.random.fold_in(key, p)
        kf1, kf2, ke1, ke2, kt1, kt2 = jax.random.split(kp, 6)
        x1 = jax.random.normal(kf1, (N1, in_dim), jnp.float32)
        x2 = jax.random.normal(kf2, (N2, in_dim), jnp.float32)
        ei1 = jax.random.randint(ke1, (2, E1), 0, N1)
        ei2 = jax.random.randint(ke2, (2, E2), 0, N2)
        et1 = jax.random.randint(kt1, (E1,), 0, num_relations)
        et2 = jax.random.randint(kt2, (E2,), 0, num_relations)
        A1 = build_agg(ei1, et1, N1, num_relations)
        A2 = build_agg(ei2, et2, N2, num_relations)
        A_list.append(block_diag_pair(A1, A2))
        X_list.append(jnp.concatenate([x1, x2], axis=0))
        perpair.append((x1, A1, x2, A2))
    A_blk = jnp.stack(A_list)           # (n_pairs, R, N1+N2, N1+N2)
    X = jnp.stack(X_list)               # (n_pairs, N1+N2, in_dim)

    score, logit = rgcn_forward(packed, A_blk, X, n1=N1, n2=N2, bins=bins,
                                num_relations=num_relations)
    jax.block_until_ready((score, logit))

    # Lightweight per-pair check against the pure-JAX reference.
    ref_s, ref_l = [], []
    for (x1, A1, x2, A2) in perpair:
        rs, rl = reference_forward(raw, x1, A1, x2, A2, bins)
        ref_s.append(rs)
        ref_l.append(rl)
    ref_s = jnp.concatenate(ref_s)
    ref_l = jnp.concatenate(ref_l)
    assert bool(jnp.max(jnp.abs(score - ref_s)) < 5e-2), "score mismatch vs reference"
    assert bool(jnp.max(jnp.abs(logit - ref_l)) < 5e-2), "logit mismatch vs reference"

    print("KERNEL_OK")
</pallas_src>

<mosaic_0001>
module attributes {stable_mosaic.version = 11 : i64} {
  func.func @_fused_rgcn_kernel(%arg0: i32, %arg1: memref<1x6x36x36xf32, #tpu.memory_space<vmem>>, %arg2: memref<1x36x16xf32, #tpu.memory_space<vmem>>, %arg3: memref<808x64xf32, #tpu.memory_space<vmem>>, %arg4: memref<392x256xf32, #tpu.memory_space<vmem>>, %arg5: memref<1x1x2xf32, #tpu.memory_space<vmem>>) attributes {dimension_semantics = [#tpu.dimension_semantics<parallel>], iteration_bounds = array<i64: 4>, scalar_prefetch = 0 : i64, scratch_operands = 0 : i64, tpu.core_type = #tpu.core_type<tc>, window_params = [{transform_indices = @transform_0, window_bounds = array<i64: 1, 6, 36, 36>}, {transform_indices = @transform_1, window_bounds = array<i64: 1, 36, 16>}, {pipeline_mode = #tpu.pipeline_mode<synchronous>, transform_indices = @transform_2, window_bounds = array<i64: 808, 64>}, {pipeline_mode = #tpu.pipeline_mode<synchronous>, transform_indices = @transform_3, window_bounds = array<i64: 392, 256>}, {transform_indices = @transform_4, window_bounds = array<i64: 1, 1, 2>}]} {
    %c0 = arith.constant 0 : index
    %c0_0 = arith.constant 0 : index
    %c0_1 = arith.constant 0 : index
    %0 = vector.load %arg2[%c0, %c0_0, %c0_1] : memref<1x36x16xf32, #tpu.memory_space<vmem>>, vector<1x36x16xf32>
    %1 = vector.shape_cast %0 : vector<1x36x16xf32> to vector<36x16xf32>
    %c0_2 = arith.constant 0 : index
    %c0_3 = arith.constant 0 : index
    %2 = vector.load %arg3[%c0_2, %c0_3] : memref<808x64xf32, #tpu.memory_space<vmem>>, vector<112x64xf32>
    %c112 = arith.constant 112 : index
    %c0_4 = arith.constant 0 : index
    %3 = vector.load %arg3[%c112, %c0_4] : memref<808x64xf32, #tpu.memory_space<vmem>>, vector<1x64xf32>
    %c0_5 = arith.constant 0 : index
    %c0_6 = arith.constant 0 : index
    %c0_7 = arith.constant 0 : index
    %c0_8 = arith.constant 0 : index
    %4 = vector.load %arg1[%c0_5, %c0_6, %c0_7, %c0_8] : memref<1x6x36x36xf32, #tpu.memory_space<vmem>>, vector<1x1x36x36xf32>
    %5 = vector.shape_cast %4 : vector<1x1x36x36xf32> to vector<36x36xf32>
    %cst = arith.constant dense<0.000000e+00> : vector<36x16xf32>
    %6 = tpu.matmul %5, %1, %cst {dimension_numbers = #tpu.dot_dimension_numbers<[1], [0], [0], [1], [0, 0, 1, 1], [], []>} : vector<36x36xf32>, vector<36x16xf32>, vector<36x16xf32> -> vector<36x16xf32>
    %c0_9 = arith.constant 0 : index
    %c1 = arith.constant 1 : index
    %c0_10 = arith.constant 0 : index
    %c0_11 = arith.constant 0 : index
    %7 = vector.load %arg1[%c0_9, %c1, %c0_10, %c0_11] : memref<1x6x36x36xf32, #tpu.memory_space<vmem>>, vector<1x1x36x36xf32>
    %8 = vector.shape_cast %7 : vector<1x1x36x36xf32> to vector<36x36xf32>
    %cst_12 = arith.constant dense<0.000000e+00> : vector<36x16xf32>
    %9 = tpu.matmul %8, %1, %cst_12 {dimension_numbers = #tpu.dot_dimension_numbers<[1], [0], [0], [1], [0, 0, 1, 1], [], []>} : vector<36x36xf32>, vector<36x16xf32>, vector<36x16xf32> -> vector<36x16xf32>
    %c0_13 = arith.constant 0 : index
    %c2 = arith.constant 2 : index
    %c0_14 = arith.constant 0 : index
    %c0_15 = arith.constant 0 : index
    %10 = vector.load %arg1[%c0_13, %c2, %c0_14, %c0_15] : memref<1x6x36x36xf32, #tpu.memory_space<vmem>>, vector<1x1x36x36xf32>
    %11 = vector.shape_cast %10 : vector<1x1x36x36xf32> to vector<36x36xf32>
    %cst_16 = arith.constant dense<0.000000e+00> : vector<36x16xf32>
    %12 = tpu.matmul %11, %1, %cst_16 {dimension_numbers = #tpu.dot_dimension_numbers<[1], [0], [0], [1], [0, 0, 1, 1], [], []>} : vector<36x36xf32>, vector<36x16xf32>, vector<36x16xf32> -> vector<36x16xf32>
    %c0_17 = arith.constant 0 : index
    %c3 = arith.constant 3 : index
    %c0_18 = arith.constant 0 : index
    %c0_19 = arith.constant 0 : index
    %13 = vector.load %arg1[%c0_17, %c3, %c0_18, %c0_19] : memref<1x6x36x36xf32, #tpu.memory_space<vmem>>, vector<1x1x36x36xf32>
    %14 = vector.shape_cast %13 : vector<1x1x36x36xf32> to vector<36x36xf32>
    %cst_20 = arith.constant dense<0.000000e+00> : vector<36x16xf32>
    %15 = tpu.matmul %14, %1, %cst_20 {dimension_numbers = #tpu.dot_dimension_numbers<[1], [0], [0], [1], [0, 0, 1, 1], [], []>} : vector<36x36xf32>, vector<36x16xf32>, vector<36x16xf32> -> vector<36x16xf32>
    %c0_21 = arith.constant 0 : index
    %c4 = arith.constant 4 : index
    %c0_22 = arith.constant 0 : index
    %c0_23 = arith.constant 0 : index
    %16 = vector.load %arg1[%c0_21, %c4, %c0_22, %c0_23] : memref<1x6x36x36xf32, #tpu.memory_space<vmem>>, vector<1x1x36x36xf32>
    %17 = vector.shape_cast %16 : vector<1x1x36x36xf32> to vector<36x36xf32>
    %cst_24 = arith.constant dense<0.000000e+00> : vector<36x16xf32>
    %18 = tpu.matmul %17, %1, %cst_24 {dimension_numbers = #tpu.dot_dimension_numbers<[1], [0], [0], [1], [0, 0, 1, 1], [], []>} : vector<36x36xf32>, vector<36x16xf32>, vector<36x16xf32> -> vector<36x16xf32>
    %c0_25 = arith.constant 0 : index
    %c5 = arith.constant 5 : index
    %c0_26 = arith.constant 0 : index
    %c0_27 = arith.constant 0 : index
    %19 = vector.load %arg1[%c0_25, %c5, %c0_26, %c0_27] : memref<1x6x36x36xf32, #tpu.memory_space<vmem>>, vector<1x1x36x36xf32>
    %20 = vector.shape_cast %19 : vector<1x1x36x36xf32> to vector<36x36xf32>
    %cst_28 = arith.constant dense<0.000000e+00> : vector<36x16xf32>
    %21 = tpu.matmul %20, %1, %cst_28 {dimension_numbers = #tpu.dot_dimension_numbers<[1], [0], [0], [1], [0, 0, 1, 1], [], []>} : vector<36x36xf32>, vector<36x16xf32>, vector<36x16xf32> -> vector<36x16xf32>
    %22 = tpu.concatenate %1, %6, %9, %12, %15, %18, %21 in 1 : vector<36x16xf32>, vector<36x16xf32>, vector<36x16xf32>, vector<36x16xf32>, vector<36x16xf32>, vector<36x16xf32>, vector<36x16xf32> -> vector<36x112xf32>
    %cst_29 = arith.constant dense<0.000000e+00> : vector<36x64xf32>
    %23 = tpu.matmul %22, %2, %cst_29 {dimension_numbers = #tpu.dot_dimension_numbers<[1], [0], [0], [1], [0, 0, 1, 1], [], []>} : vector<36x112xf32>, vector<112x64xf32>, vector<36x64xf32> -> vector<36x64xf32>
    %24 = vector.broadcast %3 : vector<1x64xf32> to vector<36x64xf32>
    %25 = arith.addf %23, %24 : vector<36x64xf32>
    %cst_30 = arith.constant 0.000000e+00 : f32
    %26 = vector.broadcast %cst_30 : f32 to vector<36x64xf32>
    %27 = arith.maximumf %25, %26 : vector<36x64xf32>
    %c120 = arith.constant 120 : index
    %c0_31 = arith.constant 0 : index
    %28 = vector.load %arg3[%c120, %c0_31] : memref<808x64xf32, #tpu.memory_space<vmem>>, vector<448x32xf32>
    %c568 = arith.constant 568 : index
    %c0_32 = arith.constant 0 : index
    %29 = vector.load %arg3[%c568, %c0_32] : memref<808x64xf32, #tpu.memory_space<vmem>>, vector<1x32xf32>
    %c0_33 = arith.constant 0 : index
    %c0_34 = arith.constant 0 : index
    %c0_35 = arith.constant 0 : index
    %c0_36 = arith.constant 0 : index
    %30 = vector.load %arg1[%c0_33, %c0_34, %c0_35, %c0_36] : memref<1x6x36x36xf32, #tpu.memory_space<vmem>>, vector<1x1x36x36xf32>
    %31 = vector.shape_cast %30 : vector<1x1x36x36xf32> to vector<36x36xf32>
    %cst_37 = arith.constant dense<0.000000e+00> : vector<36x64xf32>
    %32 = tpu.matmul %31, %27, %cst_37 {dimension_numbers = #tpu.dot_dimension_numbers<[1], [0], [0], [1], [0, 0, 1, 1], [], []>} : vector<36x36xf32>, vector<36x64xf32>, vector<36x64xf32> -> vector<36x64xf32>
    %c0_38 = arith.constant 0 : index
    %c1_39 = arith.constant 1 : index
    %c0_40 = arith.constant 0 : index
    %c0_41 = arith.constant 0 : index
    %33 = vector.load %arg1[%c0_38, %c1_39, %c0_40, %c0_41] : memref<1x6x36x36xf32, #tpu.memory_space<vmem>>, vector<1x1x36x36xf32>
    %34 = vector.shape_cast %33 : vector<1x1x36x36xf32> to vector<36x36xf32>
    %cst_42 = arith.constant dense<0.000000e+00> : vector<36x64xf32>
    %35 = tpu.matmul %34, %27, %cst_42 {dimension_numbers = #tpu.dot_dimension_numbers<[1], [0], [0], [1], [0, 0, 1, 1], [], []>} : vector<36x36xf32>, vector<36x64xf32>, vector<36x64xf32> -> vector<36x64xf32>
    %c0_43 = arith.constant 0 : index
    %c2_44 = arith.constant 2 : index
    %c0_45 = arith.constant 0 : index
    %c0_46 = arith.constant 0 : index
    %36 = vector.load %arg1[%c0_43, %c2_44, %c0_45, %c0_46] : memref<1x6x36x36xf32, #tpu.memory_space<vmem>>, vector<1x1x36x36xf32>
    %37 = vector.shape_cast %36 : vector<1x1x36x36xf32> to vector<36x36xf32>
    %cst_47 = arith.constant dense<0.000000e+00> : vector<36x64xf32>
    %38 = tpu.matmul %37, %27, %cst_47 {dimension_numbers = #tpu.dot_dimension_numbers<[1], [0], [0], [1], [0, 0, 1, 1], [], []>} : vector<36x36xf32>, vector<36x64xf32>, vector<36x64xf32> -> vector<36x64xf32>
    %c0_48 = arith.constant 0 : index
    %c3_49 = arith.constant 3 : index
    %c0_50 = arith.constant 0 : index
    %c0_51 = arith.constant 0 : index
    %39 = vector.load %arg1[%c0_48, %c3_49, %c0_50, %c0_51] : memref<1x6x36x36xf32, #tpu.memory_space<vmem>>, vector<1x1x36x36xf32>
    %40 = vector.shape_cast %39 : vector<1x1x36x36xf32> to vector<36x36xf32>
    %cst_52 = arith.constant dense<0.000000e+00> : vector<36x64xf32>
    %41 = tpu.matmul %40, %27, %cst_52 {dimension_numbers = #tpu.dot_dimension_numbers<[1], [0], [0], [1], [0, 0, 1, 1], [], []>} : vector<36x36xf32>, vector<36x64xf32>, vector<36x64xf32> -> vector<36x64xf32>
    %c0_53 = arith.constant 0 : index
    %c4_54 = arith.constant 4 : index
    %c0_55 = arith.constant 0 : index
    %c0_56 = arith.constant 0 : index
    %42 = vector.load %arg1[%c0_53, %c4_54, %c0_55, %c0_56] : memref<1x6x36x36xf32, #tpu.memory_space<vmem>>, vector<1x1x36x36xf32>
    %43 = vector.shape_cast %42 : vector<1x1x36x36xf32> to vector<36x36xf32>
    %cst_57 = arith.constant dense<0.000000e+00> : vector<36x64xf32>
    %44 = tpu.matmul %43, %27, %cst_57 {dimension_numbers = #tpu.dot_dimension_numbers<[1], [0], [0], [1], [0, 0, 1, 1], [], []>} : vector<36x36xf32>, vector<36x64xf32>, vector<36x64xf32> -> vector<36x64xf32>
    %c0_58 = arith.constant 0 : index
    %c5_59 = arith.constant 5 : index
    %c0_60 = arith.constant 0 : index
    %c0_61 = arith.constant 0 : index
    %45 = vector.load %arg1[%c0_58, %c5_59, %c0_60, %c0_61] : memref<1x6x36x36xf32, #tpu.memory_space<vmem>>, vector<1x1x36x36xf32>
    %46 = vector.shape_cast %45 : vector<1x1x36x36xf32> to vector<36x36xf32>
    %cst_62 = arith.constant dense<0.000000e+00> : vector<36x64xf32>
    %47 = tpu.matmul %46, %27, %cst_62 {dimension_numbers = #tpu.dot_dimension_numbers<[1], [0], [0], [1], [0, 0, 1, 1], [], []>} : vector<36x36xf32>, vector<36x64xf32>, vector<36x64xf32> -> vector<36x64xf32>
    %48 = tpu.concatenate %27, %32, %35, %38, %41, %44, %47 in 1 : vector<36x64xf32>, vector<36x64xf32>, vector<36x64xf32>, vector<36x64xf32>, vector<36x64xf32>, vector<36x64xf32>, vector<36x64xf32> -> vector<36x448xf32>
    %cst_63 = arith.constant dense<0.000000e+00> : vector<36x32xf32>
    %49 = tpu.matmul %48, %28, %cst_63 {dimension_numbers = #tpu.dot_dimension_numbers<[1], [0], [0], [1], [0, 0, 1, 1], [], []>} : vector<36x448xf32>, vector<448x32xf32>, vector<36x32xf32> -> vector<36x32xf32>
    %50 = vector.broadcast %29 : vector<1x32xf32> to vector<36x32xf32>
    %51 = arith.addf %49, %50 : vector<36x32xf32>
    %cst_64 = arith.constant 0.000000e+00 : f32
    %52 = vector.broadcast %cst_64 : f32 to vector<36x32xf32>
    %53 = arith.maximumf %51, %52 : vector<36x32xf32>
    %c576 = arith.constant 576 : index
    %c0_65 = arith.constant 0 : index
    %54 = vector.load %arg3[%c576, %c0_65] : memref<808x64xf32, #tpu.memory_space<vmem>>, vector<224x16xf32>
    %c800 = arith.constant 800 : index
    %c0_66 = arith.constant 0 : index
    %55 = vector.load %arg3[%c800, %c0_66] : memref<808x64xf32, #tpu.memory_space<vmem>>, vector<1x16xf32>
    %c0_67 = arith.constant 0 : index
    %c0_68 = arith.constant 0 : index
    %c0_69 = arith.constant 0 : index
    %c0_70 = arith.constant 0 : index
    %56 = vector.load %arg1[%c0_67, %c0_68, %c0_69, %c0_70] : memref<1x6x36x36xf32, #tpu.memory_space<vmem>>, vector<1x1x36x36xf32>
    %57 = vector.shape_cast %56 : vector<1x1x36x36xf32> to vector<36x36xf32>
    %cst_71 = arith.constant dense<0.000000e+00> : vector<36x32xf32>
    %58 = tpu.matmul %57, %53, %cst_71 {dimension_numbers = #tpu.dot_dimension_numbers<[1], [0], [0], [1], [0, 0, 1, 1], [], []>} : vector<36x36xf32>, vector<36x32xf32>, vector<36x32xf32> -> vector<36x32xf32>
    %c0_72 = arith.constant 0 : index
    %c1_73 = arith.constant 1 : index
    %c0_74 = arith.constant 0 : index
    %c0_75 = arith.constant 0 : index
    %59 = vector.load %arg1[%c0_72, %c1_73, %c0_74, %c0_75] : memref<1x6x36x36xf32, #tpu.memory_space<vmem>>, vector<1x1x36x36xf32>
    %60 = vector.shape_cast %59 : vector<1x1x36x36xf32> to vector<36x36xf32>
    %cst_76 = arith.constant dense<0.000000e+00> : vector<36x32xf32>
    %61 = tpu.matmul %60, %53, %cst_76 {dimension_numbers = #tpu.dot_dimension_numbers<[1], [0], [0], [1], [0, 0, 1, 1], [], []>} : vector<36x36xf32>, vector<36x32xf32>, vector<36x32xf32> -> vector<36x32xf32>
    %c0_77 = arith.constant 0 : index
    %c2_78 = arith.constant 2 : index
    %c0_79 = arith.constant 0 : index
    %c0_80 = arith.constant 0 : index
    %62 = vector.load %arg1[%c0_77, %c2_78, %c0_79, %c0_80] : memref<1x6x36x36xf32, #tpu.memory_space<vmem>>, vector<1x1x36x36xf32>
    %63 = vector.shape_cast %62 : vector<1x1x36x36xf32> to vector<36x36xf32>
    %cst_81 = arith.constant dense<0.000000e+00> : vector<36x32xf32>
    %64 = tpu.matmul %63, %53, %cst_81 {dimension_numbers = #tpu.dot_dimension_numbers<[1], [0], [0], [1], [0, 0, 1, 1], [], []>} : vector<36x36xf32>, vector<36x32xf32>, vector<36x32xf32> -> vector<36x32xf32>
    %c0_82 = arith.constant 0 : index
    %c3_83 = arith.constant 3 : index
    %c0_84 = arith.constant 0 : index
    %c0_85 = arith.constant 0 : index
    %65 = vector.load %arg1[%c0_82, %c3_83, %c0_84, %c0_85] : memref<1x6x36x36xf32, #tpu.memory_space<vmem>>, vector<1x1x36x36xf32>
    %66 = vector.shape_cast %65 : vector<1x1x36x36xf32> to vector<36x36xf32>
    %cst_86 = arith.constant dense<0.000000e+00> : vector<36x32xf32>
    %67 = tpu.matmul %66, %53, %cst_86 {dimension_numbers = #tpu.dot_dimension_numbers<[1], [0], [0], [1], [0, 0, 1, 1], [], []>} : vector<36x36xf32>, vector<36x32xf32>, vector<36x32xf32> -> vector<36x32xf32>
    %c0_87 = arith.constant 0 : index
    %c4_88 = arith.constant 4 : index
    %c0_89 = arith.constant 0 : index
    %c0_90 = arith.constant 0 : index
    %68 = vector.load %arg1[%c0_87, %c4_88, %c0_89, %c0_90] : memref<1x6x36x36xf32, #tpu.memory_space<vmem>>, vector<1x1x36x36xf32>
    %69 = vector.shape_cast %68 : vector<1x1x36x36xf32> to vector<36x36xf32>
    %cst_91 = arith.constant dense<0.000000e+00> : vector<36x32xf32>
    %70 = tpu.matmul %69, %53, %cst_91 {dimension_numbers = #tpu.dot_dimension_numbers<[1], [0], [0], [1], [0, 0, 1, 1], [], []>} : vector<36x36xf32>, vector<36x32xf32>, vector<36x32xf32> -> vector<36x32xf32>
    %c0_92 = arith.constant 0 : index
    %c5_93 = arith.constant 5 : index
    %c0_94 = arith.constant 0 : index
    %c0_95 = arith.constant 0 : index
    %71 = vector.load %arg1[%c0_92, %c5_93, %c0_94, %c0_95] : memref<1x6x36x36xf32, #tpu.memory_space<vmem>>, vector<1x1x36x36xf32>
    %72 = vector.shape_cast %71 : vector<1x1x36x36xf32> to vector<36x36xf32>
    %cst_96 = arith.constant dense<0.000000e+00> : vector<36x32xf32>
    %73 = tpu.matmul %72, %53, %cst_96 {dimension_numbers = #tpu.dot_dimension_numbers<[1], [0], [0], [1], [0, 0, 1, 1], [], []>} : vector<36x36xf32>, vector<36x32xf32>, vector<36x32xf32> -> vector<36x32xf32>
    %74 = tpu.concatenate %53, %58, %61, %64, %67, %70, %73 in 1 : vector<36x32xf32>, vector<36x32xf32>, vector<36x32xf32>, vector<36x32xf32>, vector<36x32xf32>, vector<36x32xf32>, vector<36x32xf32> -> vector<36x224xf32>
    %cst_97 = arith.constant dense<0.000000e+00> : vector<36x16xf32>
    %75 = tpu.matmul %74, %54, %cst_97 {dimension_numbers = #tpu.dot_dimension_numbers<[1], [0], [0], [1], [0, 0, 1, 1], [], []>} : vector<36x224xf32>, vector<224x16xf32>, vector<36x16xf32> -> vector<36x16xf32>
    %76 = vector.broadcast %55 : vector<1x16xf32> to vector<36x16xf32>
    %77 = arith.addf %75, %76 : vector<36x16xf32>
    %78 = vector.extract_strided_slice %77 {offsets = [0, 0], sizes = [20, 16], strides = [1, 1]} : vector<36x16xf32> to vector<20x16xf32>
    %79 = vector.extract_strided_slice %77 {offsets = [20, 0], sizes = [16, 16], strides = [1, 1]} : vector<36x16xf32> to vector<16x16xf32>
    %cst_98 = arith.constant dense<0.000000e+00> : vector<20x16xf32>
    %80 = tpu.matmul %78, %79, %cst_98 {dimension_numbers = #tpu.dot_dimension_numbers<[1], [1], [0], [0], [0, 0, 1, 0], [], []>} : vector<20x16xf32>, vector<16x16xf32>, vector<20x16xf32> -> vector<20x16xf32>
    %81 = vector.shape_cast %80 : vector<20x16xf32> to vector<1x20x16xf32>
    %cst_99 = arith.constant dense<0x7F800000> : vector<1xf32>
    %82 = vector.multi_reduction <minimumf>, %81, %cst_99 [1, 2] : vector<1x20x16xf32> to vector<1xf32>
    %83 = vector.shape_cast %82 : vector<1xf32> to vector<1x1x1xf32>
    %84 = vector.extract %83[0, 0, 0] : f32 from vector<1x1x1xf32>
    %85 = vector.broadcast %84 : f32 to vector<1x1xf32>
    %86 = vector.shape_cast %80 : vector<20x16xf32> to vector<1x20x16xf32>
    %cst_100 = arith.constant dense<0xFF800000> : vector<1xf32>
    %87 = vector.multi_reduction <maximumf>, %86, %cst_100 [1, 2] : vector<1x20x16xf32> to vector<1xf32>
    %88 = vector.shape_cast %87 : vector<1xf32> to vector<1x1x1xf32>
    %89 = vector.extract %88[0, 0, 0] : f32 from vector<1x1x1xf32>
    %90 = vector.broadcast %89 : f32 to vector<1x1xf32>
    %91 = arith.subf %90, %85 : vector<1x1xf32>
    %cst_101 = arith.constant 1.600000e+01 : f32
    %92 = vector.broadcast %cst_101 : f32 to vector<1x1xf32>
    %93 = arith.divf %91, %92 : vector<1x1xf32>
    %cst_102 = arith.constant 0.000000e+00 : f32
    %94 = vector.broadcast %cst_102 : f32 to vector<1x1xf32>
    %95 = arith.cmpf ogt, %93, %94 : vector<1x1xf32>
    %cst_103 = arith.constant 1.000000e+00 : f32
    %96 = vector.broadcast %cst_103 : f32 to vector<1x1xf32>
    %97 = arith.select %95, %93, %96 : vector<1x1xi1>, vector<1x1xf32>
    %98 = vector.broadcast %85 : vector<1x1xf32> to vector<20x16xf32>
    %99 = arith.subf %80, %98 : vector<20x16xf32>
    %100 = vector.broadcast %97 : vector<1x1xf32> to vector<20x16xf32>
    %101 = arith.divf %99, %100 : vector<20x16xf32>
    %102 = math.floor %101 : vector<20x16xf32>
    %c0_i32 = arith.constant 0 : i32
    %c15_i32 = arith.constant 15 : i32
    %103 = arith.sitofp %c0_i32 : i32 to f32
    %104 = vector.broadcast %103 : f32 to vector<20x16xf32>
    %105 = arith.maximumf %104, %102 : vector<20x16xf32>
    %106 = arith.sitofp %c15_i32 : i32 to f32
    %107 = vector.broadcast %106 : f32 to vector<20x16xf32>
    %108 = arith.minimumf %107, %105 : vector<20x16xf32>
    %109 = arith.fptosi %108 : vector<20x16xf32> to vector<20x16xi32>
    %110 = tpu.iota {dimensions = array<i32: 1>} : vector<1x16xi32>
    %cst_104 = arith.constant 0.000000e+00 : f32
    %111 = vector.broadcast %cst_104 : f32 to vector<20x16xf32>
    %112 = vector.extract_strided_slice %109 {offsets = [0, 0], sizes = [20, 1], strides = [1, 1]} : vector<20x16xi32> to vector<20x1xi32>
    %113 = vector.broadcast %112 : vector<20x1xi32> to vector<20x16xi32>
    %114 = vector.broadcast %110 : vector<1x16xi32> to vector<20x16xi32>
    %115 = arith.cmpi eq, %113, %114 : vector<20x16xi32>
    %116 = arith.extui %115 : vector<20x16xi1> to vector<20x16xi32>
    %117 = arith.sitofp %116 : vector<20x16xi32> to vector<20x16xf32>
    %118 = arith.addf %111, %117 : vector<20x16xf32>
    %119 = vector.extract_strided_slice %109 {offsets = [0, 1], sizes = [20, 1], strides = [1, 1]} : vector<20x16xi32> to vector<20x1xi32>
    %120 = vector.broadcast %119 : vector<20x1xi32> to vector<20x16xi32>
    %121 = vector.broadcast %110 : vector<1x16xi32> to vector<20x16xi32>
    %122 = arith.cmpi eq, %120, %121 : vector<20x16xi32>
    %123 = arith.extui %122 : vector<20x16xi1> to vector<20x16xi32>
    %124 = arith.sitofp %123 : vector<20x16xi32> to vector<20x16xf32>
    %125 = arith.addf %118, %124 : vector<20x16xf32>
    %126 = vector.extract_strided_slice %109 {offsets = [0, 2], sizes = [20, 1], strides = [1, 1]} : vector<20x16xi32> to vector<20x1xi32>
    %127 = vector.broadcast %126 : vector<20x1xi32> to vector<20x16xi32>
    %128 = vector.broadcast %110 : vector<1x16xi32> to vector<20x16xi32>
    %129 = arith.cmpi eq, %127, %128 : vector<20x16xi32>
    %130 = arith.extui %129 : vector<20x16xi1> to vector<20x16xi32>
    %131 = arith.sitofp %130 : vector<20x16xi32> to vector<20x16xf32>
    %132 = arith.addf %125, %131 : vector<20x16xf32>
    %133 = vector.extract_strided_slice %109 {offsets = [0, 3], sizes = [20, 1], strides = [1, 1]} : vector<20x16xi32> to vector<20x1xi32>
    %134 = vector.broadcast %133 : vector<20x1xi32> to vector<20x16xi32>
    %135 = vector.broadcast %110 : vector<1x16xi32> to vector<20x16xi32>
    %136 = arith.cmpi eq, %134, %135 : vector<20x16xi32>
    %137 = arith.extui %136 : vector<20x16xi1> to vector<20x16xi32>
    %138 = arith.sitofp %137 : vector<20x16xi32> to vector<20x16xf32>
    %139 = arith.addf %132, %138 : vector<20x16xf32>
    %140 = vector.extract_strided_slice %109 {offsets = [0, 4], sizes = [20, 1], strides = [1, 1]} : vector<20x16xi32> to vector<20x1xi32>
    %141 = vector.broadcast %140 : vector<20x1xi32> to vector<20x16xi32>
    %142 = vector.broadcast %110 : vector<1x16xi32> to vector<20x16xi32>
    %143 = arith.cmpi eq, %141, %142 : vector<20x16xi32>
    %144 = arith.extui %143 : vector<20x16xi1> to vector<20x16xi32>
    %145 = arith.sitofp %144 : vector<20x16xi32> to vector<20x16xf32>
    %146 = arith.addf %139, %145 : vector<20x16xf32>
    %147 = vector.extract_strided_slice %109 {offsets = [0, 5], sizes = [20, 1], strides = [1, 1]} : vector<20x16xi32> to vector<20x1xi32>
    %148 = vector.broadcast %147 : vector<20x1xi32> to vector<20x16xi32>
    %149 = vector.broadcast %110 : vector<1x16xi32> to vector<20x16xi32>
    %150 = arith.cmpi eq, %148, %149 : vector<20x16xi32>
    %151 = arith.extui %150 : vector<20x16xi1> to vector<20x16xi32>
    %152 = arith.sitofp %151 : vector<20x16xi32> to vector<20x16xf32>
    %153 = arith.addf %146, %152 : vector<20x16xf32>
    %154 = vector.extract_strided_slice %109 {offsets = [0, 6], sizes = [20, 1], strides = [1, 1]} : vector<20x16xi32> to vector<20x1xi32>
    %155 = vector.broadcast %154 : vector<20x1xi32> to vector<20x16xi32>
    %156 = vector.broadcast %110 : vector<1x16xi32> to vector<20x16xi32>
    %157 = arith.cmpi eq, %155, %156 : vector<20x16xi32>
    %158 = arith.extui %157 : vector<20x16xi1> to vector<20x16xi32>
    %159 = arith.sitofp %158 : vector<20x16xi32> to vector<20x16xf32>
    %160 = arith.addf %153, %159 : vector<20x16xf32>
    %161 = vector.extract_strided_slice %109 {offsets = [0, 7], sizes = [20, 1], strides = [1, 1]} : vector<20x16xi32> to vector<20x1xi32>
    %162 = vector.broadcast %161 : vector<20x1xi32> to vector<20x16xi32>
    %163 = vector.broadcast %110 : vector<1x16xi32> to vector<20x16xi32>
    %164 = arith.cmpi eq, %162, %163 : vector<20x16xi32>
    %165 = arith.extui %164 : vector<20x16xi1> to vector<20x16xi32>
    %166 = arith.sitofp %165 : vector<20x16xi32> to vector<20x16xf32>
    %167 = arith.addf %160, %166 : vector<20x16xf32>
    %168 = vector.extract_strided_slice %109 {offsets = [0, 8], sizes = [20, 1], strides = [1, 1]} : vector<20x16xi32> to vector<20x1xi32>
    %169 = vector.broadcast %168 : vector<20x1xi32> to vector<20x16xi32>
    %170 = vector.broadcast %110 : vector<1x16xi32> to vector<20x16xi32>
    %171 = arith.cmpi eq, %169, %170 : vector<20x16xi32>
    %172 = arith.extui %171 : vector<20x16xi1> to vector<20x16xi32>
    %173 = arith.sitofp %172 : vector<20x16xi32> to vector<20x16xf32>
    %174 = arith.addf %167, %173 : vector<20x16xf32>
    %175 = vector.extract_strided_slice %109 {offsets = [0, 9], sizes = [20, 1], strides = [1, 1]} : vector<20x16xi32> to vector<20x1xi32>
    %176 = vector.broadcast %175 : vector<20x1xi32> to vector<20x16xi32>
    %177 = vector.broadcast %110 : vector<1x16xi32> to vector<20x16xi32>
    %178 = arith.cmpi eq, %176, %177 : vector<20x16xi32>
    %179 = arith.extui %178 : vector<20x16xi1> to vector<20x16xi32>
    %180 = arith.sitofp %179 : vector<20x16xi32> to vector<20x16xf32>
    %181 = arith.addf %174, %180 : vector<20x16xf32>
    %182 = vector.extract_strided_slice %109 {offsets = [0, 10], sizes = [20, 1], strides = [1, 1]} : vector<20x16xi32> to vector<20x1xi32>
    %183 = vector.broadcast %182 : vector<20x1xi32> to vector<20x16xi32>
    %184 = vector.broadcast %110 : vector<1x16xi32> to vector<20x16xi32>
    %185 = arith.cmpi eq, %183, %184 : vector<20x16xi32>
    %186 = arith.extui %185 : vector<20x16xi1> to vector<20x16xi32>
    %187 = arith.sitofp %186 : vector<20x16xi32> to vector<20x16xf32>
    %188 = arith.addf %181, %187 : vector<20x16xf32>
    %189 = vector.extract_strided_slice %109 {offsets = [0, 11], sizes = [20, 1], strides = [1, 1]} : vector<20x16xi32> to vector<20x1xi32>
    %190 = vector.broadcast %189 : vector<20x1xi32> to vector<20x16xi32>
    %191 = vector.broadcast %110 : vector<1x16xi32> to vector<20x16xi32>
    %192 = arith.cmpi eq, %190, %191 : vector<20x16xi32>
    %193 = arith.extui %192 : vector<20x16xi1> to vector<20x16xi32>
    %194 = arith.sitofp %193 : vector<20x16xi32> to vector<20x16xf32>
    %195 = arith.addf %188, %194 : vector<20x16xf32>
    %196 = vector.extract_strided_slice %109 {offsets = [0, 12], sizes = [20, 1], strides = [1, 1]} : vector<20x16xi32> to vector<20x1xi32>
    %197 = vector.broadcast %196 : vector<20x1xi32> to vector<20x16xi32>
    %198 = vector.broadcast %110 : vector<1x16xi32> to vector<20x16xi32>
    %199 = arith.cmpi eq, %197, %198 : vector<20x16xi32>
    %200 = arith.extui %199 : vector<20x16xi1> to vector<20x16xi32>
    %201 = arith.sitofp %200 : vector<20x16xi32> to vector<20x16xf32>
    %202 = arith.addf %195, %201 : vector<20x16xf32>
    %203 = vector.extract_strided_slice %109 {offsets = [0, 13], sizes = [20, 1], strides = [1, 1]} : vector<20x16xi32> to vector<20x1xi32>
    %204 = vector.broadcast %203 : vector<20x1xi32> to vector<20x16xi32>
    %205 = vector.broadcast %110 : vector<1x16xi32> to vector<20x16xi32>
    %206 = arith.cmpi eq, %204, %205 : vector<20x16xi32>
    %207 = arith.extui %206 : vector<20x16xi1> to vector<20x16xi32>
    %208 = arith.sitofp %207 : vector<20x16xi32> to vector<20x16xf32>
    %209 = arith.addf %202, %208 : vector<20x16xf32>
    %210 = vector.extract_strided_slice %109 {offsets = [0, 14], sizes = [20, 1], strides = [1, 1]} : vector<20x16xi32> to vector<20x1xi32>
    %211 = vector.broadcast %210 : vector<20x1xi32> to vector<20x16xi32>
    %212 = vector.broadcast %110 : vector<1x16xi32> to vector<20x16xi32>
    %213 = arith.cmpi eq, %211, %212 : vector<20x16xi32>
    %214 = arith.extui %213 : vector<20x16xi1> to vector<20x16xi32>
    %215 = arith.sitofp %214 : vector<20x16xi32> to vector<20x16xf32>
    %216 = arith.addf %209, %215 : vector<20x16xf32>
    %217 = vector.extract_strided_slice %109 {offsets = [0, 15], sizes = [20, 1], strides = [1, 1]} : vector<20x16xi32> to vector<20x1xi32>
    %218 = vector.broadcast %217 : vector<20x1xi32> to vector<20x16xi32>
    %219 = vector.broadcast %110 : vector<1x16xi32> to vector<20x16xi32>
    %220 = arith.cmpi eq, %218, %219 : vector<20x16xi32>
    %221 = arith.extui %220 : vector<20x16xi1> to vector<20x16xi32>
    %222 = arith.sitofp %221 : vector<20x16xi32> to vector<20x16xf32>
    %223 = arith.addf %216, %222 : vector<20x16xf32>
    %cst_105 = arith.constant dense<0.000000e+00> : vector<16xf32>
    %224 = vector.multi_reduction <add>, %223, %cst_105 [0] : vector<20x16xf32> to vector<16xf32>
    %225 = vector.shape_cast %224 : vector<16xf32> to vector<1x16xf32>
    %cst_106 = arith.constant 3.125000e-03 : f32
    %226 = vector.broadcast %cst_106 : f32 to vector<1x16xf32>
    %227 = arith.mulf %225, %226 : vector<1x16xf32>
    %cst_107 = arith.constant dense<0.000000e+00> : vector<16xf32>
    %228 = vector.multi_reduction <add>, %78, %cst_107 [0] : vector<20x16xf32> to vector<16xf32>
    %229 = vector.shape_cast %228 : vector<16xf32> to vector<1x16xf32>
    %cst_108 = arith.constant 5.000000e-02 : f32
    %230 = vector.broadcast %cst_108 : f32 to vector<1x16xf32>
    %231 = arith.mulf %229, %230 : vector<1x16xf32>
    %cst_109 = arith.constant dense<0.000000e+00> : vector<16xf32>
    %232 = vector.multi_reduction <add>, %79, %cst_109 [0] : vector<16x16xf32> to vector<16xf32>
    %233 = vector.shape_cast %232 : vector<16xf32> to vector<1x16xf32>
    %cst_110 = arith.constant 6.250000e-02 : f32
    %234 = vector.broadcast %cst_110 : f32 to vector<1x16xf32>
    %235 = arith.mulf %233, %234 : vector<1x16xf32>
    %c0_111 = arith.constant 0 : index
    %c0_112 = arith.constant 0 : index
    %236 = vector.load %arg4[%c0_111, %c0_112] : memref<392x256xf32, #tpu.memory_space<vmem>>, vector<16x256xf32>
    %c16 = arith.constant 16 : index
    %c0_113 = arith.constant 0 : index
    %237 = vector.load %arg4[%c16, %c0_113] : memref<392x256xf32, #tpu.memory_space<vmem>>, vector<16x256xf32>
    %c32 = arith.constant 32 : index
    %c0_114 = arith.constant 0 : index
    %238 = vector.load %arg4[%c32, %c0_114] : memref<392x256xf32, #tpu.memory_space<vmem>>, vector<256x16xf32>
    %c288 = arith.constant 288 : index
    %c0_115 = arith.constant 0 : index
    %239 = vector.load %arg4[%c288, %c0_115] : memref<392x256xf32, #tpu.memory_space<vmem>>, vector<32x16xf32>
    %c320 = arith.constant 320 : index
    %c0_116 = arith.constant 0 : index
    %240 = vector.load %arg4[%c320, %c0_116] : memref<392x256xf32, #tpu.memory_space<vmem>>, vector<1x16xf32>
    %c328 = arith.constant 328 : index
    %c0_117 = arith.constant 0 : index
    %241 = vector.load %arg4[%c328, %c0_117] : memref<392x256xf32, #tpu.memory_space<vmem>>, vector<32x16xf32>
    %c360 = arith.constant 360 : index
    %c0_118 = arith.constant 0 : index
    %242 = vector.load %arg4[%c360, %c0_118] : memref<392x256xf32, #tpu.memory_space<vmem>>, vector<1x16xf32>
    %c368 = arith.constant 368 : index
    %c0_119 = arith.constant 0 : index
    %243 = vector.load %arg4[%c368, %c0_119] : memref<392x256xf32, #tpu.memory_space<vmem>>, vector<16x1xf32>
    %c384 = arith.constant 384 : index
    %c0_120 = arith.constant 0 : index
    %244 = vector.load %arg4[%c384, %c0_120] : memref<392x256xf32, #tpu.memory_space<vmem>>, vector<1x1xf32>
    %cst_121 = arith.constant dense<0.000000e+00> : vector<1x256xf32>
    %245 = tpu.matmul %231, %236, %cst_121 {dimension_numbers = #tpu.dot_dimension_numbers<[1], [0], [0], [1], [0, 0, 1, 1], [], []>} : vector<1x16xf32>, vector<16x256xf32>, vector<1x256xf32> -> vector<1x256xf32>
    %cst_122 = arith.constant dense<0.000000e+00> : vector<1x256xf32>
    %246 = tpu.matmul %235, %237, %cst_122 {dimension_numbers = #tpu.dot_dimension_numbers<[1], [0], [0], [1], [0, 0, 1, 1], [], []>} : vector<1x16xf32>, vector<16x256xf32>, vector<1x256xf32> -> vector<1x256xf32>
    %247 = arith.mulf %245, %246 : vector<1x256xf32>
    %cst_123 = arith.constant dense<0.000000e+00> : vector<1x16xf32>
    %248 = tpu.matmul %247, %238, %cst_123 {dimension_numbers = #tpu.dot_dimension_numbers<[1], [0], [0], [1], [0, 0, 1, 1], [], []>} : vector<1x256xf32>, vector<256x16xf32>, vector<1x16xf32> -> vector<1x16xf32>
    %249 = tpu.concatenate %231, %235 in 1 : vector<1x16xf32>, vector<1x16xf32> -> vector<1x32xf32>
    %cst_124 = arith.constant dense<0.000000e+00> : vector<1x16xf32>
    %250 = tpu.matmul %249, %239, %cst_124 {dimension_numbers = #tpu.dot_dimension_numbers<[1], [0], [0], [1], [0, 0, 1, 1], [], []>} : vector<1x32xf32>, vector<32x16xf32>, vector<1x16xf32> -> vector<1x16xf32>
    %251 = arith.addf %248, %250 : vector<1x16xf32>
    %252 = arith.addf %251, %240 : vector<1x16xf32>
    %cst_125 = arith.constant 0.000000e+00 : f32
    %253 = vector.broadcast %cst_125 : f32 to vector<1x16xf32>
    %254 = arith.maximumf %252, %253 : vector<1x16xf32>
    %255 = tpu.concatenate %254, %227 in 1 : vector<1x16xf32>, vector<1x16xf32> -> vector<1x32xf32>
    %cst_126 = arith.constant dense<0.000000e+00> : vector<1x16xf32>
    %256 = tpu.matmul %255, %241, %cst_126 {dimension_numbers = #tpu.dot_dimension_numbers<[1], [0], [0], [1], [0, 0, 1, 1], [], []>} : vector<1x32xf32>, vector<32x16xf32>, vector<1x16xf32> -> vector<1x16xf32>
    %257 = arith.addf %256, %242 : vector<1x16xf32>
    %258 = math.tanh %257 : vector<1x16xf32>
    %cst_127 = arith.constant dense<0.000000e+00> : vector<1x1xf32>
    %259 = tpu.matmul %258, %243, %cst_127 {dimension_numbers = #tpu.dot_dimension_numbers<[1], [0], [0], [1], [0, 0, 1, 1], [], []>} : vector<1x16xf32>, vector<16x1xf32>, vector<1x1xf32> -> vector<1x1xf32>
    %260 = arith.addf %259, %244 : vector<1x1xf32>
    %261 = arith.negf %260 : vector<1x1xf32>
    %262 = math.exp %261 : vector<1x1xf32>
    %cst_128 = arith.constant 1.000000e+00 : f32
    %263 = vector.broadcast %cst_128 : f32 to vector<1x1xf32>
    %264 = arith.addf %263, %262 : vector<1x1xf32>
    %265 = arith.divf %263, %264 : vector<1x1xf32>
    %266 = tpu.concatenate %265, %260 in 1 : vector<1x1xf32>, vector<1x1xf32> -> vector<1x2xf32>
    %c0_129 = arith.constant 0 : index
    %c0_130 = arith.constant 0 : index
    %c0_131 = arith.constant 0 : index
    %267 = vector.load %arg5[%c0_129, %c0_130, %c0_131] : memref<1x1x2xf32, #tpu.memory_space<vmem>>, vector<1x1x2xf32>
    %268 = vector.shape_cast %267 : vector<1x1x2xf32> to vector<1x2xf32>
    %269 = vector.shape_cast %266 : vector<1x2xf32> to vector<1x1x2xf32>
    tpu.vector_store %arg5[%c0_129, %c0_130, %c0_131], %269 {strides = array<i32>} : memref<1x1x2xf32, #tpu.memory_space<vmem>>, vector<1x1x2xf32>,
    return
  }
  func.func @transform_0(%arg0: i32) -> (i32, i32, i32, i32) {
    %c0_i32 = arith.constant 0 : i32
    %c0_i32_0 = arith.constant 0 : i32
    %c0_i32_1 = arith.constant 0 : i32
    %c0_i32_2 = arith.constant 0 : i32
    return %arg0, %c0_i32, %c0_i32_0, %c0_i32_1 : i32, i32, i32, i32
  }
  func.func @transform_1(%arg0: i32) -> (i32, i32, i32) {
    %c0_i32 = arith.constant 0 : i32
    %c0_i32_0 = arith.constant 0 : i32
    %c0_i32_1 = arith.constant 0 : i32
    return %arg0, %c0_i32, %c0_i32_0 : i32, i32, i32
  }
  func.func @transform_2(%arg0: i32) -> (i32, i32) {
    %c0_i32 = arith.constant 0 : i32
    %c0_i32_0 = arith.constant 0 : i32
    %c0_i32_1 = arith.constant 0 : i32
    return %c0_i32, %c0_i32_0 : i32, i32
  }
  func.func @transform_3(%arg0: i32) -> (i32, i32) {
    %c0_i32 = arith.constant 0 : i32
    %c0_i32_0 = arith.constant 0 : i32
    %c0_i32_1 = arith.constant 0 : i32
    return %c0_i32, %c0_i32_0 : i32, i32
  }
  func.func @transform_4(%arg0: i32) -> (i32, i32, i32) {
    %c0_i32 = arith.constant 0 : i32
    %c0_i32_0 = arith.constant 0 : i32
    %c0_i32_1 = arith.constant 0 : i32
    return %arg0, %c0_i32, %c0_i32_0 : i32, i32, i32
  }
}

</mosaic_0001>

<bundles_post_ra>
// kernel: tpu_custom_call.1
= control target key start
LH: loop header
LB: loop body
LE: loop exit
PB: predicated region body
PF: predicated region fallthrough
CT: control target
= control target key end

     0   :  { %s5557_s15 = smov 0   ;;  %s7214_s0 = inlined_call_operand.vmem [shape: f32[4,6,36,36], index: 0, kind: input, shape index: {}]   ;;  %s7215_s1 = inlined_call_operand.vmem [shape: f32[4,36,16], index: 1, kind: input, shape index: {}]   ;;  %s7216_s2 = inlined_call_operand.vmem [shape: f32[808,64], index: 2, kind: input, shape index: {}]   ;;  %s7217_s3 = inlined_call_operand.vmem [shape: f32[392,256], index: 3, kind: input, shape index: {}]   ;;  %s7218_s4 = inlined_call_operand.vmem [shape: f32[4,1,2], index: 4, kind: output, shape index: {}]  }
   0x1 LB: > { %s3966_s16 = sadd.s32 4294967295, %s5504_s15   ;;  %p3970_p0 = scmp.ge.s32.totalorder %s5504_s15, 1  ;;  %s5504_s15 = sphi %s5557_s15, %s14_s15  }
   0x2   : > { %p172_p1 = scmp.lt.s32.totalorder %s5504_s15, 5 }
   0x4   : > { %p173_p2 = pnand %p3970_p0, %p172_p1 }
   0x5   : > { %p201_p3 = scmp.lt.s32.totalorder (!%p173_p2), %s3966_s16, 3  ;;  %v5506_v0 = vmov (!%p173_p2), 0.0|0.0   ;;  %vm5507_vm0 = vmmov (!%p173_p2), 0   ;;  %v5508_v1 = vmov (!%p173_p2), 0.0   ;;  %vm255_vm1 = vcmask (!%p173_p2), 1043456   ;;  %s5509_s25 = smov (!%p173_p2), 16  }
   0x6   : > { %176 = sbr.rel (%p173_p2) target bundleno = 3288 (0xcd8), region = 36  ;;  %5019 = vmatprep.subr.bf16.mxu0 (!%p173_p2), %v5506_v0  ;;  %5025 = vmatprep.subr.bf16.mxu1 (!%p173_p2), %v5506_v0  ;;  %vm239_vm2 = vcmask (!%p173_p2), 293888   ;;  %v219_v43 = vld [vmem:[%s7216_s2] sm:$0xff] (!%p173_p2)  ;;  %v220_v44 = vld [vmem:[%s7216_s2 + $0x8] sm:$0xff] (!%p173_p2)  ;;  %s5510_s30 = smov (!%p173_p2), 32   ;;  %v221_v50 = vld [vmem:[%s7216_s2 + $0x10] sm:$0xff] (!%p173_p2) }
   0x7   : > { %4494 = vmatprep.mubr.msk.f32.mxu0 (!%p173_p2), %vm5507_vm0, %v5508_v1  ;;  %4519 = vmatprep.mubr.msk.f32.mxu1 (!%p173_p2), %vm5507_vm0, %v5508_v1  ;;  %v5056_v47 = vpack.c.bf16 (!%p173_p2), %v220_v44, %v219_v43  ;;  %v222_v51 = vld [vmem:[%s7216_s2 + $0x18] sm:$0xff] (!%p173_p2)  ;;  %v223_v57 = vld [vmem:[%s7216_s2 + $0x20] sm:$0xff] (!%p173_p2)  ;;  %v224_v58 = vld [vmem:[%s7216_s2 + $0x28] sm:$0xff] (!%p173_p2)  ;;  %s5511_s23 = smov (!%p173_p2), 48   ;;  %s5512_s5 = smov (!%p173_p2), 64   ;;  %vm1024_vm3 = vcmask (!%p173_p2), 130048  }
   0x8   : > { %v5059_v54 = vpack.c.bf16 (!%p173_p2), %v222_v51, %v221_v50  ;;  %v5062_v61 = vpack.c.bf16 (!%p173_p2), %v224_v58, %v223_v57  ;;  %v227_v44 = vld [vmem:[%s7216_s2 + $0x40] sm:$0xff] (!%p173_p2)  ;;  %v229_v51 = vld [vmem:[%s7216_s2 + $0x50] sm:$0xff] (!%p173_p2)  ;;  %s5513_s10 = smov (!%p173_p2), 80   ;;  %s5514_s11 = smov (!%p173_p2), 96   ;;  %vm1030_vm4 = vcmask (!%p173_p2), 261120   ;;  %vm1036_vm5 = vcmask (!%p173_p2), 392192   ;;  %vm5260_vm11 = vmpackc.low (!%p173_p2), %vm1024_vm3, %vm1024_vm3 }
   0x9   : > { %v231_v58 = vld [vmem:[%s7216_s2 + $0x60] sm:$0xff] (!%p173_p2)  ;;  %vm1042_vm6 = vcmask (!%p173_p2), 523264   ;;  %vm1048_vm7 = vcmask (!%p173_p2), 654336   ;;  %vm1054_vm8 = vcmask (!%p173_p2), 785408   ;;  %vm1064_vm9 = vcmask (!%p173_p2), 916480   ;;  %s5531_s27 = smov (!%p173_p2), 1  }
   0xa   : > { %vm2962_vm10 = vcmask (!%p173_p2), 125952  }
   0xd   : > { %s7220_s16 = smov (!%p201_p3, %s3966_s16), 3 }
   0xe   : > { %s5318_s17 = smul.u32 40, %s7220_s16  ;;  %s213_s6 = scalar_lea.vmem %s7218_s4, %s7220_s16 }
   0xf   : > { %s5317_s21 = smul.u32 240, %s7220_s16 }
  0x10   : > { %s210_s20 = scalar_lea.vmem %s7215_s1, %s5318_s17 }
  0x11   : > { %v5577_v2 = vld [vmem:[%s210_s20] sm:$0xff]  ;;  %v5579_v3 = vld [vmem:[%s210_s20 + $0x8] sm:$0xff]  ;;  %v5581_v4 = vld [vmem:[%s210_s20 + $0x10] sm:$0xff]  ;;  %s5601_s24 = scalar_lea.vmem %s7214_s0, %s5317_s21 }
  0x12   : > { %v5585_v5 = vpack.c.bf16 %v5579_v3, %v5577_v2  ;;  %v5587_v6 = vld [vmem:[%s210_s20 + $0x18] sm:$0xff]  ;;  %v5607_v8 = vld [vmem:[%s210_s20 + $0x20] sm:$0xf]  ;;  %v5613_v10 = vld [vmem:[%s5601_s24 + $0x28] sm:$0xff] }
  0x13   : > { %v5594_v7 = vpack.c.bf16 %v5587_v6, %v5581_v4  ;;  %v5610_v9 = vld [vmem:[%s5601_s24] sm:$0xff]  ;;  %v5628_v11 = vld [vmem:[%s5601_s24 + $0x8] sm:$0xff]  ;;  %v5631_v12 = vld [vmem:[%s5601_s24 + $0x30] sm:$0xff] }
  0x14   : > { %5021 = vmatpush3.bf16.msra.mxu0 %v5585_v5  ;;  %5027 = vmatpush3.bf16.msra.mxu1 %v5585_v5  ;;  %v5646_v13 = vld [vmem:[%s5601_s24 + $0x10] sm:$0xff]  ;;  %v5649_v14 = vld [vmem:[%s5601_s24 + $0x38] sm:$0xff]  ;;  %v5667_v16 = vld [vmem:[%s5601_s24 + $0x40] sm:$0xff] }
  0x15   : > { %5022 = vmatprep.subr.bf16.mxu0 %v5506_v0  ;;  %5028 = vmatprep.subr.bf16.mxu1 %v5506_v0  ;;  %v5664_v15 = vld [vmem:[%s5601_s24 + $0x18] sm:$0xff]  ;;  %v5684_v17 = vld [vmem:[%s5601_s24 + $0x20] sm:$0xf]  ;;  %v5687_v18 = vld [vmem:[%s5601_s24 + $0x48] sm:$0xf] }
  0x16   : > { %v5698_v19 = vld [vmem:[%s5601_s24 + $0x50] sm:$0xff]  ;;  %v5703_v20 = vld [vmem:[%s5601_s24 + $0x78] sm:$0xff]  ;;  %v5717_v22 = vld [vmem:[%s5601_s24 + $0x80] sm:$0xff] }
  0x17   : > { %v5712_v21 = vld [vmem:[%s5601_s24 + $0x58] sm:$0xff]  ;;  %v5730_v23 = vld [vmem:[%s5601_s24 + $0x60] sm:$0xff]  ;;  %v5735_v24 = vld [vmem:[%s5601_s24 + $0x88] sm:$0xff] }
  0x18   : > { %5024 = vmatpush3.bf16.msra.mxu0 %v5594_v7  ;;  %5030 = vmatpush3.bf16.msra.mxu1 %v5594_v7  ;;  %v5748_v25 = vld [vmem:[%s5601_s24 + $0x68] sm:$0xff]  ;;  %v5753_v26 = vld [vmem:[%s5601_s24 + $0x90] sm:$0xff]  ;;  %v5773_v28 = vld [vmem:[%s5601_s24 + $0x98] sm:$0xf] }
  0x19   : > { %4492 = vmatprep.subr.mxu0 %v5508_v1  ;;  %4517 = vmatprep.subr.mxu1 %v5508_v1  ;;  %v5768_v27 = vld [vmem:[%s5601_s24 + $0x70] sm:$0xf]  ;;  %v5782_v29 = vld [vmem:[%s5601_s24 + $0xa0] sm:$0xff]  ;;  %v5787_v30 = vld [vmem:[%s5601_s24 + $0xc8] sm:$0xff] }
  0x1a   : > { %v5796_v31 = vld [vmem:[%s5601_s24 + $0xa8] sm:$0xff]  ;;  %v5801_v32 = vld [vmem:[%s5601_s24 + $0xd0] sm:$0xff]  ;;  %v5815_v34 = vld [vmem:[%s5601_s24 + $0xd8] sm:$0xff] }
  0x1b   : > { %v5810_v33 = vld [vmem:[%s5601_s24 + $0xb0] sm:$0xff]  ;;  %v5824_v35 = vld [vmem:[%s5601_s24 + $0xb8] sm:$0xff]  ;;  %v5829_v36 = vld [vmem:[%s5601_s24 + $0xe0] sm:$0xff] }
  0x1c   : > { %4493 = vmatpush3.msk.msra.mxu0 %vm255_vm1, %v5607_v8  ;;  %4518 = vmatpush3.msk.msra.mxu1 %vm255_vm1, %v5607_v8  ;;  %v5838_v37 = vld [vmem:[%s5601_s24 + $0xc0] sm:$0xf]  ;;  %v5843_v38 = vld [vmem:[%s5601_s24 + $0xe8] sm:$0xf] }
  0x1d   : > { %4495 = vmatmul.mubr.msk.f32.vlgmr.msra.gmra.mrb[0].mxu0 %vm239_vm2, %v5610_v9  ;;  %4520 = vmatmul.mubr.msk.f32.vlgmr.msra.gmra.mrb[0].mxu1 %vm239_vm2, %v5613_v10 }
  0x1e   : > { %4497 = vmatprep.mubr.msk.f32.mxu0 %vm5507_vm0, %v5508_v1  ;;  %4522 = vmatprep.mubr.msk.f32.mxu1 %vm5507_vm0, %v5508_v1 }
  0x1f   : > { %5031 = vmatprep.subr.bf16.mxu0 %v5506_v0  ;;  %5037 = vmatprep.subr.bf16.mxu1 %v5506_v0 }
  0x20   : > { %5033 = vmatpush3.bf16.msra.mxu0 %v5585_v5  ;;  %5039 = vmatpush3.bf16.msra.mxu1 %v5585_v5 }
  0x21   : > { %4498 = vmatmul.mubr.msk.f32.gmra.mrb[2].mxu0 %vm239_vm2, %v5628_v11  ;;  %4523 = vmatmul.mubr.msk.f32.gmra.mrb[2].mxu1 %vm239_vm2, %v5631_v12 }
  0x22   : > { %4500 = vmatprep.mubr.msk.f32.mxu0 %vm5507_vm0, %v5508_v1  ;;  %4525 = vmatprep.mubr.msk.f32.mxu1 %vm5507_vm0, %v5508_v1 }
  0x23   : > { %5034 = vmatprep.subr.bf16.mxu0 %v5506_v0  ;;  %5040 = vmatprep.subr.bf16.mxu1 %v5506_v0 }
  0x24   : > { %5036 = vmatpush3.bf16.msra.mxu0 %v5594_v7  ;;  %5042 = vmatpush3.bf16.msra.mxu1 %v5594_v7 }
  0x25   : > { %4501 = vmatmul.mubr.msk.f32.gmra.mrb[4].mxu0 %vm239_vm2, %v5646_v13  ;;  %4526 = vmatmul.mubr.msk.f32.gmra.mrb[4].mxu1 %vm239_vm2, %v5649_v14 }
  0x26   : > { %4503 = vmatprep.mubr.msk.f32.mxu0 %vm5507_vm0, %v5508_v1  ;;  %4528 = vmatprep.mubr.msk.f32.mxu1 %vm5507_vm0, %v5508_v1 }
  0x27   : > { %4542 = vmatprep.subr.mxu0 %v5508_v1  ;;  %4567 = vmatprep.subr.mxu1 %v5508_v1 }
  0x28   : > { %4543 = vmatpush3.msk.msra.mxu0 %vm255_vm1, %v5607_v8  ;;  %4568 = vmatpush3.msk.msra.mxu1 %vm255_vm1, %v5607_v8 }
  0x29   : > { %4504 = vmatmul.mubr.msk.f32.gmra.mrb[6].mxu0 %vm239_vm2, %v5664_v15  ;;  %4529 = vmatmul.mubr.msk.f32.gmra.mrb[6].mxu1 %vm239_vm2, %v5667_v16 }
  0x2a   : > { %4506 = vmatprep.mubr.msk.f32.mxu0 %vm5507_vm0, %v5508_v1  ;;  %4531 = vmatprep.mubr.msk.f32.mxu1 %vm5507_vm0, %v5508_v1 }
  0x2b   : > { %5043 = vmatprep.subr.bf16.mxu0 %v5506_v0  ;;  %5049 = vmatprep.subr.bf16.mxu1 %v5506_v0 }
  0x2d   : > { %4507 = vmatmul.mubr.msk.f32.gmra.mrb[8].mxu0 %vm239_vm2, %v5684_v17  ;;  %4532 = vmatmul.mubr.msk.f32.gmra.mrb[8].mxu1 %vm239_vm2, %v5687_v18 }
  0x2e   : > { %4544 = vmatprep.mubr.msk.f32.mxu0 %vm5507_vm0, %v5508_v1  ;;  %4569 = vmatprep.mubr.msk.f32.mxu1 %vm5507_vm0, %v5508_v1 }
  0x31   : > { %4545 = vmatmul.mubr.msk.f32.vlgmr.msra.gmra.mrb[10].mxu0 %vm239_vm2, %v5698_v19  ;;  %4570 = vmatmul.mubr.msk.f32.vlgmr.msra.gmra.mrb[10].mxu1 %vm239_vm2, %v5703_v20 }
  0x32   : > { %4547 = vmatprep.mubr.msk.f32.mxu0 %vm5507_vm0, %v5508_v1  ;;  %4572 = vmatprep.mubr.msk.f32.mxu1 %vm5507_vm0, %v5508_v1 }
  0x33   : > { %5045 = vmatpush3.bf16.msra.mxu0 %v5585_v5  ;;  %5051 = vmatpush3.bf16.msra.mxu1 %v5585_v5  ;;  %v225_v5 = vld [vmem:[%s7216_s2 + $0x30] sm:$0xff] }
  0x34   : > { %5046 = vmatprep.subr.bf16.mxu0 %v5506_v0  ;;  %5052 = vmatprep.subr.bf16.mxu1 %v5506_v0 }
  0x35   : > { %4548 = vmatmul.mubr.msk.f32.gmra.mrb[12].mxu0 %vm239_vm2, %v5712_v21  ;;  %4573 = vmatmul.mubr.msk.f32.gmra.mrb[12].mxu1 %vm239_vm2, %v5717_v22 }
  0x36   : > { %4550 = vmatprep.mubr.msk.f32.mxu0 %vm5507_vm0, %v5508_v1  ;;  %4575 = vmatprep.mubr.msk.f32.mxu1 %vm5507_vm0, %v5508_v1 }
  0x37   : > { %5048 = vmatpush3.bf16.msra.mxu0 %v5594_v7  ;;  %5054 = vmatpush3.bf16.msra.mxu1 %v5594_v7  ;;  %v226_v7 = vld [vmem:[%s7216_s2 + $0x38] sm:$0xff] }
  0x38   : > { %4592 = vmatprep.subr.mxu0 %v5508_v1  ;;  %4617 = vmatprep.subr.mxu1 %v5508_v1 }
  0x39   : > { %4551 = vmatmul.mubr.msk.f32.gmra.mrb[14].mxu0 %vm239_vm2, %v5730_v23  ;;  %4576 = vmatmul.mubr.msk.f32.gmra.mrb[14].mxu1 %vm239_vm2, %v5735_v24 }
  0x3a   : > { %4553 = vmatprep.mubr.msk.f32.mxu0 %vm5507_vm0, %v5508_v1  ;;  %4578 = vmatprep.mubr.msk.f32.mxu1 %vm5507_vm0, %v5508_v1 }
  0x3b   : > { %4593 = vmatpush3.msk.msra.mxu0 %vm255_vm1, %v5607_v8  ;;  %4618 = vmatpush3.msk.msra.mxu1 %vm255_vm1, %v5607_v8 }
  0x3c   : > { %5055 = vmatprep.subr.bf16.mxu0 %v5506_v0  ;;  %5076 = vmatprep.subr.bf16.mxu1 %v5506_v0 }
  0x3d   : > { %4554 = vmatmul.mubr.msk.f32.gmra.mrb[16].mxu0 %vm239_vm2, %v5748_v25  ;;  %4579 = vmatmul.mubr.msk.f32.gmra.mrb[16].mxu1 %vm239_vm2, %v5753_v26 }
  0x3e   : > { %4556 = vmatprep.mubr.msk.f32.mxu0 %vm5507_vm0, %v5508_v1  ;;  %4581 = vmatprep.mubr.msk.f32.mxu1 %vm5507_vm0, %v5508_v1 }
  0x41   : > { %4557 = vmatmul.mubr.msk.f32.gmra.mrb[18].mxu0 %vm239_vm2, %v5768_v27  ;;  %4582 = vmatmul.mubr.msk.f32.gmra.mrb[18].mxu1 %vm239_vm2, %v5773_v28 }
  0x42   : > { %4594 = vmatprep.mubr.msk.f32.mxu0 %vm5507_vm0, %v5508_v1  ;;  %4619 = vmatprep.mubr.msk.f32.mxu1 %vm5507_vm0, %v5508_v1 }
  0x45   : > { %4595 = vmatmul.mubr.msk.f32.vlgmr.msra.gmra.mrb[20].mxu0 %vm239_vm2, %v5782_v29  ;;  %4620 = vmatmul.mubr.msk.f32.vlgmr.msra.gmra.mrb[20].mxu1 %vm239_vm2, %v5787_v30 }
  0x46   : > { %4597 = vmatprep.mubr.msk.f32.mxu0 %vm5507_vm0, %v5508_v1  ;;  %4622 = vmatprep.mubr.msk.f32.mxu1 %vm5507_vm0, %v5508_v1 }
  0x47   : > { %5057 = vmatpush3.bf16.msra.mxu0 %v5056_v47 }
  0x48   : > { %5058 = vmatprep.subr.bf16.mxu0 %v5506_v0 }
  0x49   : > { %4598 = vmatmul.mubr.msk.f32.gmra.mrb[22].mxu0 %vm239_vm2, %v5796_v31  ;;  %4623 = vmatmul.mubr.msk.f32.gmra.mrb[22].mxu1 %vm239_vm2, %v5801_v32 }
  0x4a   : > { %4600 = vmatprep.mubr.msk.f32.mxu0 %vm5507_vm0, %v5508_v1  ;;  %4625 = vmatprep.mubr.msk.f32.mxu1 %vm5507_vm0, %v5508_v1 }
  0x4b   : > { %5060 = vmatpush3.bf16.msra.mxu0 %v5059_v54 }
  0x4c   : > { %5061 = vmatprep.subr.bf16.mxu0 %v5506_v0 }
  0x4d   : > { %4601 = vmatmul.mubr.msk.f32.gmra.mrb[24].mxu0 %vm239_vm2, %v5810_v33  ;;  %4626 = vmatmul.mubr.msk.f32.gmra.mrb[24].mxu1 %vm239_vm2, %v5815_v34 }
  0x4e   : > { %4603 = vmatprep.mubr.msk.f32.mxu0 %vm5507_vm0, %v5508_v1  ;;  %4628 = vmatprep.mubr.msk.f32.mxu1 %vm5507_vm0, %v5508_v1 }
  0x4f   : > { %5063 = vmatpush3.bf16.msra.mxu0 %v5062_v61  ;;  %v232_v61 = vld [vmem:[%s7216_s2 + $0x68] sm:$0xff] }
  0x50   : > { %5064 = vmatprep.subr.bf16.mxu0 %v5506_v0 }
  0x51   : > { %4604 = vmatmul.mubr.msk.f32.gmra.mrb[26].mxu0 %vm239_vm2, %v5824_v35  ;;  %4629 = vmatmul.mubr.msk.f32.gmra.mrb[26].mxu1 %vm239_vm2, %v5829_v36 }
  0x52   : > { %4606 = vmatprep.mubr.msk.f32.mxu0 %vm5507_vm0, %v5508_v1  ;;  %4631 = vmatprep.mubr.msk.f32.mxu1 %vm5507_vm0, %v5508_v1 }
  0x55   : > { %4607 = vmatmul.mubr.msk.f32.gmra.mrb[28].mxu0 %vm239_vm2, %v5838_v37  ;;  %4632 = vmatmul.mubr.msk.f32.gmra.mrb[28].mxu1 %vm239_vm2, %v5843_v38 }
  0x56   : > { %4662 = vmatprep.mubr.msk.f32.mxu0 %vm5507_vm0, %v5508_v1  ;;  %4687 = vmatprep.mubr.msk.f32.mxu1 %vm5507_vm0, %v5508_v1 }
  0xf0   : > { %v325_v39 = vpop.f32.mrb[0].mxu0  ;;  %v436_v40 = vpop.f32.mrb[0].mxu1 }
  0xf1   : > { %v4521_v41 = vpop.f32.mrb[1].mxu1  ;;  %909 = vrot.lane.b32.xlu0 %v325_v39, %s5509_s25  ;;  %v4496_v42 = vpop.f32.mrb[1].mxu0 }
  0xf2   : > { %v5065_v41 = vpack.c.bf16 %v226_v7, %v225_v5  ;;  %v5074_v5 = vpack.c.bf16 %v232_v61, %v231_v58 }
  0xf4   : > { %v330_v45 = vpop.f32.mrb[2].mxu0  ;;  %v441_v46 = vpop.f32.mrb[2].mxu1  ;;  %5066 = vmatpush3.bf16.msra.mxu0 %v5065_v41 }
  0xf5   : > { %v4524_v48 = vpop.f32.mrb[3].mxu1  ;;  %929 = vrot.lane.b32.xlu0 %v436_v40, %s5510_s30  ;;  %v4499_v49 = vpop.f32.mrb[3].mxu0  ;;  %5067 = vmatprep.subr.bf16.mxu0 %v5506_v0 }
  0xf8   : > { %v335_v52 = vpop.f32.mrb[4].mxu0  ;;  %v446_v53 = vpop.f32.mrb[4].mxu1 }
  0xf9   : > { %v4527_v55 = vpop.f32.mrb[5].mxu1  ;;  %911 = vrot.lane.b32.xlu0 %v330_v45, %s5509_s25  ;;  %v4502_v56 = vpop.f32.mrb[5].mxu0  ;;  %v228_v45 = vld [vmem:[%s7216_s2 + $0x48] sm:$0xff] }
  0xfa   : > { %v5068_v48 = vpack.c.bf16 %v228_v45, %v227_v44 }
  0xfc   : > { %v340_v59 = vpop.f32.mrb[6].mxu0  ;;  %v451_v60 = vpop.f32.mrb[6].mxu1  ;;  %5069 = vmatpush3.bf16.msra.mxu0 %v5068_v48 }
  0xfd   : > { %v4530_v62 = vpop.f32.mrb[7].mxu1  ;;  %931 = vrot.lane.b32.xlu0 %v441_v46, %s5510_s30  ;;  %v4505_v63 = vpop.f32.mrb[7].mxu0  ;;  %5070 = vmatprep.subr.bf16.mxu0 %v5506_v0 }
 0x100   : > { %v345_v39 = vpop.f32.mrb[8].mxu0  ;;  %v456_v40 = vpop.f32.mrb[8].mxu1 }
 0x101   : > { %937 = vrot.lane.b32.xlu1 %v456_v40, %s5510_s30  ;;  %v4533_v42 = vpop.f32.mrb[9].mxu1  ;;  %913 = vrot.lane.b32.xlu0 %v335_v52, %s5509_s25  ;;  %v4508_v43 = vpop.f32.mrb[9].mxu0  ;;  %v230_v52 = vld [vmem:[%s7216_s2 + $0x58] sm:$0xff] }
 0x102   : > { %v5071_v56 = vpack.c.bf16 %v230_v52, %v229_v51 }
 0x104   : > { %v547_v46 = vpop.f32.mrb[10].mxu0  ;;  %v658_v47 = vpop.f32.mrb[10].mxu1  ;;  %5072 = vmatpush3.bf16.msra.mxu0 %v5071_v56 }
 0x105   : > { %933 = vrot.lane.b32.xlu0 %v446_v53, %s5510_s30  ;;  %949 = vrot.lane.b32.xlu1 %v547_v46, %s5511_s23  ;;  %v4546_v49 = vpop.f32.mrb[11].mxu0  ;;  %v4571_v50 = vpop.f32.mrb[11].mxu1 }
 0x106   : > { %5073 = vmatprep.subr.bf16.mxu0 %v5506_v0 }
 0x108   : > { %v552_v54 = vpop.f32.mrb[12].mxu0  ;;  %v663_v55 = vpop.f32.mrb[12].mxu1  ;;  %5075 = vmatpush3.bf16.msra.mxu0 %v5074_v5 }
 0x109   : > { %915 = vrot.lane.b32.xlu0 %v340_v59, %s5509_s25  ;;  %969 = vrot.lane.b32.xlu1 %v658_v47, %s5512_s5  ;;  %v4549_v53 = vpop.f32.mrb[13].mxu0  ;;  %v4574_v57 = vpop.f32.mrb[13].mxu1 }
 0x10a   : > { %5088 = vmatprep.subr.bf16.mxu0 %v5506_v0 }
 0x10c   : > { %v557_v62 = vpop.f32.mrb[14].mxu0  ;;  %v668_v63 = vpop.f32.mrb[14].mxu1 }
 0x10d   : > { %935 = vrot.lane.b32.xlu0 %v451_v60, %s5510_s30  ;;  %971 = vrot.lane.b32.xlu1 %v663_v55, %s5512_s5  ;;  %v4552_v59 = vpop.f32.mrb[15].mxu0  ;;  %v4577_v7 = vpop.f32.mrb[15].mxu1 }
 0x110   : > { %v562_v40 = vpop.f32.mrb[16].mxu0  ;;  %v673_v41 = vpop.f32.mrb[16].mxu1 }
 0x111   : > { %917 = vrot.lane.b32.xlu0 %v345_v39, %s5509_s25  ;;  %973 = vrot.lane.b32.xlu1 %v668_v63, %s5512_s5  ;;  %v4555_v42 = vpop.f32.mrb[17].mxu0  ;;  %v4580_v43 = vpop.f32.mrb[17].mxu1 }
 0x114   : > { %v567_v44 = vpop.f32.mrb[18].mxu0  ;;  %v678_v45 = vpop.f32.mrb[18].mxu1 }
 0x115   : > { %975 = vrot.lane.b32.xlu1 %v673_v41, %s5512_s5  ;;  %951 = vrot.lane.b32.xlu0 %v552_v54, %s5511_s23  ;;  %v4558_v60 = vpop.f32.mrb[19].mxu0  ;;  %v4583_v46 = vpop.f32.mrb[19].mxu1 }
 0x118   : > { %v769_v47 = vpop.f32.mrb[20].mxu0  ;;  %v880_v48 = vpop.f32.mrb[20].mxu1 }
 0x119   : > { %953 = vrot.lane.b32.xlu0 %v557_v62, %s5511_s23  ;;  %989 = vrot.lane.b32.xlu1 %v769_v47, %s5513_s10  ;;  %v4596_v49 = vpop.f32.mrb[21].mxu0  ;;  %v4621_v39 = vpop.f32.mrb[21].mxu1 }
 0x11c   : > { %v774_v50 = vpop.f32.mrb[22].mxu0  ;;  %v885_v51 = vpop.f32.mrb[22].mxu1 }
 0x11d   : > { %955 = vrot.lane.b32.xlu0 %v562_v40, %s5511_s23  ;;  %1009 = vrot.lane.b32.xlu1 %v880_v48, %s5514_s11  ;;  %v4599_v52 = vpop.f32.mrb[23].mxu0  ;;  %v4624_v55 = vpop.f32.mrb[23].mxu1 }
 0x120   : > { %v779_v54 = vpop.f32.mrb[24].mxu0  ;;  %v890_v56 = vpop.f32.mrb[24].mxu1 }
 0x121   : > { %991 = vrot.lane.b32.xlu1 %v774_v50, %s5513_s10  ;;  %v4602_v53 = vpop.f32.mrb[25].mxu0  ;;  %v4627_v57 = vpop.f32.mrb[25].mxu1 }
 0x124   : > { %v784_v58 = vpop.f32.mrb[26].mxu0  ;;  %v895_v61 = vpop.f32.mrb[26].mxu1 }
 0x125   : > { %1011 = vrot.lane.b32.xlu1 %v885_v51, %s5514_s11  ;;  %995 = vrot.lane.b32.xlu0 %v784_v58, %s5513_s10  ;;  %v4605_v62 = vpop.f32.mrb[27].mxu0  ;;  %v4630_v63 = vpop.f32.mrb[27].mxu1 }
 0x128   : > { %v789_v5 = vpop.f32.mrb[28].mxu0  ;;  %v900_v59 = vpop.f32.mrb[28].mxu1 }
 0x129   : > { %993 = vrot.lane.b32.xlu1 %v779_v54, %s5513_s10  ;;  %957 = vrot.lane.b32.xlu0 %v567_v44, %s5511_s23  ;;  %v4608_v7 = vpop.f32.mrb[29].mxu0  ;;  %v4633_v40 = vpop.f32.mrb[29].mxu1 }
 0x12d   : > { %1013 = vrot.lane.b32.xlu1 %v890_v56, %s5514_s11  ;;  %997 = vrot.lane.b32.xlu0 %v789_v5, %s5513_s10 }
 0x131   : > { %1015 = vrot.lane.b32.xlu1 %v895_v61, %s5514_s11 }
 0x135   : > { %977 = vrot.lane.b32.xlu1 %v678_v45, %s5512_s5 }
 0x139   : > { %1017 = vrot.lane.b32.xlu1 %v900_v59, %s5514_s11 }
 0x163   : > { %v910_v41 = vpop.permute.xlu0 %909 }
 0x164   : > { %v1025_v45 = vsel %vm1024_vm3, %v5577_v2, %v910_v41 }
 0x167   : > { %v930_v42 = vpop.permute.xlu0 %929 }
 0x168   : > { %v1031_v53 = vsel %vm1030_vm4, %v1025_v45, %v930_v42 }
 0x16b   : > { %v912_v43 = vpop.permute.xlu0 %911 }
 0x16c   : > { %v1026_v2 = vsel %vm1024_vm3, %v5579_v3, %v912_v43 }
 0x16f   : > { %v932_v60 = vpop.permute.xlu0 %931 }
 0x170   : > { %v1032_v59 = vsel %vm1030_vm4, %v1026_v2, %v932_v60 }
 0x173   : > { %v5927_v46 = vpop.permute.xlu1 %937  ;;  %v914_v47 = vpop.permute.xlu0 %913 }
 0x174   : > { %v1027_v3 = vsel %vm1024_vm3, %v5581_v4, %v914_v47 }
 0x177   : > { %v934_v48 = vpop.permute.xlu0 %933  ;;  %v950_v44 = vpop.permute.xlu1 %949 }
 0x178   : > { %v1037_v57 = vsel %vm1036_vm5, %v1031_v53, %v950_v44  ;;  %v1033_v43 = vsel %vm1030_vm4, %v1027_v3, %v934_v48 }
 0x17b   : > { %v970_v49 = vpop.permute.xlu1 %969  ;;  %v916_v39 = vpop.permute.xlu0 %915 }
 0x17c   : > { %v1043_v58 = vsel %vm1042_vm6, %v1037_v57, %v970_v49 }
 0x17f   : > { %v972_v50 = vpop.permute.xlu1 %971  ;;  %v936_v51 = vpop.permute.xlu0 %935 }
 0x183   : > { %v974_v52 = vpop.permute.xlu1 %973  ;;  %v918_v54 = vpop.permute.xlu0 %917 }
 0x187   : > { %v976_v55 = vpop.permute.xlu1 %975  ;;  %v952_v61 = vpop.permute.xlu0 %951 }
 0x188   : > { %v1038_v7 = vsel %vm1036_vm5, %v1032_v59, %v952_v61 }
 0x189   : > { %v1044_v42 = vsel %vm1042_vm6, %v1038_v7, %v972_v50  ;;  %v1028_v50 = vsel %vm1024_vm3, %v5587_v6, %v916_v39  ;;  %v1029_v6 = vsel %vm1024_vm3, %v5607_v8, %v918_v54 }
 0x18a   : > { %v1034_v57 = vsel %vm1030_vm4, %v1028_v50, %v936_v51  ;;  %v1035_v2 = vsel %vm1030_vm4, %v1029_v6, %v5927_v46 }
 0x18b   : > { %v990_v56 = vpop.permute.xlu1 %989  ;;  %v954_v41 = vpop.permute.xlu0 %953 }
 0x18c   : > { %v1049_v62 = vsel %vm1048_vm7, %v1043_v58, %v990_v56  ;;  %v1039_v56 = vsel %vm1036_vm5, %v1033_v43, %v954_v41 }
 0x18d   : > { %v1045_v61 = vsel %vm1042_vm6, %v1039_v56, %v974_v52 }
 0x18f   : > { %v1010_v63 = vpop.permute.xlu1 %1009  ;;  %v956_v60 = vpop.permute.xlu0 %955 }
 0x190   : > { %v1055_v5 = vsel %vm1054_vm8, %v1049_v62, %v1010_v63  ;;  %v1040_v4 = vsel %vm1036_vm5, %v1034_v57, %v956_v60 }
 0x191   : > { %4663 = vmatmul.mubr.msk.f32.vlgmr.msra.gmra.mrb[30].mxu0 %vm1064_vm9, %v1055_v5  ;;  %v1046_v63 = vsel %vm1042_vm6, %v1040_v4, %v976_v55 }
 0x192   : > { %4665 = vmatprep.mubr.msk.f32.mxu0 %vm5507_vm0, %v5508_v1 }
 0x193   : > { %v992_v40 = vpop.permute.xlu1 %991 }
 0x194   : > { %v1050_v44 = vsel %vm1048_vm7, %v1044_v42, %v992_v40 }
 0x197   : > { %v1012_v49 = vpop.permute.xlu1 %1011  ;;  %v996_v58 = vpop.permute.xlu0 %995 }
 0x198   : > { %v1056_v45 = vsel %vm1054_vm8, %v1050_v44, %v1012_v49  ;;  %v1052_v39 = vsel %vm1048_vm7, %v1046_v63, %v996_v58  ;;  %v4034_v44 = vld [vmem:[%s7216_s2 + $0x70] ss:$0 sm:$0xff] }
 0x199   : > { %4666 = vmatmul.mubr.msk.f32.gmra.mrb[32].mxu0 %vm1064_vm9, %v1056_v45 }
 0x19a   : > { %4668 = vmatprep.mubr.msk.f32.mxu0 %vm5507_vm0, %v5508_v1 }
 0x19b   : > { %v994_v53 = vpop.permute.xlu1 %993  ;;  %v958_v52 = vpop.permute.xlu0 %957 }
 0x19c   : > { %v1051_v47 = vsel %vm1048_vm7, %v1045_v61, %v994_v53  ;;  %v1041_v55 = vsel %vm1036_vm5, %v1035_v2, %v958_v52  ;;  %v1182_v2 = vld [vmem:[%s7216_s2 + $0xb0] sm:$0xff] }
 0x19f   : > { %v1014_v48 = vpop.permute.xlu1 %1013  ;;  %v998_v8 = vpop.permute.xlu0 %997 }
 0x1a0   : > { %v1057_v62 = vsel %vm1054_vm8, %v1051_v47, %v1014_v48 }
 0x1a1   : > { %4669 = vmatmul.mubr.msk.f32.gmra.mrb[34].mxu0 %vm1064_vm9, %v1057_v62 }
 0x1a2   : > { %4671 = vmatprep.mubr.msk.f32.mxu0 %vm5507_vm0, %v5508_v1 }
 0x1a3   : > { %v1016_v51 = vpop.permute.xlu1 %1015 }
 0x1a4   : > { %v1058_v5 = vsel %vm1054_vm8, %v1052_v39, %v1016_v51 }
 0x1a5   : > { %4672 = vmatmul.mubr.msk.f32.gmra.mrb[36].mxu0 %vm1064_vm9, %v1058_v5  ;;  %v1181_v5 = vld [vmem:[%s7216_s2 + $0xa8] sm:$0xff] }
 0x1a6   : > { %4674 = vmatprep.mubr.msk.f32.mxu0 %vm5507_vm0, %v5508_v1 }
 0x1a7   : > { %v978_v59 = vpop.permute.xlu1 %977 }
 0x1a8   : > { %v1047_v7 = vsel %vm1042_vm6, %v1041_v55, %v978_v59  ;;  %v1199_v55 = vld [vmem:[%s7216_s2 + $0x138] sm:$0xff]  ;;  %v1200_v59 = vld [vmem:[%s7216_s2 + $0x140] sm:$0xff] }
 0x1a9   : > { %v1053_v54 = vsel %vm1048_vm7, %v1047_v7, %v998_v8  ;;  %v1213_v7 = vld [vmem:[%s7216_s2 + $0x1a8] sm:$0xff]  ;;  %v1214_v8 = vld [vmem:[%s7216_s2 + $0x1b0] sm:$0xff] }
 0x1ab   : > { %v1018_v40 = vpop.permute.xlu1 %1017 }
 0x1ac   : > { %v1059_v41 = vsel %vm1054_vm8, %v1053_v54, %v1018_v40  ;;  %v5126_v54 = vpack.c.bf16 %v1182_v2, %v1181_v5  ;;  %v5128_v40 = vpack.c.bf16 %v1200_v59, %v1199_v55 }
 0x1ad   : > { %4675 = vmatmul.mubr.msk.f32.gmra.mrb[38].mxu0 %vm1064_vm9, %v1059_v41  ;;  %v5154_v41 = vpack.c.bf16 %v1214_v8, %v1213_v7 }
 0x1ae   : > { %4737 = vmatprep.mubr.msk.f32.mxu0 %vm5507_vm0, %v5508_v1 }
 0x264   : > { %v1146_v46 = vpop.f32.mrb[30].mxu0 }
 0x265   : > { %v4664_v42 = vpop.f32.mrb[31].mxu0  ;;  %v5983_v49 = vadd.f32 %v4034_v44, %v1146_v46  ;;  %v1183_v46 = vld [vmem:[%s7216_s2 + $0xb8] sm:$0xff] }
 0x266   : > { %v1184_v42 = vld [vmem:[%s7216_s2 + $0xc0] sm:$0xff] }
 0x267   : > { %v1170_v60 = vmax.f32 %v5983_v49, 0.0 }
 0x26c   : > { %v1151_v45 = vpop.f32.mrb[32].mxu0 }
 0x26d   : > { %v5985_v3 = vadd.f32 %v4034_v44, %v1151_v45  ;;  %v4667_v43 = vpop.f32.mrb[33].mxu0  ;;  %v1202_v45 = vld [vmem:[%s7216_s2 + $0x150] sm:$0xff] }
 0x26e   : > { %v1215_v43 = vld [vmem:[%s7216_s2 + $0x1b8] sm:$0xff] }
 0x26f   : > { %v1171_v56 = vmax.f32 %v5985_v3, 0.0 }
 0x271   : > { %v5993_v53 = vpack.c.bf16 %v1171_v56, %v1170_v60 }
 0x273   : > { %5078 = vmatpush3.bf16.msra.mxu1 %v5993_v53  ;;  %5090 = vmatpush3.bf16.msra.mxu0 %v5993_v53 }
 0x274   : > { %v1156_v50 = vpop.f32.mrb[34].mxu0  ;;  %5079 = vmatprep.subr.bf16.mxu1 %v5506_v0  ;;  %5091 = vmatprep.subr.bf16.mxu0 %v5506_v0 }
 0x275   : > { %v4670_v57 = vpop.f32.mrb[35].mxu0  ;;  %v5999_v58 = vadd.f32 %v4034_v44, %v1156_v50  ;;  %v5130_v50 = vpack.c.bf16 %v1184_v42, %v1183_v46  ;;  %v1229_v46 = vld [vmem:[%s7216_s2 + $0x228] sm:$0xff]  ;;  %v1230_v42 = vld [vmem:[%s7216_s2 + $0x230] sm:$0xff] }
 0x277   : > { %v1172_v48 = vmax.f32 %v5999_v58, 0.0 }
 0x278   : > { %v1161_v61 = vpop.f32.mrb[36].mxu0 }
 0x279   : > { %v6001_v4 = vadd.f32 %v4034_v44, %v1161_v61  ;;  %v4673_v47 = vpop.f32.mrb[37].mxu0 }
 0x27a   : > { %v1185_v47 = vld [vmem:[%s7216_s2 + $0xc8] sm:$0xff] }
 0x27b   : > { %v1173_v62 = vmax.f32 %v6001_v4, 0.0 }
 0x27d   : > { %v6009_v63 = vpack.c.bf16 %v1173_v62, %v1172_v48 }
 0x27f   : > { %5081 = vmatpush3.bf16.msra.mxu1 %v6009_v63  ;;  %5093 = vmatpush3.bf16.msra.mxu0 %v6009_v63 }
 0x280   : > { %v1166_v6 = vpop.f32.mrb[38].mxu0  ;;  %4685 = vmatprep.subr.mxu1 %v5508_v1  ;;  %4735 = vmatprep.subr.mxu0 %v5508_v1 }
 0x281   : > { %v1167_v39 = vadd.f32 %v4034_v44, %v1166_v6  ;;  %v4676_v51 = vpop.f32.mrb[39].mxu0  ;;  %v1201_v44 = vld [vmem:[%s7216_s2 + $0x148] sm:$0xff]  ;;  %v1203_v6 = vld [vmem:[%s7216_s2 + $0x158] sm:$0xff] }
 0x282   : > { %v5132_v57 = vpack.c.bf16 %v1202_v45, %v1201_v44  ;;  %v1217_v51 = vld [vmem:[%s7216_s2 + $0x1c8] sm:$0xff] }
 0x283   : > { %v6015_v52 = vmax.f32 %v1167_v39, 0.0  ;;  %v1204_v39 = vld [vmem:[%s7216_s2 + $0x160] sm:$0xff] }
 0x285   : > { %4686 = vmatpush3.msk.msra.mxu1 %vm255_vm1, %v6015_v52  ;;  %4736 = vmatpush3.msk.msra.mxu0 %vm255_vm1, %v6015_v52 }
 0x286   : > { %4688 = vmatmul.mubr.msk.f32.vlgmr.msra.gmra.mrb[30].mxu1 %vm239_vm2, %v5610_v9  ;;  %5082 = vmatprep.subr.bf16.mxu1 %v5506_v0  ;;  %v1191_v9 = vld [vmem:[%s7216_s2 + $0xf8] sm:$0xff] }
 0x287   : > { %4738 = vmatmul.mubr.msk.f32.vlgmr.msra.gmra.mrb[40].mxu0 %vm239_vm2, %v5698_v19  ;;  %5100 = vmatprep.subr.bf16.mxu0 %v5506_v0  ;;  %v1208_v19 = vld [vmem:[%s7216_s2 + $0x180] sm:$0xff] }
 0x288   : > { %5084 = vmatpush3.bf16.msra.mxu1 %v5993_v53  ;;  %5102 = vmatpush3.bf16.msra.mxu0 %v5993_v53 }
 0x289   : > { %4690 = vmatprep.mubr.msk.f32.mxu1 %vm5507_vm0, %v5508_v1  ;;  %4740 = vmatprep.mubr.msk.f32.mxu0 %vm5507_vm0, %v5508_v1 }
 0x28a   : > { %4691 = vmatmul.mubr.msk.f32.gmra.mrb[32].mxu1 %vm239_vm2, %v5628_v11  ;;  %5085 = vmatprep.subr.bf16.mxu1 %v5506_v0  ;;  %v1175_v11 = vld [vmem:[%s7216_s2 + $0x78] sm:$0xff] }
 0x28b   : > { %4741 = vmatmul.mubr.msk.f32.gmra.mrb[42].mxu0 %vm239_vm2, %v5712_v21  ;;  %5103 = vmatprep.subr.bf16.mxu0 %v5506_v0 }
 0x28c   : > { %5087 = vmatpush3.bf16.msra.mxu1 %v6009_v63  ;;  %5105 = vmatpush3.bf16.msra.mxu0 %v6009_v63 }
 0x28d   : > { %4693 = vmatprep.mubr.msk.f32.mxu1 %vm5507_vm0, %v5508_v1  ;;  %4743 = vmatprep.mubr.msk.f32.mxu0 %vm5507_vm0, %v5508_v1 }
 0x28e   : > { %4694 = vmatmul.mubr.msk.f32.gmra.mrb[34].mxu1 %vm239_vm2, %v5646_v13  ;;  %4710 = vmatprep.subr.mxu1 %v5508_v1  ;;  %v1176_v13 = vld [vmem:[%s7216_s2 + $0x80] sm:$0xff] }
 0x28f   : > { %4744 = vmatmul.mubr.msk.f32.gmra.mrb[44].mxu0 %vm239_vm2, %v5730_v23  ;;  %4785 = vmatprep.subr.mxu0 %v5508_v1  ;;  %v1195_v23 = vld [vmem:[%s7216_s2 + $0x118] sm:$0xff] }
 0x290   : > { %4711 = vmatpush3.msk.msra.mxu1 %vm255_vm1, %v6015_v52  ;;  %4786 = vmatpush3.msk.msra.mxu0 %vm255_vm1, %v6015_v52 }
 0x291   : > { %4696 = vmatprep.mubr.msk.f32.mxu1 %vm5507_vm0, %v5508_v1  ;;  %4746 = vmatprep.mubr.msk.f32.mxu0 %vm5507_vm0, %v5508_v1 }
 0x292   : > { %4697 = vmatmul.mubr.msk.f32.gmra.mrb[36].mxu1 %vm239_vm2, %v5664_v15  ;;  %5094 = vmatprep.subr.bf16.mxu1 %v5506_v0  ;;  %v1194_v15 = vld [vmem:[%s7216_s2 + $0x110] sm:$0xff] }
 0x293   : > { %4747 = vmatmul.mubr.msk.f32.gmra.mrb[46].mxu0 %vm239_vm2, %v5748_v25  ;;  %4699 = vmatprep.mubr.msk.f32.mxu1 %vm5507_vm0, %v5508_v1 }
 0x294   : > { %4749 = vmatprep.mubr.msk.f32.mxu0 %vm5507_vm0, %v5508_v1 }
 0x296   : > { %4700 = vmatmul.mubr.msk.f32.gmra.mrb[38].mxu1 %vm239_vm2, %v5684_v17 }
 0x297   : > { %4750 = vmatmul.mubr.msk.f32.gmra.mrb[48].mxu0 %vm239_vm2, %v5768_v27  ;;  %4712 = vmatprep.mubr.msk.f32.mxu1 %vm5507_vm0, %v5508_v1  ;;  %v1210_v27 = vld [vmem:[%s7216_s2 + $0x190] sm:$0xff] }
 0x298   : > { %4787 = vmatprep.mubr.msk.f32.mxu0 %vm5507_vm0, %v5508_v1 }
 0x29a   : > { %4713 = vmatmul.mubr.msk.f32.vlgmr.msra.gmra.mrb[40].mxu1 %vm239_vm2, %v5613_v10  ;;  %v1192_v10 = vld [vmem:[%s7216_s2 + $0x100] sm:$0xff] }
 0x29b   : > { %5096 = vmatpush3.bf16.msra.mxu1 %v5993_v53  ;;  %4788 = vmatmul.mubr.msk.f32.vlgmr.msra.gmra.mrb[50].mxu0 %vm239_vm2, %v5782_v29 }
 0x29c   : > { %4715 = vmatprep.mubr.msk.f32.mxu1 %vm5507_vm0, %v5508_v1  ;;  %5097 = vmatprep.subr.bf16.mxu1 %v5506_v0 }
 0x29d   : > { %4790 = vmatprep.mubr.msk.f32.mxu0 %vm5507_vm0, %v5508_v1 }
 0x29e   : > { %4716 = vmatmul.mubr.msk.f32.gmra.mrb[42].mxu1 %vm239_vm2, %v5631_v12  ;;  %v5112_v12 = vpack.c.bf16 %v1192_v10, %v1191_v9  ;;  %v1218_v9 = vld [vmem:[%s7216_s2 + $0x1d0] sm:$0xff] }
 0x29f   : > { %5099 = vmatpush3.bf16.msra.mxu1 %v6009_v63  ;;  %4791 = vmatmul.mubr.msk.f32.gmra.mrb[52].mxu0 %vm239_vm2, %v5796_v31  ;;  %v1180_v31 = vld [vmem:[%s7216_s2 + $0xa0] sm:$0xff] }
 0x2a0   : > { %4718 = vmatprep.mubr.msk.f32.mxu1 %vm5507_vm0, %v5508_v1  ;;  %4760 = vmatprep.subr.mxu1 %v5508_v1 }
 0x2a1   : > { %4793 = vmatprep.mubr.msk.f32.mxu0 %vm5507_vm0, %v5508_v1  ;;  %5113 = vmatprep.subr.bf16.mxu0 %v5112_v12  ;;  %v5160_v12 = vpack.c.bf16 %v1218_v9, %v1217_v51 }
 0x2a2   : > { %4719 = vmatmul.mubr.msk.f32.gmra.mrb[44].mxu1 %vm239_vm2, %v5649_v14  ;;  %v1193_v14 = vld [vmem:[%s7216_s2 + $0x108] sm:$0xff] }
 0x2a3   : > { %4761 = vmatpush3.msk.msra.mxu1 %vm255_vm1, %v6015_v52  ;;  %4794 = vmatmul.mubr.msk.f32.gmra.mrb[54].mxu0 %vm239_vm2, %v5810_v33  ;;  %v5116_v17 = vpack.c.bf16 %v1194_v15, %v1193_v14  ;;  %v1198_v33 = vld [vmem:[%s7216_s2 + $0x130] sm:$0xff]  ;;  %v1188_v14 = vld [vmem:[%s7216_s2 + $0xe0] sm:$0xff] }
 0x2a4   : > { %4721 = vmatprep.mubr.msk.f32.mxu1 %vm5507_vm0, %v5508_v1  ;;  %4796 = vmatprep.mubr.msk.f32.mxu0 %vm5507_vm0, %v5508_v1 }
 0x2a5   : > { %5106 = vmatprep.subr.bf16.mxu1 %v5506_v0 }
 0x2a6   : > { %4722 = vmatmul.mubr.msk.f32.gmra.mrb[46].mxu1 %vm239_vm2, %v5667_v16  ;;  %v5114_v16 = vpack.c.bf16 %v1176_v13, %v1175_v11  ;;  %v5136_v11 = vpack.c.bf16 %v1204_v39, %v1203_v6  ;;  %v1187_v13 = vld [vmem:[%s7216_s2 + $0xd8] sm:$0xff] }
 0x2a7   : > { %4797 = vmatmul.mubr.msk.f32.gmra.mrb[56].mxu0 %vm239_vm2, %v5824_v35  ;;  %4724 = vmatprep.mubr.msk.f32.mxu1 %vm5507_vm0, %v5508_v1  ;;  %v1212_v35 = vld [vmem:[%s7216_s2 + $0x1a0] sm:$0xff]  ;;  %v5138_v15 = vpack.c.bf16 %v1188_v14, %v1187_v13 }
 0x2a8   : > { %4799 = vmatprep.mubr.msk.f32.mxu0 %vm5507_vm0, %v5508_v1  ;;  %5115 = vmatpush3.bf16.msra.mxu0 %v5114_v16  ;;  %v1205_v16 = vld [vmem:[%s7216_s2 + $0x168] sm:$0xff] }
 0x2a9   : > { %5117 = vmatprep.subr.bf16.mxu0 %v5116_v17  ;;  %v1206_v17 = vld [vmem:[%s7216_s2 + $0x170] sm:$0xff] }
 0x2aa   : > { %4725 = vmatmul.mubr.msk.f32.gmra.mrb[48].mxu1 %vm239_vm2, %v5687_v18  ;;  %v1207_v18 = vld [vmem:[%s7216_s2 + $0x178] sm:$0xff] }
 0x2ab   : > { %4800 = vmatmul.mubr.msk.f32.gmra.mrb[58].mxu0 %vm239_vm2, %v5838_v37  ;;  %4762 = vmatprep.mubr.msk.f32.mxu1 %vm5507_vm0, %v5508_v1  ;;  %v5145_v21 = vpack.c.bf16 %v1208_v19, %v1207_v18  ;;  %v1219_v18 = vld [vmem:[%s7216_s2 + $0x1d8] sm:$0xff]  ;;  %v5140_v19 = vpack.c.bf16 %v1206_v17, %v1205_v16 }
 0x2ae   : > { %4763 = vmatmul.mubr.msk.f32.vlgmr.msra.gmra.mrb[50].mxu1 %vm239_vm2, %v5703_v20  ;;  %v1177_v20 = vld [vmem:[%s7216_s2 + $0x88] sm:$0xff] }
 0x2af   : > { %5108 = vmatpush3.bf16.msra.mxu1 %v5993_v53  ;;  %4765 = vmatprep.mubr.msk.f32.mxu1 %vm5507_vm0, %v5508_v1  ;;  %v1216_v53 = vld [vmem:[%s7216_s2 + $0x1c0] sm:$0xff] }
 0x2b0   : > { %5109 = vmatprep.subr.bf16.mxu1 %v5506_v0  ;;  %v5157_v61 = vpack.c.bf16 %v1216_v53, %v1215_v43  ;;  %v5178_v43 = vpack.c.bf16 %v1230_v42, %v1229_v46 }
 0x2b2   : > { %4766 = vmatmul.mubr.msk.f32.gmra.mrb[52].mxu1 %vm239_vm2, %v5717_v22  ;;  %v1178_v22 = vld [vmem:[%s7216_s2 + $0x90] sm:$0xff] }
 0x2b3   : > { %5111 = vmatpush3.bf16.msra.mxu1 %v6009_v63  ;;  %4768 = vmatprep.mubr.msk.f32.mxu1 %vm5507_vm0, %v5508_v1  ;;  %v5118_v25 = vpack.c.bf16 %v1178_v22, %v1177_v20  ;;  %v1186_v63 = vld [vmem:[%s7216_s2 + $0xd0] sm:$0xff]  ;;  %v1220_v20 = vld [vmem:[%s7216_s2 + $0x1e0] sm:$0xff] }
 0x2b4   : > { %4810 = vmatprep.subr.mxu1 %v5508_v1  ;;  %v5134_v10 = vpack.c.bf16 %v1186_v63, %v1185_v47  ;;  %v1190_v22 = vld [vmem:[%s7216_s2 + $0xf0] sm:$0xff] }
 0x2b5   : > { %5119 = vmatpush3.bf16.msra.mxu0 %v5118_v25  ;;  %v1221_v25 = vld [vmem:[%s7216_s2 + $0x1e8] sm:$0xff] }
 0x2b6   : > { %4769 = vmatmul.mubr.msk.f32.gmra.mrb[54].mxu1 %vm239_vm2, %v5735_v24  ;;  %v1196_v24 = vld [vmem:[%s7216_s2 + $0x120] sm:$0xff] }
 0x2b7   : > { %4811 = vmatpush3.msk.msra.mxu1 %vm255_vm1, %v6015_v52  ;;  %4771 = vmatprep.mubr.msk.f32.mxu1 %vm5507_vm0, %v5508_v1 }
 0x2b8   : > { %5144 = vmatprep.subr.bf16.mxu1 %v5506_v0 }
 0x2ba   : > { %4772 = vmatmul.mubr.msk.f32.gmra.mrb[56].mxu1 %vm239_vm2, %v5753_v26  ;;  %v1209_v26 = vld [vmem:[%s7216_s2 + $0x188] sm:$0xff] }
 0x2bb   : > { %4774 = vmatprep.mubr.msk.f32.mxu1 %vm5507_vm0, %v5508_v1  ;;  %v5148_v29 = vpack.c.bf16 %v1210_v27, %v1209_v26  ;;  %v1222_v26 = vld [vmem:[%s7216_s2 + $0x1f0] sm:$0xff] }
 0x2bc   : > { %v5166_v27 = vpack.c.bf16 %v1222_v26, %v1221_v25 }
 0x2be   : > { %4775 = vmatmul.mubr.msk.f32.gmra.mrb[58].mxu1 %vm239_vm2, %v5773_v28  ;;  %v5120_v28 = vpack.c.bf16 %v1196_v24, %v1195_v23  ;;  %v5163_v23 = vpack.c.bf16 %v1220_v20, %v1219_v18 }
 0x2bf   : > { %4812 = vmatprep.mubr.msk.f32.mxu1 %vm5507_vm0, %v5508_v1 }
 0x2c0   : > { %5121 = vmatprep.subr.bf16.mxu0 %v5120_v28  ;;  %v1223_v28 = vld [vmem:[%s7216_s2 + $0x1f8] sm:$0xff] }
 0x2c2   : > { %4813 = vmatmul.mubr.msk.f32.vlgmr.msra.gmra.mrb[60].mxu1 %vm239_vm2, %v5787_v30  ;;  %v1179_v30 = vld [vmem:[%s7216_s2 + $0x98] sm:$0xff] }
 0x2c3   : > { %4815 = vmatprep.mubr.msk.f32.mxu1 %vm5507_vm0, %v5508_v1  ;;  %5146 = vmatpush1.bf16.msra.mxu1 %v5145_v21  ;;  %v1189_v21 = vld [vmem:[%s7216_s2 + $0xe8] sm:$0xff] }
 0x2c4   : > { %5147 = vmatprep.subr.bf16.mxu1 %v5506_v0  ;;  %v5142_v24 = vpack.c.bf16 %v1190_v22, %v1189_v21 }
 0x2c6   : > { %4816 = vmatmul.mubr.msk.f32.gmra.mrb[62].mxu1 %vm239_vm2, %v5801_v32  ;;  %v1197_v32 = vld [vmem:[%s7216_s2 + $0x128] sm:$0xff] }
 0x2c7   : > { %4818 = vmatprep.mubr.msk.f32.mxu1 %vm5507_vm0, %v5508_v1  ;;  %5149 = vmatpush1.bf16.msra.mxu1 %v5148_v29  ;;  %v5124_v37 = vpack.c.bf16 %v1198_v33, %v1197_v32  ;;  %v1224_v29 = vld [vmem:[%s7216_s2 + $0x200] sm:$0xff]  ;;  %v1226_v32 = vld [vmem:[%s7216_s2 + $0x210] sm:$0xff] }
 0x2c8   : > { %5150 = vmatprep.subr.bf16.mxu1 %v5506_v0 }
 0x2ca   : > { %4819 = vmatmul.mubr.msk.f32.gmra.mrb[64].mxu1 %vm239_vm2, %v5815_v34  ;;  %v1211_v34 = vld [vmem:[%s7216_s2 + $0x198] sm:$0xff] }
 0x2cb   : > { %4821 = vmatprep.mubr.msk.f32.mxu1 %vm5507_vm0, %v5508_v1 }
 0x2ce   : > { %4822 = vmatmul.mubr.msk.f32.gmra.mrb[66].mxu1 %vm239_vm2, %v5829_v36  ;;  %v5122_v36 = vpack.c.bf16 %v1180_v31, %v1179_v30  ;;  %v5169_v30 = vpack.c.bf16 %v1224_v29, %v1223_v28  ;;  %v1225_v31 = vld [vmem:[%s7216_s2 + $0x208] sm:$0xff] }
 0x2cf   : > { %4824 = vmatprep.mubr.msk.f32.mxu1 %vm5507_vm0, %v5508_v1 }
 0x2d0   : > { %5123 = vmatpush3.bf16.msra.mxu0 %v5122_v36 }
 0x2d1   : > { %5125 = vmatprep.subr.bf16.mxu0 %v5124_v37  ;;  %v1227_v37 = vld [vmem:[%s7216_s2 + $0x218] sm:$0xff] }
 0x2d2   : > { %4825 = vmatmul.mubr.msk.f32.gmra.mrb[68].mxu1 %vm239_vm2, %v5843_v38  ;;  %v5151_v38 = vpack.c.bf16 %v1212_v35, %v1211_v34  ;;  %v5172_v34 = vpack.c.bf16 %v1226_v32, %v1225_v31 }
 0x2d4   : > { %5152 = vmatpush1.bf16.msra.mxu1 %v5151_v38  ;;  %5127 = vmatpush3.bf16.msra.mxu0 %v5126_v54  ;;  %v1228_v38 = vld [vmem:[%s7216_s2 + $0x220] sm:$0xff] }
 0x2d5   : > { %5153 = vmatprep.subr.bf16.mxu1 %v5506_v0  ;;  %5129 = vmatprep.subr.bf16.mxu0 %v5128_v40  ;;  %v5175_v59 = vpack.c.bf16 %v1228_v38, %v1227_v37 }
 0x2d8   : > { %5155 = vmatpush1.bf16.msra.mxu1 %v5154_v41  ;;  %5131 = vmatpush3.bf16.msra.mxu0 %v5130_v50 }
 0x2d9   : > { %5156 = vmatprep.subr.bf16.mxu1 %v5506_v0  ;;  %5133 = vmatprep.subr.bf16.mxu0 %v5132_v57 }
 0x2dc   : > { %5158 = vmatpush1.bf16.msra.mxu1 %v5157_v61  ;;  %5135 = vmatpush3.bf16.msra.mxu0 %v5134_v10 }
 0x2dd   : > { %5159 = vmatprep.subr.bf16.mxu1 %v5506_v0  ;;  %5137 = vmatprep.subr.bf16.mxu0 %v5136_v11 }
 0x2e0   : > { %5161 = vmatpush1.bf16.msra.mxu1 %v5160_v12  ;;  %5139 = vmatpush3.bf16.msra.mxu0 %v5138_v15 }
 0x2e1   : > { %5162 = vmatprep.subr.bf16.mxu1 %v5506_v0  ;;  %5141 = vmatprep.subr.bf16.mxu0 %v5140_v19 }
 0x2e4   : > { %5164 = vmatpush1.bf16.msra.mxu1 %v5163_v23  ;;  %5143 = vmatpush3.bf16.msra.mxu0 %v5142_v24 }
 0x2e5   : > { %5165 = vmatprep.subr.bf16.mxu1 %v5506_v0  ;;  %5180 = vmatprep.subr.bf16.mxu0 %v5506_v0 }
 0x2e8   : > { %5167 = vmatpush1.bf16.msra.mxu1 %v5166_v27 }
 0x2e9   : > { %5168 = vmatprep.subr.bf16.mxu1 %v5506_v0 }
 0x2ec   : > { %5170 = vmatpush1.bf16.msra.mxu1 %v5169_v30 }
 0x2ed   : > { %5171 = vmatprep.subr.bf16.mxu1 %v5506_v0 }
 0x2f0   : > { %5173 = vmatpush1.bf16.msra.mxu1 %v5172_v34 }
 0x2f1   : > { %5174 = vmatprep.subr.bf16.mxu1 %v5506_v0 }
 0x2f4   : > { %5176 = vmatpush1.bf16.msra.mxu1 %v5175_v59 }
 0x2f5   : > { %5177 = vmatprep.subr.bf16.mxu1 %v5506_v0 }
 0x2f8   : > { %5179 = vmatpush1.bf16.msra.mxu1 %v5178_v43 }
 0x2f9   : > { %5192 = vmatprep.subr.bf16.mxu1 %v5506_v0 }
 0x359   : > { %v1301_v33 = vpop.f32.mrb[30].mxu1 }
 0x35a   : > { %v1481_v35 = vpop.f32.mrb[40].mxu0  ;;  %v4689_v36 = vpop.f32.mrb[31].mxu1 }
 0x35b   : > { %v5363_v5 = vpack.i.bf16 %v1301_v33, %v1481_v35  ;;  %v4739_v2 = vpop.f32.mrb[41].mxu0 }
 0x35d   : > { %5364 = vrot.lane.b32.xlu0 %v5363_v5, %s5512_s5  ;;  %v1306_v55 = vpop.f32.mrb[32].mxu1 }
 0x35e   : > { %v1486_v7 = vpop.f32.mrb[42].mxu0  ;;  %v4692_v8 = vpop.f32.mrb[33].mxu1 }
 0x35f   : > { %v5368_v54 = vpack.i.bf16 %v1306_v55, %v1486_v7  ;;  %v4742_v40 = vpop.f32.mrb[43].mxu0 }
 0x361   : > { %5369 = vrot.lane.b32.xlu1 %v5368_v54, %s5512_s5  ;;  %v1311_v41 = vpop.f32.mrb[34].mxu1 }
 0x362   : > { %v1491_v44 = vpop.f32.mrb[44].mxu0  ;;  %v4695_v45 = vpop.f32.mrb[35].mxu1 }
 0x363   : > { %v4745_v53 = vpop.f32.mrb[45].mxu0 }
 0x365   : > { %v1316_v50 = vpop.f32.mrb[36].mxu1 }
 0x366   : > { %v1496_v57 = vpop.f32.mrb[46].mxu0  ;;  %v4698_v61 = vpop.f32.mrb[37].mxu1 }
 0x367   : > { %v5383_v47 = vpack.i.bf16 %v1316_v50, %v1496_v57  ;;  %v4748_v63 = vpop.f32.mrb[47].mxu0 }
 0x369   : > { %v1321_v6 = vpop.f32.mrb[38].mxu1 }
 0x36a   : > { %v1501_v39 = vpop.f32.mrb[48].mxu0  ;;  %v4701_v51 = vpop.f32.mrb[39].mxu1 }
 0x36b   : > { %v4751_v9 = vpop.f32.mrb[49].mxu0 }
 0x36d   : > { %v1391_v10 = vpop.f32.mrb[40].mxu1 }
 0x36e   : > { %v1661_v11 = vpop.f32.mrb[50].mxu0  ;;  %v4714_v12 = vpop.f32.mrb[41].mxu1 }
 0x36f   : > { %v5373_v13 = vpack.i.bf16 %v1491_v44, %v1661_v11  ;;  %v4789_v14 = vpop.f32.mrb[51].mxu0 }
 0x371   : > { %5374 = vrot.lane.b32.xlu0 %v5373_v13, %s5512_s5  ;;  %v1396_v15 = vpop.f32.mrb[42].mxu1 }
 0x372   : > { %v1666_v16 = vpop.f32.mrb[52].mxu0  ;;  %v4717_v17 = vpop.f32.mrb[43].mxu1 }
 0x373   : > { %v5378_v18 = vpack.i.bf16 %v1666_v16, %v1311_v41  ;;  %v4792_v19 = vpop.f32.mrb[53].mxu0 }
 0x375   : > { %5384 = vrot.lane.b32.xlu0 %v5383_v47, %s5512_s5  ;;  %5379 = vrot.lane.b32.xlu1 %v5378_v18, %s5512_s5  ;;  %v1401_v20 = vpop.f32.mrb[44].mxu1 }
 0x376   : > { %v1671_v21 = vpop.f32.mrb[54].mxu0  ;;  %v4720_v22 = vpop.f32.mrb[45].mxu1 }
 0x377   : > { %v5388_v23 = vpack.i.bf16 %v1501_v39, %v1671_v21  ;;  %v4795_v24 = vpop.f32.mrb[55].mxu0 }
 0x379   : > { %5389 = vrot.lane.b32.xlu1 %v5388_v23, %s5512_s5  ;;  %v6353_v25 = vpop.f32.mrb[46].mxu1 }
 0x37a   : > { %v1676_v26 = vpop.f32.mrb[56].mxu0  ;;  %v4723_v27 = vpop.f32.mrb[47].mxu1 }
 0x37b   : > { %v5393_v28 = vpack.i.bf16 %v1321_v6, %v1676_v26  ;;  %v4798_v29 = vpop.f32.mrb[57].mxu0 }
 0x37d   : > { %5394 = vrot.lane.b32.xlu0 %v5393_v28, %s5512_s5  ;;  %v6356_v30 = vpop.f32.mrb[48].mxu1 }
 0x37e   : > { %v1681_v31 = vpop.f32.mrb[58].mxu0  ;;  %v4726_v32 = vpop.f32.mrb[49].mxu1 }
 0x37f   : > { %1828 = vrot.lane.b32.xlu1 %v1681_v31, %s5512_s5  ;;  %v4801_v33 = vpop.f32.mrb[59].mxu0 }
 0x381   : > { %v1571_v34 = vpop.f32.mrb[50].mxu1 }
 0x382   : > { %v4764_v35 = vpop.f32.mrb[51].mxu1 }
 0x383   : > { %v4076_v35 = vld [vmem:[%s7216_s2 + $0x238] ss:$0 sm:$0xff] }
 0x385   : > { %v1576_v36 = vpop.f32.mrb[52].mxu1 }
 0x386   : > { %v4767_v37 = vpop.f32.mrb[53].mxu1 }
 0x389   : > { %v1581_v38 = vpop.f32.mrb[54].mxu1 }
 0x38a   : > { %v4770_v5 = vpop.f32.mrb[55].mxu1 }
 0x38d   : > { %v6359_v2 = vpop.f32.mrb[56].mxu1 }
 0x38e   : > { %v4773_v55 = vpop.f32.mrb[57].mxu1 }
 0x391   : > { %v6361_v59 = vpop.f32.mrb[58].mxu1 }
 0x392   : > { %v4776_v7 = vpop.f32.mrb[59].mxu1 }
 0x395   : > { %v1751_v8 = vpop.f32.mrb[60].mxu1 }
 0x396   : > { %v4814_v54 = vpop.f32.mrb[61].mxu1  ;;  %4077 = vmatprep.mubr.msk.f32.mxu1 %vm1042_vm6, %v1751_v8 }
 0x399   : > { %v1756_v40 = vpop.f32.mrb[62].mxu1 }
 0x39a   : > { %v4817_v41 = vpop.f32.mrb[63].mxu1 }
 0x39d   : > { %v1761_v46 = vpop.f32.mrb[64].mxu1 }
 0x39e   : > { %v4820_v42 = vpop.f32.mrb[65].mxu1 }
 0x3a1   : > { %v1766_v44 = vpop.f32.mrb[66].mxu1 }
 0x3a2   : > { %v4823_v45 = vpop.f32.mrb[67].mxu1 }
 0x3a5   : > { %v1771_v43 = vpop.f32.mrb[68].mxu1 }
 0x3a6   : > { %v4826_v53 = vpop.f32.mrb[69].mxu1 }
 0x3cf   : > { %v5365_v50 = vpop.permute.xlu0 %5364 }
 0x3d0   : > { %v5367_v57 = vunpack.i.h.bf16 %v5365_v50  ;;  %v5366_v61 = vunpack.i.l.bf16 %v5365_v50 }
 0x3d2   : > { %v1840_v47 = vsel %vm1042_vm6, %v1391_v10, %v5366_v61  ;;  %v1835_v63 = vsel %vm1042_vm6, %v1170_v60, %v5367_v57 }
 0x3d3   : > { %1933 = vmatprep.mubr.f32.mxu0 %v1840_v47  ;;  %v5370_v6 = vpop.permute.xlu1 %5369 }
 0x3d4   : > { %v5372_v39 = vunpack.i.h.bf16 %v5370_v6  ;;  %v5371_v51 = vunpack.i.l.bf16 %v5370_v6  ;;  %1934 = vmatmul.mubr.f32.vlgmr.msra.gmra.mrb[60].mxu0 %v1835_v63 }
 0x3d6   : > { %v1841_v9 = vsel %vm1042_vm6, %v1396_v15, %v5371_v51  ;;  %v1836_v11 = vsel %vm1042_vm6, %v1171_v56, %v5372_v39 }
 0x3d7   : > { %1938 = vmatprep.mubr.f32.mxu0 %v1841_v9 }
 0x3d8   : > { %1939 = vmatmul.mubr.f32.gmra.mrb[62].mxu0 %v1836_v11 }
 0x3e3   : > { %v5375_v12 = vpop.permute.xlu0 %5374 }
 0x3e4   : > { %v5377_v13 = vunpack.i.h.bf16 %v5375_v12  ;;  %v5376_v10 = vunpack.i.l.bf16 %v5375_v12 }
 0x3e6   : > { %v1842_v49 = vsel %vm1042_vm6, %v1401_v20, %v5377_v13  ;;  %v1845_v60 = vsel %vm1042_vm6, %v1571_v34, %v5376_v10 }
 0x3e7   : > { %v5385_v14 = vpop.permute.xlu0 %5384  ;;  %1943 = vmatprep.mubr.f32.mxu0 %v1842_v49  ;;  %2024 = vmatmul.mubr.f32.vlgmr.msra.gmra.mrb[70].mxu1 %v1845_v60  ;;  %v5380_v16 = vpop.permute.xlu1 %5379 }
 0x3e8   : > { %v5386_v17 = vunpack.i.l.bf16 %v5385_v14  ;;  %v5382_v18 = vunpack.i.h.bf16 %v5380_v16  ;;  %v5381_v15 = vunpack.i.l.bf16 %v5380_v16  ;;  %4078 = vmatprep.mubr.msk.f32.mxu1 %vm1042_vm6, %v1756_v40  ;;  %v5387_v3 = vunpack.i.h.bf16 %v5385_v14 }
 0x3ea   : > { %v1837_v56 = vsel %vm1042_vm6, %v1172_v48, %v5381_v15  ;;  %v1846_v19 = vsel %vm1042_vm6, %v1576_v36, %v5382_v18  ;;  %v1843_v20 = vsel %vm1042_vm6, %v6353_v25, %v5386_v17  ;;  %v1838_v24 = vsel %vm1042_vm6, %v1173_v62, %v5387_v3  ;;  %v5468_v18 = vld [vmem:[%s5601_s24] sm:$0xff]  ;;  %v5469_v15 = vld [vmem:[%s5601_s24 + $0x50] sm:$0xff]  ;;  %v5470_v3 = vld [vmem:[%s5601_s24 + $0x8] sm:$0xff] }
 0x3eb   : > { %1944 = vmatmul.mubr.f32.gmra.mrb[64].mxu0 %v1837_v56  ;;  %2029 = vmatmul.mubr.f32.gmra.mrb[72].mxu1 %v1846_v19  ;;  %v5390_v21 = vpop.permute.xlu1 %5389  ;;  %v5471_v56 = vld [vmem:[%s5601_s24 + $0x58] sm:$0xff]  ;;  %v5472_v19 = vld [vmem:[%s5601_s24 + $0x10] sm:$0xff] }
 0x3ec   : > { %v5392_v22 = vunpack.i.h.bf16 %v5390_v21  ;;  %v5391_v23 = vunpack.i.l.bf16 %v5390_v21  ;;  %1948 = vmatprep.mubr.f32.mxu0 %v1843_v20  ;;  %4079 = vmatprep.mubr.msk.f32.mxu1 %vm1042_vm6, %v1761_v46  ;;  %v5473_v20 = vld [vmem:[%s5601_s24 + $0x60] sm:$0xff]  ;;  %v5474_v21 = vld [vmem:[%s5601_s24 + $0x18] sm:$0xff] }
 0x3ee   : > { %v1847_v58 = vsel %vm1042_vm6, %v1581_v38, %v5391_v23  ;;  %v1844_v48 = vsel %vm1042_vm6, %v6356_v30, %v5392_v22  ;;  %v5475_v22 = vld [vmem:[%s5601_s24 + $0x68] sm:$0xff]  ;;  %v5476_v23 = vld [vmem:[%s5601_s24 + $0x20] sm:$0xf] }
 0x3ef   : > { %1949 = vmatmul.mubr.f32.gmra.mrb[66].mxu0 %v1838_v24  ;;  %2034 = vmatmul.mubr.f32.gmra.mrb[74].mxu1 %v1847_v58  ;;  %v5395_v25 = vpop.permute.xlu0 %5394  ;;  %v5477_v24 = vld [vmem:[%s5601_s24 + $0x70] sm:$0xf]  ;;  %v5478_v58 = vld [vmem:[%s5601_s24 + $0x28] sm:$0xff] }
 0x3f0   : > { %v5397_v26 = vunpack.i.h.bf16 %v5395_v25  ;;  %v5396_v27 = vunpack.i.l.bf16 %v5395_v25  ;;  %1953 = vmatprep.mubr.f32.mxu0 %v1844_v48  ;;  %4080 = vmatprep.mubr.msk.f32.mxu1 %vm1042_vm6, %v1766_v44  ;;  %v5479_v48 = vld [vmem:[%s5601_s24 + $0xa0] sm:$0xff]  ;;  %v5480_v25 = vld [vmem:[%s5601_s24 + $0x30] sm:$0xff] }
 0x3f1   : > { %v1829_v62 = vpop.permute.xlu1 %1828 }
 0x3f2   : > { %v1839_v28 = vsel %vm1042_vm6, %v6015_v52, %v5397_v26  ;;  %v1848_v4 = vsel %vm1042_vm6, %v6359_v2, %v5396_v27  ;;  %v1849_v29 = vsel %vm1042_vm6, %v6361_v59, %v1829_v62  ;;  %v5481_v26 = vld [vmem:[%s5601_s24 + $0xa8] sm:$0xff]  ;;  %v5482_v27 = vld [vmem:[%s5601_s24 + $0x38] sm:$0xff] }
 0x3f3   : > { %1954 = vmatmul.mubr.f32.gmra.mrb[68].mxu0 %v1839_v28  ;;  %2039 = vmatmul.mubr.f32.gmra.mrb[76].mxu1 %v1848_v4  ;;  %v5483_v28 = vld [vmem:[%s5601_s24 + $0xb0] sm:$0xff]  ;;  %v5484_v4 = vld [vmem:[%s5601_s24 + $0x40] sm:$0xff]  ;;  %v5485_v62 = vld [vmem:[%s5601_s24 + $0xb8] sm:$0xff] }
 0x3f4   : > { %4081 = vmatprep.mubr.msk.f32.mxu1 %vm1042_vm6, %v1771_v43  ;;  %4837 = vmatprep.mubr.msk.f32.mxu0 %vm5507_vm0, %v5508_v1 }
 0x3f7   : > { %2044 = vmatmul.mubr.f32.gmra.mrb[78].mxu1 %v1849_v29  ;;  %v5486_v29 = vld [vmem:[%s5601_s24 + $0x48] sm:$0xf] }
 0x3f8   : > { %4887 = vmatprep.mubr.msk.f32.mxu1 %vm5507_vm0, %v5508_v1 }
 0x4a7   : > { %v4356_v30 = vpop.f32.mrb[60].mxu0 }
 0x4a8   : > { %v4357_v52 = vpop.f32.mrb[61].mxu0 }
 0x4a9   : > { %v4358_v31 = vadd.f32 %v4357_v52, %v4356_v30  ;;  %v5487_v30 = vld [vmem:[%s5601_s24 + $0xc0] sm:$0xf]  ;;  %v5488_v52 = vld [vmem:[%s5601_s24 + $0x78] sm:$0xff] }
 0x4ab   : > { %v4359_v32 = vpop.f32.mrb[62].mxu0  ;;  %v1936_v36 = vadd.f32 %v4358_v31, %v4076_v35  ;;  %v5489_v31 = vld [vmem:[%s5601_s24 + $0x80] sm:$0xff] }
 0x4ac   : > { %v4360_v33 = vpop.f32.mrb[63].mxu0 }
 0x4ad   : > { %v4361_v34 = vadd.f32 %v4360_v33, %v4359_v32  ;;  %v5490_v32 = vld [vmem:[%s5601_s24 + $0x88] sm:$0xff]  ;;  %v5491_v33 = vld [vmem:[%s5601_s24 + $0x90] sm:$0xff] }
 0x4af   : > { %v1941_v2 = vadd.f32 %v4361_v34, %v4076_v35  ;;  %v5492_v34 = vld [vmem:[%s5601_s24 + $0x98] sm:$0xf] }
 0x4ba   : > { %v2025_v37 = vpop.f32.mrb[70].mxu1 }
 0x4bb   : > { %v6403_v38 = vadd.f32 %v2025_v37, %v1936_v36  ;;  %v2027_v5 = vpop.f32.mrb[71].mxu1  ;;  %v5494_v36 = vld [vmem:[%s5601_s24 + $0xd0] sm:$0xff]  ;;  %v5495_v37 = vld [vmem:[%s5601_s24 + $0xd8] sm:$0xff] }
 0x4bc   : > { %v5496_v5 = vld [vmem:[%s5601_s24 + $0xe0] sm:$0xff] }
 0x4bd   : > { %v2049_v41 = vmax.f32 %v6403_v38, 0.0 }
 0x4be   : > { %v4362_v55 = vpop.f32.mrb[64].mxu0  ;;  %v2030_v59 = vpop.f32.mrb[72].mxu1 }
 0x4bf   : > { %v6405_v7 = vadd.f32 %v2030_v59, %v1941_v2  ;;  %v4363_v8 = vpop.f32.mrb[65].mxu0  ;;  %v2032_v54 = vpop.f32.mrb[73].mxu1  ;;  %v5497_v2 = vld [vmem:[%s5601_s24 + $0xe8] sm:$0xf] }
 0x4c0   : > { %v4364_v40 = vadd.f32 %v4363_v8, %v4362_v55  ;;  %v2054_v55 = vld [vmem:[%s7216_s2 + $0x240] sm:$0xff]  ;;  %v2055_v59 = vld [vmem:[%s7216_s2 + $0x248] sm:$0xff]  ;;  %v2056_v54 = vld [vmem:[%s7216_s2 + $0x250] sm:$0xff] }
 0x4c1   : > { %v2050_v46 = vmax.f32 %v6405_v7, 0.0  ;;  %v5217_v8 = vpack.c.bf16 %v2055_v59, %v2054_v55  ;;  %v2071_v55 = vld [vmem:[%s7216_s2 + $0x2c8] sm:$0xff] }
 0x4c2   : > { %v4365_v42 = vpop.f32.mrb[66].mxu0  ;;  %v1946_v44 = vadd.f32 %v4364_v40, %v4076_v35  ;;  %v2035_v45 = vpop.f32.mrb[74].mxu1  ;;  %v2057_v40 = vld [vmem:[%s7216_s2 + $0x258] sm:$0xff] }
 0x4c3   : > { %v6413_v43 = vpack.c.bf16 %v2050_v46, %v2049_v41  ;;  %v4366_v53 = vpop.f32.mrb[67].mxu0  ;;  %v2037_v50 = vpop.f32.mrb[75].mxu1 }
 0x4c4   : > { %v6415_v57 = vadd.f32 %v2035_v45, %v1946_v44  ;;  %v4367_v61 = vadd.f32 %v4366_v53, %v4365_v42  ;;  %v5220_v42 = vpack.c.bf16 %v2057_v40, %v2056_v54  ;;  %v2058_v53 = vld [vmem:[%s7216_s2 + $0x260] sm:$0xff]  ;;  %v2059_v50 = vld [vmem:[%s7216_s2 + $0x268] sm:$0xff] }
 0x4c5   : > { %5182 = vmatpush3.bf16.msra.mxu0 %v6413_v43  ;;  %5194 = vmatpush3.bf16.msra.mxu1 %v6413_v43 }
 0x4c6   : > { %v4368_v47 = vpop.f32.mrb[68].mxu0  ;;  %v1951_v63 = vadd.f32 %v4367_v61, %v4076_v35  ;;  %v2040_v6 = vpop.f32.mrb[76].mxu1  ;;  %5183 = vmatprep.subr.bf16.mxu0 %v5506_v0  ;;  %5195 = vmatprep.subr.bf16.mxu1 %v5506_v0  ;;  %v2051_v12 = vmax.f32 %v6415_v57, 0.0 }
 0x4c7   : > { %v4369_v39 = vpop.f32.mrb[69].mxu0  ;;  %v2042_v51 = vpop.f32.mrb[77].mxu1 }
 0x4c8   : > { %v6421_v9 = vadd.f32 %v2040_v6, %v1951_v63  ;;  %v4370_v11 = vadd.f32 %v4369_v39, %v4368_v47  ;;  %v5223_v47 = vpack.c.bf16 %v2059_v50, %v2058_v53  ;;  %v2060_v63 = vld [vmem:[%s7216_s2 + $0x270] sm:$0xff]  ;;  %v2061_v6 = vld [vmem:[%s7216_s2 + $0x278] sm:$0xff] }
 0x4c9   : > { %v5226_v51 = vpack.c.bf16 %v2061_v6, %v2060_v63  ;;  %v2074_v63 = vld [vmem:[%s7216_s2 + $0x2e0] sm:$0xff]  ;;  %v2075_v6 = vld [vmem:[%s7216_s2 + $0x2e8] sm:$0xff] }
 0x4ca   : > { %v2052_v13 = vmax.f32 %v6421_v9, 0.0  ;;  %v1956_v10 = vadd.f32 %v4370_v11, %v4076_v35  ;;  %v2045_v49 = vpop.f32.mrb[78].mxu1  ;;  %v5493_v35 = vld [vmem:[%s5601_s24 + $0xc8] sm:$0xff] }
 0x4cb   : > { %v2047_v60 = vpop.f32.mrb[79].mxu1 }
 0x4cc   : > { %v6429_v14 = vpack.c.bf16 %v2052_v13, %v2051_v12  ;;  %v2046_v16 = vadd.f32 %v2045_v49, %v1956_v10 }
 0x4ce   : > { %5185 = vmatpush3.bf16.msra.mxu0 %v6429_v14  ;;  %5197 = vmatpush3.bf16.msra.mxu1 %v6429_v14  ;;  %v6435_v17 = vmax.f32 %v2046_v16, 0.0 }
 0x4cf   : > { %4835 = vmatprep.subr.mxu0 %v5508_v1  ;;  %4885 = vmatprep.subr.mxu1 %v5508_v1 }
 0x4d2   : > { %4836 = vmatpush3.msk.msra.mxu0 %vm255_vm1, %v6435_v17  ;;  %4886 = vmatpush3.msk.msra.mxu1 %vm255_vm1, %v6435_v17 }
 0x4d3   : > { %4838 = vmatmul.mubr.msk.f32.vlgmr.msra.gmra.mrb[70].mxu0 %vm239_vm2, %v5468_v18  ;;  %5186 = vmatprep.subr.bf16.mxu0 %v5506_v0 }
 0x4d4   : > { %4888 = vmatmul.mubr.msk.f32.vlgmr.msra.gmra.mrb[80].mxu1 %vm239_vm2, %v5469_v15  ;;  %5204 = vmatprep.subr.bf16.mxu1 %v5506_v0 }
 0x4d5   : > { %5188 = vmatpush3.bf16.msra.mxu0 %v6413_v43  ;;  %5206 = vmatpush3.bf16.msra.mxu1 %v6413_v43 }
 0x4d6   : > { %4840 = vmatprep.mubr.msk.f32.mxu0 %vm5507_vm0, %v5508_v1  ;;  %4890 = vmatprep.mubr.msk.f32.mxu1 %vm5507_vm0, %v5508_v1 }
 0x4d7   : > { %4841 = vmatmul.mubr.msk.f32.gmra.mrb[72].mxu0 %vm239_vm2, %v5470_v3  ;;  %5189 = vmatprep.subr.bf16.mxu0 %v5506_v0  ;;  %v2062_v3 = vld [vmem:[%s7216_s2 + $0x280] sm:$0xff] }
 0x4d8   : > { %4891 = vmatmul.mubr.msk.f32.gmra.mrb[82].mxu1 %vm239_vm2, %v5471_v56  ;;  %5207 = vmatprep.subr.bf16.mxu1 %v5506_v0  ;;  %v2063_v56 = vld [vmem:[%s7216_s2 + $0x288] sm:$0xff] }
 0x4d9   : > { %5191 = vmatpush3.bf16.msra.mxu0 %v6429_v14  ;;  %5209 = vmatpush3.bf16.msra.mxu1 %v6429_v14 }
 0x4da   : > { %4843 = vmatprep.mubr.msk.f32.mxu0 %vm5507_vm0, %v5508_v1  ;;  %4893 = vmatprep.mubr.msk.f32.mxu1 %vm5507_vm0, %v5508_v1 }
 0x4db   : > { %4844 = vmatmul.mubr.msk.f32.gmra.mrb[74].mxu0 %vm239_vm2, %v5472_v19  ;;  %4860 = vmatprep.subr.mxu0 %v5508_v1 }
 0x4dc   : > { %4894 = vmatmul.mubr.msk.f32.gmra.mrb[84].mxu1 %vm239_vm2, %v5473_v20  ;;  %4935 = vmatprep.subr.mxu1 %v5508_v1  ;;  %v5229_v20 = vpack.c.bf16 %v2063_v56, %v2062_v3 }
 0x4dd   : > { %4861 = vmatpush3.msk.msra.mxu0 %vm255_vm1, %v6435_v17  ;;  %4936 = vmatpush3.msk.msra.mxu1 %vm255_vm1, %v6435_v17 }
 0x4de   : > { %4846 = vmatprep.mubr.msk.f32.mxu0 %vm5507_vm0, %v5508_v1  ;;  %4896 = vmatprep.mubr.msk.f32.mxu1 %vm5507_vm0, %v5508_v1 }
 0x4df   : > { %4847 = vmatmul.mubr.msk.f32.gmra.mrb[76].mxu0 %vm239_vm2, %v5474_v21  ;;  %5198 = vmatprep.subr.bf16.mxu0 %v5506_v0 }
 0x4e0   : > { %4897 = vmatmul.mubr.msk.f32.gmra.mrb[86].mxu1 %vm239_vm2, %v5475_v22  ;;  %4849 = vmatprep.mubr.msk.f32.mxu0 %vm5507_vm0, %v5508_v1 }
 0x4e1   : > { %4899 = vmatprep.mubr.msk.f32.mxu1 %vm5507_vm0, %v5508_v1  ;;  %5216 = vmatprep.subr.bf16.mxu1 %v5506_v0 }
 0x4e3   : > { %4850 = vmatmul.mubr.msk.f32.gmra.mrb[78].mxu0 %vm239_vm2, %v5476_v23 }
 0x4e4   : > { %4900 = vmatmul.mubr.msk.f32.gmra.mrb[88].mxu1 %vm239_vm2, %v5477_v24  ;;  %4862 = vmatprep.mubr.msk.f32.mxu0 %vm5507_vm0, %v5508_v1 }
 0x4e5   : > { %4937 = vmatprep.mubr.msk.f32.mxu1 %vm5507_vm0, %v5508_v1 }
 0x4e7   : > { %4863 = vmatmul.mubr.msk.f32.vlgmr.msra.gmra.mrb[80].mxu0 %vm239_vm2, %v5478_v58  ;;  %v2064_v58 = vld [vmem:[%s7216_s2 + $0x290] sm:$0xff] }
 0x4e8   : > { %5200 = vmatpush3.bf16.msra.mxu0 %v6413_v43  ;;  %4938 = vmatmul.mubr.msk.f32.vlgmr.msra.gmra.mrb[90].mxu1 %vm239_vm2, %v5479_v48  ;;  %v2065_v48 = vld [vmem:[%s7216_s2 + $0x298] sm:$0xff] }
 0x4e9   : > { %4865 = vmatprep.mubr.msk.f32.mxu0 %vm5507_vm0, %v5508_v1  ;;  %5201 = vmatprep.subr.bf16.mxu0 %v5506_v0 }
 0x4ea   : > { %4940 = vmatprep.mubr.msk.f32.mxu1 %vm5507_vm0, %v5508_v1  ;;  %5218 = vmatpush1.bf16.msra.mxu1 %v5217_v8 }
 0x4eb   : > { %4866 = vmatmul.mubr.msk.f32.gmra.mrb[82].mxu0 %vm239_vm2, %v5480_v25  ;;  %5219 = vmatprep.subr.bf16.mxu1 %v5506_v0 }
 0x4ec   : > { %5203 = vmatpush3.bf16.msra.mxu0 %v6429_v14  ;;  %4941 = vmatmul.mubr.msk.f32.gmra.mrb[92].mxu1 %vm239_vm2, %v5481_v26 }
 0x4ed   : > { %4868 = vmatprep.mubr.msk.f32.mxu0 %vm5507_vm0, %v5508_v1  ;;  %4910 = vmatprep.subr.mxu0 %v5508_v1 }
 0x4ee   : > { %4943 = vmatprep.mubr.msk.f32.mxu1 %vm5507_vm0, %v5508_v1  ;;  %5221 = vmatpush1.bf16.msra.mxu1 %v5220_v42 }
 0x4ef   : > { %4869 = vmatmul.mubr.msk.f32.gmra.mrb[84].mxu0 %vm239_vm2, %v5482_v27  ;;  %5222 = vmatprep.subr.bf16.mxu1 %v5506_v0  ;;  %v5232_v27 = vpack.c.bf16 %v2065_v48, %v2064_v58 }
 0x4f0   : > { %4911 = vmatpush3.msk.msra.mxu0 %vm255_vm1, %v6435_v17  ;;  %4944 = vmatmul.mubr.msk.f32.gmra.mrb[94].mxu1 %vm239_vm2, %v5483_v28 }
 0x4f1   : > { %4871 = vmatprep.mubr.msk.f32.mxu0 %vm5507_vm0, %v5508_v1  ;;  %4946 = vmatprep.mubr.msk.f32.mxu1 %vm5507_vm0, %v5508_v1 }
 0x4f2   : > { %5210 = vmatprep.subr.bf16.mxu0 %v5506_v0  ;;  %5224 = vmatpush1.bf16.msra.mxu1 %v5223_v47 }
 0x4f3   : > { %4872 = vmatmul.mubr.msk.f32.gmra.mrb[86].mxu0 %vm239_vm2, %v5484_v4  ;;  %5225 = vmatprep.subr.bf16.mxu1 %v5506_v0 }
 0x4f4   : > { %4947 = vmatmul.mubr.msk.f32.gmra.mrb[96].mxu1 %vm239_vm2, %v5485_v62  ;;  %4874 = vmatprep.mubr.msk.f32.mxu0 %vm5507_vm0, %v5508_v1 }
 0x4f5   : > { %4949 = vmatprep.mubr.msk.f32.mxu1 %vm5507_vm0, %v5508_v1 }
 0x4f6   : > { %5227 = vmatpush1.bf16.msra.mxu1 %v5226_v51 }
 0x4f7   : > { %4875 = vmatmul.mubr.msk.f32.gmra.mrb[88].mxu0 %vm239_vm2, %v5486_v29  ;;  %5228 = vmatprep.subr.bf16.mxu1 %v5506_v0  ;;  %v2066_v29 = vld [vmem:[%s7216_s2 + $0x2a0] sm:$0xff] }
 0x4f8   : > { %4912 = vmatprep.mubr.msk.f32.mxu0 %vm5507_vm0, %v5508_v1  ;;  %4950 = vmatmul.mubr.msk.f32.gmra.mrb[98].mxu1 %vm239_vm2, %v5487_v30  ;;  %v2067_v30 = vld [vmem:[%s7216_s2 + $0x2a8] sm:$0xff] }
 0x4fa   : > { %5230 = vmatpush1.bf16.msra.mxu1 %v5229_v20 }
 0x4fb   : > { %4913 = vmatmul.mubr.msk.f32.vlgmr.msra.gmra.mrb[90].mxu0 %vm239_vm2, %v5488_v52  ;;  %5231 = vmatprep.subr.bf16.mxu1 %v5506_v0 }
 0x4fc   : > { %5212 = vmatpush3.bf16.msra.mxu0 %v6413_v43  ;;  %4915 = vmatprep.mubr.msk.f32.mxu0 %vm5507_vm0, %v5508_v1 }
 0x4fd   : > { %5213 = vmatprep.subr.bf16.mxu0 %v5506_v0 }
 0x4fe   : > { %5233 = vmatpush1.bf16.msra.mxu1 %v5232_v27  ;;  %v2080_v27 = vld [vmem:[%s7216_s2 + $0x310] sm:$0xff] }
 0x4ff   : > { %4916 = vmatmul.mubr.msk.f32.gmra.mrb[92].mxu0 %vm239_vm2, %v5489_v31  ;;  %5234 = vmatprep.subr.bf16.mxu1 %v5506_v0  ;;  %v5235_v31 = vpack.c.bf16 %v2067_v30, %v2066_v29 }
 0x500   : > { %5215 = vmatpush3.bf16.msra.mxu0 %v6429_v14  ;;  %4918 = vmatprep.mubr.msk.f32.mxu0 %vm5507_vm0, %v5508_v1 }
 0x501   : > { %4960 = vmatprep.subr.mxu0 %v5508_v1 }
 0x502   : > { %5236 = vmatpush1.bf16.msra.mxu1 %v5235_v31 }
 0x503   : > { %4919 = vmatmul.mubr.msk.f32.gmra.mrb[94].mxu0 %vm239_vm2, %v5490_v32  ;;  %5237 = vmatprep.subr.bf16.mxu1 %v5506_v0 }
 0x504   : > { %4961 = vmatpush3.msk.msra.mxu0 %vm255_vm1, %v6435_v17  ;;  %4921 = vmatprep.mubr.msk.f32.mxu0 %vm5507_vm0, %v5508_v1 }
 0x505   : > { %5258 = vmatprep.subr.bf16.mxu0 %v5506_v0 }
 0x507   : > { %4922 = vmatmul.mubr.msk.f32.gmra.mrb[96].mxu0 %vm239_vm2, %v5491_v33 }
 0x508   : > { %4924 = vmatprep.mubr.msk.f32.mxu0 %vm5507_vm0, %v5508_v1 }
 0x50b   : > { %4925 = vmatmul.mubr.msk.f32.gmra.mrb[98].mxu0 %vm239_vm2, %v5492_v34 }
 0x50c   : > { %4962 = vmatprep.mubr.msk.f32.mxu0 %vm5507_vm0, %v5508_v1 }
 0x50f   : > { %4963 = vmatmul.mubr.msk.f32.vlgmr.msra.gmra.mrb[100].mxu0 %vm239_vm2, %v5493_v35  ;;  %v2068_v35 = vld [vmem:[%s7216_s2 + $0x2b0] sm:$0xff] }
 0x510   : > { %4965 = vmatprep.mubr.msk.f32.mxu0 %vm5507_vm0, %v5508_v1 }
 0x513   : > { %4966 = vmatmul.mubr.msk.f32.gmra.mrb[102].mxu0 %vm239_vm2, %v5494_v36  ;;  %v2069_v36 = vld [vmem:[%s7216_s2 + $0x2b8] sm:$0xff] }
 0x514   : > { %4968 = vmatprep.mubr.msk.f32.mxu0 %vm5507_vm0, %v5508_v1 }
 0x517   : > { %4969 = vmatmul.mubr.msk.f32.gmra.mrb[104].mxu0 %vm239_vm2, %v5495_v37 }
 0x518   : > { %4971 = vmatprep.mubr.msk.f32.mxu0 %vm5507_vm0, %v5508_v1 }
 0x51b   : > { %4972 = vmatmul.mubr.msk.f32.gmra.mrb[106].mxu0 %vm239_vm2, %v5496_v5  ;;  %v5238_v5 = vpack.c.bf16 %v2069_v36, %v2068_v35 }
 0x51c   : > { %4974 = vmatprep.mubr.msk.f32.mxu0 %vm5507_vm0, %v5508_v1 }
 0x51d   : > { %5239 = vmatpush1.bf16.msra.mxu1 %v5238_v5 }
 0x51e   : > { %5240 = vmatprep.subr.bf16.mxu1 %v5506_v0 }
 0x51f   : > { %4975 = vmatmul.mubr.msk.f32.gmra.mrb[108].mxu0 %vm239_vm2, %v5497_v2  ;;  %v2070_v2 = vld [vmem:[%s7216_s2 + $0x2c0] sm:$0xff] }
 0x520   : > { %4981 = vmatprep.mubr.msk.f32.mxu0 %vm5507_vm0, %v5508_v1  ;;  %v5241_v8 = vpack.c.bf16 %v2071_v55, %v2070_v2 }
 0x522   : > { %5242 = vmatpush1.bf16.msra.mxu1 %v5241_v8 }
 0x523   : > { %5243 = vmatprep.subr.bf16.mxu1 %v5506_v0 }
 0x5a6   : > { %v2152_v44 = vpop.f32.mrb[70].mxu0 }
 0x5a7   : > { %v4839_v45 = vpop.f32.mrb[71].mxu0  ;;  %v2332_v43 = vpop.f32.mrb[80].mxu1 }
 0x5a8   : > { %v4889_v61 = vpop.f32.mrb[81].mxu1  ;;  %v2073_v45 = vld [vmem:[%s7216_s2 + $0x2d8] sm:$0xff] }
 0x5aa   : > { %v2157_v39 = vpop.f32.mrb[72].mxu0 }
 0x5ab   : > { %v5398_v11 = vpack.i.bf16 %v2157_v39, %v2152_v44  ;;  %v4842_v10 = vpop.f32.mrb[73].mxu0  ;;  %v2337_v49 = vpop.f32.mrb[82].mxu1  ;;  %v2072_v44 = vld [vmem:[%s7216_s2 + $0x2d0] sm:$0xff] }
 0x5ac   : > { %v5403_v60 = vpack.i.bf16 %v2337_v49, %v2332_v43  ;;  %v4892_v14 = vpop.f32.mrb[83].mxu1  ;;  %v5244_v50 = vpack.c.bf16 %v2073_v45, %v2072_v44 }
 0x5ad   : > { %5399 = vrot.lane.b32.xlu0 %v5398_v11, %s5510_s30  ;;  %v5247_v11 = vpack.c.bf16 %v2075_v6, %v2074_v63  ;;  %v2076_v14 = vld [vmem:[%s7216_s2 + $0x2f0] sm:$0xff] }
 0x5ae   : > { %v2162_v16 = vpop.f32.mrb[74].mxu0  ;;  %5245 = vmatpush1.bf16.msra.mxu1 %v5244_v50 }
 0x5af   : > { %v4845_v18 = vpop.f32.mrb[75].mxu0  ;;  %v6617_v15 = vpop.f32.mrb[84].mxu1  ;;  %5246 = vmatprep.subr.bf16.mxu1 %v5506_v0 }
 0x5b0   : > { %v4895_v19 = vpop.f32.mrb[85].mxu1 }
 0x5b1   : > { %5404 = vrot.lane.b32.xlu0 %v5403_v60, %s5514_s11 }
 0x5b2   : > { %v2167_v21 = vpop.f32.mrb[76].mxu0  ;;  %5248 = vmatpush1.bf16.msra.mxu1 %v5247_v11 }
 0x5b3   : > { %v5408_v22 = vpack.i.bf16 %v2167_v21, %v2162_v16  ;;  %v4848_v23 = vpop.f32.mrb[77].mxu0  ;;  %v6627_v24 = vpop.f32.mrb[86].mxu1  ;;  %v2077_v16 = vld [vmem:[%s7216_s2 + $0x2f8] sm:$0xff]  ;;  %5249 = vmatprep.subr.bf16.mxu1 %v5506_v0  ;;  %v2078_v21 = vld [vmem:[%s7216_s2 + $0x300] sm:$0xff] }
 0x5b4   : > { %v5423_v25 = vpack.i.bf16 %v6627_v24, %v6617_v15  ;;  %v4898_v26 = vpop.f32.mrb[87].mxu1  ;;  %v5250_v56 = vpack.c.bf16 %v2077_v16, %v2076_v14 }
 0x5b5   : > { %5409 = vrot.lane.b32.xlu1 %v5408_v22, %s5510_s30  ;;  %v2079_v22 = vld [vmem:[%s7216_s2 + $0x308] sm:$0xff] }
 0x5b6   : > { %v6639_v28 = vpop.f32.mrb[78].mxu0  ;;  %5251 = vmatpush1.bf16.msra.mxu1 %v5250_v56  ;;  %v5253_v48 = vpack.c.bf16 %v2079_v22, %v2078_v21 }
 0x5b7   : > { %v4851_v4 = vpop.f32.mrb[79].mxu0  ;;  %v6641_v62 = vpop.f32.mrb[88].mxu1  ;;  %5252 = vmatprep.subr.bf16.mxu1 %v5506_v0 }
 0x5b8   : > { %v4901_v52 = vpop.f32.mrb[89].mxu1  ;;  %v2081_v4 = vld [vmem:[%s7216_s2 + $0x318] sm:$0xff] }
 0x5b9   : > { %v5256_v30 = vpack.c.bf16 %v2081_v4, %v2080_v27 }
 0x5ba   : > { %v2242_v32 = vpop.f32.mrb[80].mxu0  ;;  %5254 = vmatpush1.bf16.msra.mxu1 %v5253_v48 }
 0x5bb   : > { %v2512_v33 = vpop.f32.mrb[90].mxu1  ;;  %v4864_v34 = vpop.f32.mrb[81].mxu0  ;;  %5255 = vmatprep.subr.bf16.mxu1 %v5506_v0 }
 0x5bc   : > { %2691 = vrot.lane.b32.xlu1 %v2512_v33, %s5510_s30  ;;  %v4939_v37 = vpop.f32.mrb[91].mxu1 }
 0x5be   : > { %v2247_v59 = vpop.f32.mrb[82].mxu0  ;;  %5257 = vmatpush1.bf16.msra.mxu1 %v5256_v30 }
 0x5bf   : > { %v5413_v54 = vpack.i.bf16 %v2247_v59, %v2242_v32  ;;  %v2517_v40 = vpop.f32.mrb[92].mxu1  ;;  %v4867_v42 = vpop.f32.mrb[83].mxu0  ;;  %5308 = vmatprep.subr.bf16.mxu1 %v5506_v0 }
 0x5c0   : > { %2693 = vrot.lane.b32.xlu1 %v2517_v40, %s5510_s30  ;;  %v4942_v43 = vpop.f32.mrb[93].mxu1 }
 0x5c1   : > { %5414 = vrot.lane.b32.xlu0 %v5413_v54, %s5512_s5 }
 0x5c2   : > { %v2252_v53 = vpop.f32.mrb[84].mxu0 }
 0x5c3   : > { %v4870_v61 = vpop.f32.mrb[85].mxu0  ;;  %v2522_v47 = vpop.f32.mrb[94].mxu1 }
 0x5c4   : > { %v4945_v39 = vpop.f32.mrb[95].mxu1 }
 0x5c5   : > { %2695 = vrot.lane.b32.xlu0 %v2522_v47, %s5510_s30 }
 0x5c6   : > { %v2257_v51 = vpop.f32.mrb[86].mxu0 }
 0x5c7   : > { %v5418_v10 = vpack.i.bf16 %v2257_v51, %v2252_v53  ;;  %v4873_v49 = vpop.f32.mrb[87].mxu0  ;;  %v2527_v60 = vpop.f32.mrb[96].mxu1 }
 0x5c8   : > { %v4948_v18 = vpop.f32.mrb[97].mxu1 }
 0x5c9   : > { %2697 = vrot.lane.b32.xlu0 %v2527_v60, %s5510_s30  ;;  %5419 = vrot.lane.b32.xlu1 %v5418_v10, %s5512_s5 }
 0x5ca   : > { %v2262_v3 = vpop.f32.mrb[88].mxu0 }
 0x5cb   : > { %v4876_v19 = vpop.f32.mrb[89].mxu0  ;;  %v2532_v20 = vpop.f32.mrb[98].mxu1 }
 0x5cc   : > { %v4951_v23 = vpop.f32.mrb[99].mxu1 }
 0x5ce   : > { %v2422_v58 = vpop.f32.mrb[90].mxu0 }
 0x5cf   : > { %v4914_v26 = vpop.f32.mrb[91].mxu0 }
 0x5d2   : > { %v2427_v29 = vpop.f32.mrb[92].mxu0 }
 0x5d3   : > { %v4917_v52 = vpop.f32.mrb[93].mxu0 }
 0x5d6   : > { %v6705_v31 = vpop.f32.mrb[94].mxu0 }
 0x5d7   : > { %v4920_v32 = vpop.f32.mrb[95].mxu0 }
 0x5da   : > { %v6708_v33 = vpop.f32.mrb[96].mxu0 }
 0x5db   : > { %v4923_v34 = vpop.f32.mrb[97].mxu0 }
 0x5de   : > { %v6710_v35 = vpop.f32.mrb[98].mxu0 }
 0x5df   : > { %v4926_v36 = vpop.f32.mrb[99].mxu0 }
 0x5e2   : > { %v2602_v37 = vpop.f32.mrb[100].mxu0 }
 0x5e3   : > { %2711 = vrot.lane.b32.xlu1 %v2602_v37, %s5512_s5  ;;  %v4964_v5 = vpop.f32.mrb[101].mxu0 }
 0x5e6   : > { %v2607_v2 = vpop.f32.mrb[102].mxu0 }
 0x5e7   : > { %5424 = vrot.lane.b32.xlu1 %v5423_v25, %s5514_s11  ;;  %2713 = vrot.lane.b32.xlu0 %v2607_v2, %s5512_s5  ;;  %v4967_v55 = vpop.f32.mrb[103].mxu0 }
 0x5ea   : > { %v2612_v59 = vpop.f32.mrb[104].mxu0 }
 0x5eb   : > { %2699 = vrot.lane.b32.xlu1 %v2532_v20, %s5510_s30  ;;  %2715 = vrot.lane.b32.xlu0 %v2612_v59, %s5512_s5  ;;  %v4970_v8 = vpop.f32.mrb[105].mxu0 }
 0x5ee   : > { %v2617_v54 = vpop.f32.mrb[106].mxu0 }
 0x5ef   : > { %2639 = vrot.lane.b32.xlu0 %v6639_v28, %s5510_s30  ;;  %2717 = vrot.lane.b32.xlu1 %v2617_v54, %s5512_s5  ;;  %v4973_v40 = vpop.f32.mrb[107].mxu0 }
 0x5f2   : > { %v2622_v42 = vpop.f32.mrb[108].mxu0 }
 0x5f3   : > { %2659 = vrot.lane.b32.xlu0 %v2262_v3, %s5512_s5  ;;  %2719 = vrot.lane.b32.xlu1 %v2622_v42, %s5512_s5  ;;  %v4976_v15 = vpop.f32.mrb[109].mxu0 }
 0x5f7   : > { %2679 = vrot.lane.b32.xlu0 %v6641_v62, %s5514_s11 }
 0x61f   : > { %v5400_v24 = vpop.permute.xlu0 %5399 }
 0x620   : > { %v5401_v50 = vunpack.i.l.bf16 %v5400_v24  ;;  %v5402_v63 = vunpack.i.h.bf16 %v5400_v24 }
 0x622   : > { %v2726_v6 = vsel %vm1030_vm4, %v2049_v41, %v5401_v50  ;;  %v2727_v38 = vsel %vm1030_vm4, %v2050_v46, %v5402_v63 }
 0x623   : > { %v5405_v44 = vpop.permute.xlu0 %5404 }
 0x624   : > { %v5406_v39 = vunpack.i.l.bf16 %v5405_v44  ;;  %v5407_v14 = vunpack.i.h.bf16 %v5405_v44 }
 0x627   : > { %v5410_v25 = vpop.permute.xlu1 %5409 }
 0x628   : > { %v5411_v18 = vunpack.i.l.bf16 %v5410_v25  ;;  %v5412_v7 = vunpack.i.h.bf16 %v5410_v25 }
 0x62a   : > { %v2728_v26 = vsel %vm1030_vm4, %v2051_v12, %v5411_v18  ;;  %v2729_v57 = vsel %vm1030_vm4, %v2052_v13, %v5412_v7  ;;  %v3389_v7 = vld [vmem:[%s7217_s3] sm:$0xff] }
 0x62e   : > { %v2692_v45 = vpop.permute.xlu1 %2691 }
 0x62f   : > { %v2741_v62 = vsel %vm1030_vm4, %v2422_v58, %v2692_v45 }
 0x632   : > { %v2694_v53 = vpop.permute.xlu1 %2693 }
 0x633   : > { %v5415_v43 = vpop.permute.xlu0 %5414  ;;  %v2742_v3 = vsel %vm1030_vm4, %v2427_v29, %v2694_v53 }
 0x634   : > { %v5416_v61 = vunpack.i.l.bf16 %v5415_v43  ;;  %v5417_v51 = vunpack.i.h.bf16 %v5415_v43 }
 0x636   : > { %v2731_v11 = vsel %vm1042_vm6, %v2726_v6, %v5416_v61  ;;  %v2732_v41 = vsel %vm1042_vm6, %v2727_v38, %v5417_v51 }
 0x637   : > { %v2696_v28 = vpop.permute.xlu0 %2695  ;;  %v2736_v16 = vsel %vm1054_vm8, %v2731_v11, %v5406_v39  ;;  %v2737_v23 = vsel %vm1054_vm8, %v2732_v41, %v5407_v14  ;;  %v3390_v14 = vld [vmem:[%s7217_s3 + $0x8] sm:$0xff] }
 0x638   : > { %v2743_v46 = vsel %vm1030_vm4, %v6705_v31, %v2696_v28 }
 0x63b   : > { %v5420_v47 = vpop.permute.xlu1 %5419  ;;  %v2698_v10 = vpop.permute.xlu0 %2697 }
 0x63c   : > { %v5421_v20 = vunpack.i.l.bf16 %v5420_v47  ;;  %v5422_v27 = vunpack.i.h.bf16 %v5420_v47  ;;  %v2744_v31 = vsel %vm1030_vm4, %v6708_v33, %v2698_v10 }
 0x63e   : > { %v2733_v29 = vsel %vm1042_vm6, %v2728_v26, %v5421_v20  ;;  %v2734_v36 = vsel %vm1042_vm6, %v2729_v57, %v5422_v27  ;;  %v3393_v57 = vld [vmem:[%s7217_s3 + $0x20] sm:$0xff] }
 0x655   : > { %v2712_v49 = vpop.permute.xlu1 %2711 }
 0x656   : > { %v2746_v60 = vsel %vm1042_vm6, %v2741_v62, %v2712_v49 }
 0x657   : > { %4119 = vmatprep.mubr.msk.f32.mxu1 %vm1054_vm8, %v2746_v60 }
 0x658   : > { %2835 = vmatmul.mubr.f32.vlgmr.msra.gmra.mrb[100].mxu1 %v2736_v16  ;;  %v3392_v16 = vld [vmem:[%s7217_s3 + $0x18] sm:$0xff] }
 0x659   : > { %v5425_v56 = vpop.permute.xlu1 %5424  ;;  %v2714_v19 = vpop.permute.xlu0 %2713 }
 0x65a   : > { %v2747_v21 = vsel %vm1042_vm6, %v2742_v3, %v2714_v19  ;;  %v5426_v22 = vunpack.i.l.bf16 %v5425_v56  ;;  %v5427_v30 = vunpack.i.h.bf16 %v5425_v56  ;;  %v5262_v3 = vpack.c.bf16 %v3392_v16, %v3390_v14 }
 0x65b   : > { %4120 = vmatprep.mubr.msk.f32.mxu1 %vm1054_vm8, %v2747_v21  ;;  %v5515_v14 = vmov 1   ;;  %v5516_v16 = vmov 0  }
 0x65c   : > { %2840 = vmatmul.mubr.f32.gmra.mrb[102].mxu1 %v2737_v23  ;;  %v2738_v52 = vsel %vm1054_vm8, %v2733_v29, %v5426_v22  ;;  %v2739_v37 = vsel %vm1054_vm8, %v2734_v36, %v5427_v30  ;;  %5429 = vset.pattern.permute.xlu0 %v5515_v14 }
 0x65d   : > { %v2700_v58 = vpop.permute.xlu1 %2699  ;;  %v2716_v48 = vpop.permute.xlu0 %2715  ;;  %5428 = vset.pattern.permute.xlu1 %v5516_v16 }
 0x65e   : > { %v2748_v4 = vsel %vm1042_vm6, %v2743_v46, %v2716_v48  ;;  %v2745_v5 = vsel %vm1030_vm4, %v6710_v35, %v2700_v58  ;;  %v4118_v35 = vld [vmem:[%s7216_s2 + $0x320] ss:$0 sm:$0xff]  ;;  %v3391_v46 = vld [vmem:[%s7217_s3 + $0x10] sm:$0xff]  ;;  %v3394_v58 = vld [vmem:[%s7217_s3 + $0x28] sm:$0xff] }
 0x65f   : > { %4121 = vmatprep.mubr.msk.f32.mxu1 %vm1054_vm8, %v2748_v4  ;;  %v3396_v48 = vld [vmem:[%s7217_s3 + $0x38] sm:$0xff]  ;;  %v5264_v27 = vpack.c.bf16 %v3391_v46, %v3389_v7 }
 0x660   : > { %2845 = vmatmul.mubr.f32.gmra.mrb[104].mxu1 %v2738_v52  ;;  %v5266_v30 = vpack.c.bf16 %v3396_v48, %v3394_v58  ;;  %v3399_v48 = vld [vmem:[%s7217_s3 + $0x60] sm:$0xff] }
 0x661   : > { %v2640_v32 = vpop.permute.xlu0 %2639  ;;  %v2718_v34 = vpop.permute.xlu1 %2717 }
 0x662   : > { %v2749_v12 = vsel %vm1042_vm6, %v2744_v31, %v2718_v34  ;;  %v2730_v9 = vsel %vm1030_vm4, %v6435_v17, %v2640_v32 }
 0x663   : > { %4122 = vmatprep.mubr.msk.f32.mxu1 %vm1054_vm8, %v2749_v12  ;;  %v3395_v12 = vld [vmem:[%s7217_s3 + $0x30] sm:$0xff] }
 0x664   : > { %2850 = vmatmul.mubr.f32.gmra.mrb[106].mxu1 %v2739_v37  ;;  %v5268_v36 = vpack.c.bf16 %v3395_v12, %v3393_v57  ;;  %v3401_v12 = vld [vmem:[%s7217_s3 + $0x80] sm:$0xff] }
 0x665   : > { %v2660_v2 = vpop.permute.xlu0 %2659  ;;  %v2720_v33 = vpop.permute.xlu1 %2719 }
 0x666   : > { %v2750_v55 = vsel %vm1042_vm6, %v2745_v5, %v2720_v33  ;;  %v2735_v13 = vsel %vm1042_vm6, %v2730_v9, %v2660_v2  ;;  %v3429_v33 = vld [vmem:[%s7217_s3 + $0x240] sm:$0xff] }
 0x667   : > { %4123 = vmatprep.mubr.msk.f32.mxu1 %vm1054_vm8, %v2750_v55  ;;  %v3430_v55 = vld [vmem:[%s7217_s3 + $0x250] sm:$0xff] }
 0x668   : > { %v5271_v9 = vpack.c.bf16 %v3430_v55, %v3429_v33  ;;  %v3420_v33 = vld [vmem:[%s7217_s3 + $0x1b0] sm:$0xff] }
 0x669   : > { %v2680_v59 = vpop.permute.xlu0 %2679 }
 0x66a   : > { %v2740_v8 = vsel %vm1054_vm8, %v2735_v13, %v2680_v59 }
 0x66b   : > { %2855 = vmatmul.mubr.f32.gmra.mrb[108].mxu1 %v2740_v8 }
 0x66c   : > { %5009 = vmatprep.mubr.msk.f32.mxu1 %vm5507_vm0, %v5508_v1 }
 0x72b   : > { %v2836_v54 = vpop.f32.mrb[100].mxu1 }
 0x72c   : > { %v2838_v40 = vpop.f32.mrb[101].mxu1  ;;  %v2837_v42 = vadd.f32 %v4118_v35, %v2836_v54 }
 0x72e   : > { %v3365_v17 = vsel %vm1024_vm3, %v2837_v42, 0.0 }
 0x72f   : > { %v2841_v15 = vpop.f32.mrb[102].mxu1 }
 0x730   : > { %v2842_v24 = vadd.f32 %v4118_v35, %v2841_v15  ;;  %v2843_v25 = vpop.f32.mrb[103].mxu1 }
 0x732   : > { %v3366_v44 = vsel %vm1024_vm3, %v2842_v24, 0.0 }
 0x733   : > { %v3367_v45 = vadd.f32 %v3366_v44, %v3365_v17  ;;  %v2846_v43 = vpop.f32.mrb[104].mxu1 }
 0x734   : > { %v2847_v53 = vadd.f32 %v4118_v35, %v2846_v43  ;;  %v2848_v50 = vpop.f32.mrb[105].mxu1 }
 0x736   : > { %v3368_v28 = vsel %vm2962_vm10, %v2847_v53, 0.0  ;;  %v2863_v39 = vrot.slane %v2847_v53, 4 }
 0x737   : > { %v3369_v61 = vadd.f32 %v3368_v28, %v3367_v45  ;;  %v2851_v47 = vpop.f32.mrb[106].mxu1 }
 0x738   : > { %v2852_v63 = vadd.f32 %v4118_v35, %v2851_v47  ;;  %v2853_v6 = vpop.f32.mrb[107].mxu1 }
 0x739   : > { %v3370_v10 = vrot.slane %v3369_v61, 4 }
 0x73a   : > { %v2864_v51 = vrot.slane %v2852_v63, 4 }
 0x73b   : > { %v3371_v41 = vadd.f32 %v3370_v10, %v3369_v61  ;;  %v3413_v10 = vld [vmem:[%s7217_s3 + $0x140] sm:$0xff] }
 0x73c   : > { %v2865_v11 = vsel %vm255_vm1, %v2863_v39, %v2864_v51 }
 0x73d   : > { %v3379_v56 = vsel %vm1024_vm3, %v2865_v11, 0.0  ;;  %v3372_v22 = vrot.slane %v3371_v41, 2 }
 0x73e   : > { %v2856_v62 = vpop.f32.mrb[108].mxu1 }
 0x73f   : > { %v2857_v49 = vadd.f32 %v4118_v35, %v2856_v62  ;;  %v2858_v60 = vpop.f32.mrb[109].mxu1  ;;  %v3373_v4 = vadd.f32 %v3372_v22, %v3371_v41 }
 0x741   : > { %v2866_v38 = vrot.slane %v2857_v49, 4  ;;  %v3374_v52 = vrot.slane %v3373_v4, 1  ;;  %v3414_v49 = vld [vmem:[%s7217_s3 + $0x150] sm:$0xff] }
 0x742   : > { %v5276_v60 = vpack.c.bf16 %v3414_v49, %v3413_v10  ;;  %v3410_v10 = vld [vmem:[%s7217_s3 + $0x110] sm:$0xff]  ;;  %v3427_v49 = vld [vmem:[%s7217_s3 + $0x220] sm:$0xff] }
 0x743   : > { %v2867_v18 = vsel %vm255_vm1, %v2864_v51, %v2866_v38  ;;  %v3375_v32 = vadd.f32 %v3374_v52, %v3373_v4  ;;  %v3431_v51 = vld [vmem:[%s7217_s3 + $0x260] sm:$0xff]  ;;  %v3418_v52 = vld [vmem:[%s7217_s3 + $0x190] sm:$0xff] }
 0x744   : > { %v5259_v19 = vpack.c.bf16 %v2867_v18, %v2865_v11  ;;  %v3380_v20 = vsel %vm1024_vm3, %v2867_v18, 0.0  ;;  %v3432_v11 = vld [vmem:[%s7217_s3 + $0x270] sm:$0xff]  ;;  %v3397_v18 = vld [vmem:[%s7217_s3 + $0x40] sm:$0xff] }
 0x745   : > { %v3381_v21 = vadd.f32 %v3380_v20, %v3379_v56  ;;  %v6815_v37 = vmul.f32 0.05, %v3375_v32  ;;  %v5274_v62 = vpack.c.bf16 %v3432_v11, %v3431_v51  ;;  %v3415_v20 = vld [vmem:[%s7217_s3 + $0x160] sm:$0xff] }
 0x746   : > { %5261 = vmatpush3.bf16.xpose.msk.msra.mxu0 %vm5260_vm11, %v5259_v19 }
 0x747   : > { %v3382_v23 = vrot.slane %v3381_v21, 4  ;;  %5263 = vmatprep.subr.bf16.mxu0 %v5262_v3  ;;  %v3398_v3 = vld [vmem:[%s7217_s3 + $0x50] sm:$0xff] }
 0x748   : > { %v5278_v7 = vpack.c.bf16 %v3398_v3, %v3397_v18  ;;  %v3411_v18 = vld [vmem:[%s7217_s3 + $0x120] sm:$0xff]  ;;  %v3412_v3 = vld [vmem:[%s7217_s3 + $0x130] sm:$0xff] }
 0x749   : > { %v3383_v26 = vadd.f32 %v3382_v23, %v3381_v21  ;;  %v3416_v21 = vld [vmem:[%s7217_s3 + $0x170] sm:$0xff] }
 0x74a   : > { %v5280_v58 = vpack.c.bf16 %v3416_v21, %v3415_v20 }
 0x74b   : > { %v3384_v29 = vrot.slane %v3383_v26, 2 }
 0x74d   : > { %4982 = vmatmul.mubr.msk.f32.vlgmr.msra.gmra.mrb[110].mxu0 %vm1024_vm3, %v2837_v42  ;;  %v3385_v31 = vadd.f32 %v3384_v29, %v3383_v26  ;;  %v3400_v26 = vld [vmem:[%s7217_s3 + $0x70] sm:$0xff] }
 0x74e   : > { %4984 = vmatprep.mubr.msk.f32.mxu0 %vm5507_vm0, %v5508_v1  ;;  %5265 = vmatpush1.bf16.msra.mxu0 %v5264_v27 }
 0x74f   : > { %5267 = vmatprep.subr.bf16.mxu0 %v5266_v30  ;;  %v3386_v34 = vrot.slane %v3385_v31, 1  ;;  %v3417_v30 = vld [vmem:[%s7217_s3 + $0x180] sm:$0xff] }
 0x750   : > { %v5284_v57 = vpack.c.bf16 %v3418_v52, %v3417_v30 }
 0x751   : > { %4985 = vmatmul.mubr.msk.f32.gmra.mrb[112].mxu0 %vm1024_vm3, %v2842_v24  ;;  %v3387_v5 = vadd.f32 %v3386_v34, %v3385_v31  ;;  %v5282_v31 = vpack.c.bf16 %v3400_v26, %v3399_v48 }
 0x752   : > { %4987 = vmatprep.mubr.msk.f32.mxu0 %vm5507_vm0, %v5508_v1 }
 0x753   : > { %v3388_v2 = vmul.f32 0.0625, %v3387_v5 }
 0x755   : > { %4988 = vmatmul.mubr.msk.f32.gmra.mrb[114].mxu0 %vm1024_vm3, %v2847_v53 }
 0x756   : > { %3509 = vmatprep.mubr.f32.mxu0 %v5508_v1 }
 0x759   : > { %4177 = vmatmul.mubr.msk.f32.vlgmr.msra.gmra.mrb[116].mxu0 %vm1024_vm3, %v6815_v37 }
 0x75a   : > { %5269 = vmatpush1.bf16.msra.mxu0 %v5268_v36  ;;  %3583 = vmatprep.mubr.f32.mxu0 %v5508_v1  ;;  %v3402_v36 = vld [vmem:[%s7217_s3 + $0x90] sm:$0xff] }
 0x75b   : > { %5270 = vmatprep.subr.bf16.mxu0 %v5506_v0 }
 0x75d   : > { %4178 = vmatmul.mubr.msk.f32.vlgmr.msra.gmra.mrb[118].mxu0 %vm1024_vm3, %v3388_v2 }
 0x75e   : > { %4998 = vmatprep.mubr.msk.f32.mxu0 %vm5507_vm0, %v5508_v1  ;;  %5272 = vmatpush3.bf16.msra.mxu0 %v5271_v9 }
 0x75f   : > { %5273 = vmatprep.subr.bf16.mxu0 %v5506_v0 }
 0x762   : > { %5275 = vmatpush3.bf16.msra.mxu0 %v5274_v62  ;;  %v3409_v62 = vld [vmem:[%s7217_s3 + $0x100] sm:$0xff] }
 0x763   : > { %5277 = vmatprep.subr.bf16.mxu0 %v5276_v60  ;;  %v3428_v60 = vld [vmem:[%s7217_s3 + $0x230] sm:$0xff] }
 0x820   : > { %v6831_v13 = vpop.f32.mrb[110].mxu0 }
 0x821   : > { %v4983_v59 = vpop.f32.mrb[111].mxu0  ;;  %v2960_v35 = vsel %vm1024_vm3, %v6831_v13, inf  ;;  %v2976_v54 = vsel %vm1024_vm3, %v6831_v13, -inf }
 0x822   : > { %v5286_v59 = vpack.c.bf16 %v3402_v36, %v3401_v12 }
 0x824   : > { %v6833_v8 = vpop.f32.mrb[112].mxu0 }
 0x825   : > { %v2961_v40 = vsel %vm1024_vm3, %v6833_v8, inf  ;;  %v2977_v42 = vsel %vm1024_vm3, %v6833_v8, -inf  ;;  %v4986_v15 = vpop.f32.mrb[113].mxu0 }
 0x826   : > { %v2979_v24 = vmax.f32 %v2976_v54, %v2977_v42  ;;  %v2964_v25 = vmin.f32 %v2960_v35, %v2961_v40  ;;  %v3403_v54 = vld [vmem:[%s7217_s3 + $0xa0] sm:$0xff]  ;;  %v3404_v40 = vld [vmem:[%s7217_s3 + $0xb0] sm:$0xff] }
 0x827   : > { %v3421_v42 = vld [vmem:[%s7217_s3 + $0x1c0] sm:$0xff]  ;;  %v3422_v15 = vld [vmem:[%s7217_s3 + $0x1d0] sm:$0xff] }
 0x828   : > { %v6843_v17 = vpop.f32.mrb[114].mxu0 }
 0x829   : > { %v4989_v44 = vpop.f32.mrb[115].mxu0  ;;  %v2978_v45 = vsel %vm2962_vm10, %v6843_v17, -inf  ;;  %v2963_v43 = vsel %vm2962_vm10, %v6843_v17, inf }
 0x82a   : > { %v2980_v53 = vmax.f32 %v2979_v24, %v2978_v45  ;;  %v2965_v50 = vmin.f32 %v2964_v25, %v2963_v43  ;;  %v5290_v24 = vpack.c.bf16 %v3404_v40, %v3403_v54  ;;  %v5292_v25 = vpack.c.bf16 %v3422_v15, %v3421_v42  ;;  %v3405_v44 = vld [vmem:[%s7217_s3 + $0xc0] sm:$0xff]  ;;  %v3406_v45 = vld [vmem:[%s7217_s3 + $0xd0] sm:$0xff] }
 0x82b   : > { %v3423_v43 = vld [vmem:[%s7217_s3 + $0x1e0] sm:$0xff]  ;;  %v5525_v54 = vmov 10   ;;  %v5526_v40 = vmov 11   ;;  %v5527_v42 = vmov 12   ;;  %v5528_v15 = vmov 13  }
 0x82c   : > { %2981 = vmax.xlane.f32.xlu0 %v2980_v53  ;;  %2966 = vmin.xlane.f32.xlu1 %v2965_v50  ;;  %v3511_v28 = vpop.f32.mrb[116].mxu0  ;;  %v3424_v53 = vld [vmem:[%s7217_s3 + $0x1f0] sm:$0xff]  ;;  %v5294_v50 = vpack.c.bf16 %v3406_v45, %v3405_v44 }
 0x82d   : > { %v3513_v61 = vpop.f32.mrb[117].mxu0 }
 0x830   : > { %v3585_v47 = vpop.f32.mrb[118].mxu0 }
 0x831   : > { %v6849_v63 = vmul.f32 %v3585_v47, %v3511_v28  ;;  %v3587_v6 = vpop.f32.mrb[119].mxu0  ;;  %v5296_v28 = vpack.c.bf16 %v3424_v53, %v3423_v43  ;;  %v3408_v47 = vld [vmem:[%s7217_s3 + $0xf0] sm:$0xff]  ;;  %v3015_v53 = vlaneseq }
 0x832   : > { %v3591_v39 = vmul.f32 %v3587_v6, %v3513_v61  ;;  %v3407_v61 = vld [vmem:[%s7217_s3 + $0xe0] sm:$0xff] }
 0x833   : > { %v3425_v6 = vld [vmem:[%s7217_s3 + $0x200] sm:$0xff]  ;;  %v5298_v51 = vpack.c.bf16 %v3408_v47, %v3407_v61 }
 0x842   : > { %3592 = vrot.lane.b32.xlu0 %v3388_v2, %s5509_s25  ;;  %v3419_v2 = vld [vmem:[%s7217_s3 + $0x1a0] sm:$0xff] }
 0x843   : > { %v5288_v35 = vpack.c.bf16 %v3420_v33, %v3419_v2  ;;  %v5517_v2 = vmov 2   ;;  %v5518_v33 = vmov 3  }
 0x8b9   : > { %v2982_v38 = vpop.xlane.xlu0 %2981  ;;  %v2967_v41 = vpop.xlane.xlu1 %2966 }
 0x8ba   : > { %v2983_v56 = vrot.slane %v2982_v38, 4  ;;  %v2968_v19 = vrot.slane %v2967_v41, 4 }
 0x8bc   : > { %v2984_v22 = vmax.f32 %v2982_v38, %v2983_v56  ;;  %v2969_v23 = vmin.f32 %v2967_v41, %v2968_v19  ;;  %v5302_v38 = vpack.c.bf16 %v3410_v10, %v3409_v62  ;;  %v5304_v41 = vpack.c.bf16 %v3428_v60, %v3427_v49 }
 0x8bd   : > { %v3593_v46 = vpop.permute.xlu0 %3592  ;;  %v5306_v56 = vpack.c.bf16 %v3412_v3, %v3411_v18 }
 0x8be   : > { %v2985_v27 = vrot.slane %v2984_v22, 2  ;;  %v2970_v4 = vrot.slane %v2969_v23, 2  ;;  %v3595_v29 = vsel %vm1024_vm3, %v6815_v37, %v3593_v46 }
 0x8bf   : > { %4999 = vmatmul.mubr.msk.f32.vlgmr.msra.gmra.mrb[120].mxu0 %vm1030_vm4, %v3595_v29 }
 0x8c0   : > { %5279 = vmatpush3.bf16.msra.mxu0 %v5278_v7  ;;  %3733 = vmatprep.mubr.f32.mxu0 %v3591_v39  ;;  %v2971_v32 = vmin.f32 %v2969_v23, %v2970_v4  ;;  %v2986_v34 = vmax.f32 %v2984_v22, %v2985_v27  ;;  %v3426_v39 = vld [vmem:[%s7217_s3 + $0x210] sm:$0xff] }
 0x8c1   : > { %5281 = vmatprep.subr.bf16.mxu0 %v5280_v58  ;;  %v5300_v11 = vpack.c.bf16 %v3426_v39, %v3425_v6 }
 0x8c2   : > { %v2972_v37 = vrot.slane %v2971_v32, 1  ;;  %v2987_v5 = vrot.slane %v2986_v34, 1 }
 0x8c4   : > { %5283 = vmatpush3.bf16.msra.mxu0 %v5282_v31  ;;  %v2973_v55 = vmin.f32 %v2971_v32, %v2972_v37  ;;  %v2988_v9 = vmax.f32 %v2986_v34, %v2987_v5 }
 0x8c5   : > { %5285 = vmatprep.subr.bf16.mxu0 %v5284_v57 }
 0x8c6   : > { %5319 = vpush %v2973_v55  ;;  %v5519_v55 = vmov 4  }
 0x8c7   : > { %5321 = vpush %v2988_v9  ;;  %v5521_v9 = vmov 6  }
 0x8c8   : > { %5287 = vmatpush3.bf16.msra.mxu0 %v5286_v59  ;;  %v5523_v59 = vmov 8  }
 0x8c9   : > { %5289 = vmatprep.subr.bf16.mxu0 %v5288_v35  ;;  %v5524_v35 = vmov 9  }
 0x8cc   : > { %5291 = vmatpush3.bf16.msra.mxu0 %v5290_v24  ;;  %v5529_v24 = vmov 14  }
 0x8cd   : > { %5293 = vmatprep.subr.bf16.mxu0 %v5292_v25  ;;  %v5530_v25 = vmov 15  }
 0x8d0   : > { %5295 = vmatpush3.bf16.msra.mxu0 %v5294_v50 }
 0x8d1   : > { %5297 = vmatprep.subr.bf16.mxu0 %v5296_v28  ;;  %v7017_v28 = vand.u32 127, %v3015_v53 }
 0x8d4   : > { %5299 = vmatpush3.bf16.msra.mxu0 %v5298_v51 }
 0x8d5   : > { %5301 = vmatprep.subr.bf16.mxu0 %v5300_v11 }
 0x8d8   : > { %5303 = vmatpush3.bf16.msra.mxu0 %v5302_v38 }
 0x8d9   : > { %5305 = vmatprep.subr.bf16.mxu0 %v5304_v41 }
 0x8dc   : > { %5307 = vmatpush3.bf16.msra.mxu0 %v5306_v56 }
 0x8df   : > { %3734 = vmatmul.mubr.f32.vlgmr.msra.gmra.mrb[122].mxu0 %v6849_v63 }
 0x8f7   : > { %s5320_s7 = spop %5319 }
 0x8f8   : > { %v2975_v19 = vstv %s5320_s7  ;;  %s5322_s8 = spop %5321 }
 0x8f9   : > { %v2990_v20 = vstv %s5322_s8  ;;  %v2996_v7 = vsub.f32 %v6831_v13, %v2975_v19  ;;  %v2997_v46 = vsub.f32 %v6833_v8, %v2975_v19  ;;  %v2998_v58 = vsub.f32 %v6843_v17, %v2975_v19 }
 0x8fa   : > { %v2991_v21 = vsub.f32 %v2990_v20, %v2975_v19 }
 0x8fc   : > { %v2993_v22 = vmul.f32 0.0625, %v2991_v21 }
 0x8fe   : > { %vm2994_vm12 = vcmp.gt.f32.partialorder %v2993_v22, 0.0 }
 0x8ff   : > { %v2995_v23 = vsel %vm2994_vm12, %v2993_v22, 1.0 }
 0x900   : > { %5460 = vrcp.f32 %v2995_v23 }
 0x90a   : > { %v5461_v48 = vpop.eup %5460 }
 0x90b   : > { %v3000_v26 = vmul.f32 %v5461_v48, %v2996_v7  ;;  %v3001_v27 = vmul.f32 %v5461_v48, %v2997_v46  ;;  %v3002_v4 = vmul.f32 %v5461_v48, %v2998_v58 }
 0x90d   : > { %v3003_v63 = vfloor.f32 %v3000_v26  ;;  %v3004_v29 = vfloor.f32 %v3001_v27  ;;  %v3005_v30 = vfloor.f32 %v3002_v4 }
 0x90f   : > { %v3006_v52 = vmax.f32 %v3003_v63, 0.0  ;;  %v3007_v31 = vmax.f32 %v3004_v29, 0.0  ;;  %v3008_v32 = vmax.f32 %v3005_v30, 0.0  ;;  %v3434_v29 = vld [vmem:[%s7217_s3 + $0x290] sm:$0xff]  ;;  %v3435_v30 = vld [vmem:[%s7217_s3 + $0x2a0] sm:$0xff] }
 0x911   : > { %v3009_v34 = vmin.f32 %v3006_v52, 15.0  ;;  %v3010_v57 = vmin.f32 %v3007_v31, 15.0  ;;  %v3011_v12 = vmin.f32 %v3008_v32, 15.0  ;;  %v3436_v52 = vld [vmem:[%s7217_s3 + $0x2b0] sm:$0xff]  ;;  %v5309_v32 = vpack.c.bf16 %v3435_v30, %v3434_v29 }
 0x913   : > { %v5323_v36 = vtrunc.f32 %v3009_v34  ;;  %v5325_v13 = vtrunc.f32 %v3010_v57  ;;  %v5327_v8 = vtrunc.f32 %v3011_v12  ;;  %v3437_v34 = vld [vmem:[%s7217_s3 + $0x2c0] sm:$0xff]  ;;  %5310 = vmatpush3.bf16.msra.mxu1 %v5309_v32 }
 0x914   : > { %v5312_v12 = vpack.c.bf16 %v3437_v34, %v3436_v52  ;;  %5311 = vmatprep.subr.bf16.mxu1 %v5506_v0 }
 0x915   : > { %v6963_v37 = vcvt.f32.s32 %v5323_v36  ;;  %v6967_v17 = vcvt.f32.s32 %v5325_v13  ;;  %v6969_v5 = vcvt.f32.s32 %v5327_v8 }
 0x917   : > { %3039 = vperm.xlu0 %5429, %v6963_v37   ;;  %3018 = vperm.xlu1 %5428, %v6963_v37  }
 0x918   : > { %5313 = vmatpush3.bf16.msra.mxu1 %v5312_v12 }
 0x919   : > { %5314 = vmatprep.subr.bf16.mxu1 %v5506_v0 }
 0x91b   : > { %3045 = vperm.xlu0 %5429, %v6969_v5   ;;  %3021 = vperm.xlu1 %5428, %v6967_v17  }
 0x91f   : > { %5433 = vset.pattern.permute.xlu0 %v5517_v2  ;;  %5430 = vset.pattern.permute.xlu1 %v5515_v14  ;;  %v5520_v14 = vmov 5  }
 0x920   : > { %3063 = vperm.xlu0 %5433, %v6967_v17   ;;  %3042 = vperm.xlu1 %5430, %v6967_v17  }
 0x924   : > { %5435 = vset.pattern.permute.xlu0 %v5518_v33  ;;  %5431 = vset.pattern.permute.xlu1 %v5516_v16  ;;  %v5522_v16 = vmov 7  }
 0x925   : > { %3084 = vperm.xlu0 %5435, %v6967_v17   ;;  %3024 = vperm.xlu1 %5431, %v6969_v5  }
 0x929   : > { %5437 = vset.pattern.permute.xlu0 %v5519_v55  ;;  %5432 = vset.pattern.permute.xlu1 %v5517_v2 }
 0x92a   : > { %3105 = vperm.xlu0 %5437, %v6967_v17   ;;  %3060 = vperm.xlu1 %5432, %v6963_v37  }
 0x92e   : > { %5439 = vset.pattern.permute.xlu0 %v5520_v14  ;;  %3066 = vperm.xlu1 %5432, %v6969_v5  }
 0x92f   : > { %3126 = vperm.xlu0 %5439, %v6967_v17  }
 0x932   : > { %5434 = vset.pattern.permute.xlu1 %v5518_v33 }
 0x933   : > { %5441 = vset.pattern.permute.xlu0 %v5521_v9  ;;  %3081 = vperm.xlu1 %5434, %v6963_v37  }
 0x934   : > { %3147 = vperm.xlu0 %5441, %v6967_v17  }
 0x937   : > { %3087 = vperm.xlu1 %5434, %v6969_v5  }
 0x938   : > { %5443 = vset.pattern.permute.xlu0 %v5522_v16 }
 0x939   : > { %3168 = vperm.xlu0 %5443, %v6967_v17  }
 0x93b   : > { %5436 = vset.pattern.permute.xlu1 %v5519_v55 }
 0x93c   : > { %3102 = vperm.xlu1 %5436, %v6963_v37  }
 0x93d   : > { %5445 = vset.pattern.permute.xlu0 %v5523_v59 }
 0x93e   : > { %3189 = vperm.xlu0 %5445, %v6967_v17  }
 0x940   : > { %3108 = vperm.xlu1 %5436, %v6969_v5  }
 0x942   : > { %5447 = vset.pattern.permute.xlu0 %v5524_v35 }
 0x943   : > { %3210 = vperm.xlu0 %5447, %v6967_v17  }
 0x944   : > { %5438 = vset.pattern.permute.xlu1 %v5520_v14 }
 0x945   : > { %3123 = vperm.xlu1 %5438, %v6963_v37  }
 0x947   : > { %5449 = vset.pattern.permute.xlu0 %v5525_v54 }
 0x948   : > { %3231 = vperm.xlu0 %5449, %v6967_v17  }
 0x949   : > { %3129 = vperm.xlu1 %5438, %v6969_v5  }
 0x94c   : > { %5451 = vset.pattern.permute.xlu0 %v5526_v40 }
 0x94d   : > { %3252 = vperm.xlu0 %5451, %v6967_v17   ;;  %5440 = vset.pattern.permute.xlu1 %v5521_v9 }
 0x94e   : > { %3144 = vperm.xlu1 %5440, %v6963_v37  }
 0x951   : > { %5453 = vset.pattern.permute.xlu0 %v5527_v42 }
 0x952   : > { %3273 = vperm.xlu0 %5453, %v6967_v17   ;;  %3150 = vperm.xlu1 %5440, %v6969_v5  }
 0x956   : > { %5455 = vset.pattern.permute.xlu0 %v5528_v15  ;;  %5442 = vset.pattern.permute.xlu1 %v5522_v16 }
 0x957   : > { %3294 = vperm.xlu0 %5455, %v6967_v17   ;;  %3165 = vperm.xlu1 %5442, %v6963_v37  }
 0x95b   : > { %5457 = vset.pattern.permute.xlu0 %v5529_v24  ;;  %3171 = vperm.xlu1 %5442, %v6969_v5  }
 0x95c   : > { %3315 = vperm.xlu0 %5457, %v6967_v17  }
 0x95f   : > { %5444 = vset.pattern.permute.xlu1 %v5523_v59 }
 0x960   : > { %5459 = vset.pattern.permute.xlu0 %v5530_v25  ;;  %3186 = vperm.xlu1 %5444, %v6963_v37  }
 0x961   : > { %3336 = vperm.xlu0 %5459, %v6967_v17  }
 0x964   : > { %3192 = vperm.xlu1 %5444, %v6969_v5  }
 0x968   : > { %5446 = vset.pattern.permute.xlu1 %v5524_v35 }
 0x969   : > { %3207 = vperm.xlu1 %5446, %v6963_v37  }
 0x96d   : > { %3213 = vperm.xlu1 %5446, %v6969_v5  }
 0x971   : > { %5448 = vset.pattern.permute.xlu1 %v5525_v54 }
 0x972   : > { %3228 = vperm.xlu1 %5448, %v6963_v37  }
 0x976   : > { %3234 = vperm.xlu1 %5448, %v6969_v5  }
 0x97a   : > { %5450 = vset.pattern.permute.xlu1 %v5526_v40 }
 0x97b   : > { %3249 = vperm.xlu1 %5450, %v6963_v37  }
 0x97f   : > { %3255 = vperm.xlu1 %5450, %v6969_v5  }
 0x983   : > { %5452 = vset.pattern.permute.xlu1 %v5527_v42 }
 0x984   : > { %3270 = vperm.xlu1 %5452, %v6963_v37  }
 0x988   : > { %3276 = vperm.xlu1 %5452, %v6969_v5  }
 0x98c   : > { %5454 = vset.pattern.permute.xlu1 %v5528_v15 }
 0x98d   : > { %3291 = vperm.xlu1 %5454, %v6963_v37  }
 0x991   : > { %3297 = vperm.xlu1 %5454, %v6969_v5  }
 0x992   : > { %v3665_v44 = vpop.f32.mrb[120].mxu0 }
 0x993   : > { %v5000_v45 = vpop.f32.mrb[121].mxu0 }
 0x995   : > { %5456 = vset.pattern.permute.xlu1 %v5529_v24 }
 0x996   : > { %3312 = vperm.xlu1 %5456, %v6963_v37   ;;  %v3019_v43 = vpop.permute.xlu1 %3018  ;;  %v3040_v47 = vpop.permute.xlu0 %3039 }
 0x997   : > { %vm3047_vm15 = vcmp.eq.s32.totalorder %v3040_v47, %v7017_v28  ;;  %vm3026_vm1 = vcmp.eq.s32.totalorder %v3019_v43, %v7017_v28 }
 0x998   : > { %v4132_v62 = vsel %vm3047_vm15, 1.0, %v5508_v1  ;;  %v4129_v10 = vsel %vm3026_vm1, 1.0, %v5508_v1 }
 0x999   : > { %v3056_v38 = vadd.f32 %v4132_v62, %v4129_v10 }
 0x99a   : > { %3318 = vperm.xlu1 %5456, %v6969_v5   ;;  %v3022_v50 = vpop.permute.xlu1 %3021  ;;  %v3046_v49 = vpop.permute.xlu0 %3045 }
 0x99b   : > { %vm3027_vm13 = vcmp.eq.s32.totalorder %v3022_v50, %v7017_v28  ;;  %vm3049_vm5 = vcmp.eq.s32.totalorder %v3046_v49, %v7017_v28 }
 0x99c   : > { %v4130_v6 = vsel %vm3027_vm13, 1.0, %v5508_v1  ;;  %v4134_v56 = vsel %vm3049_vm5, 1.0, %v5508_v1 }
 0x99e   : > { %5458 = vset.pattern.permute.xlu1 %v5530_v25 }
 0x99f   : > { %3333 = vperm.xlu1 %5458, %v6963_v37   ;;  %v3043_v61 = vpop.permute.xlu1 %3042  ;;  %v3064_v2 = vpop.permute.xlu0 %3063 }
 0x9a0   : > { %vm3048_vm14 = vcmp.eq.s32.totalorder %v3043_v61, %v7017_v28  ;;  %vm3069_vm13 = vcmp.eq.s32.totalorder %v3064_v2, %v7017_v28 }
 0x9a1   : > { %v4133_v39 = vsel %vm3048_vm14, 1.0, %v5508_v1 }
 0x9a2   : > { %v7024_v51 = vadd.f32 %v4133_v39, %v4130_v6  ;;  %v4136_v39 = vsel %vm3069_vm13, 1.0, %v5508_v1 }
 0x9a3   : > { %3339 = vperm.xlu1 %5458, %v6969_v5  }
 0x9a4   : > { %v3025_v11 = vpop.permute.xlu1 %3024  ;;  %v3085_v55 = vpop.permute.xlu0 %3084 }
 0x9a5   : > { %vm3028_vm2 = vcmp.eq.s32.totalorder %v3025_v11, %v7017_v28  ;;  %vm3090_vm14 = vcmp.eq.s32.totalorder %v3085_v55, %v7017_v28  ;;  %v3078_v11 = vadd.f32 %v4136_v39, %v7024_v51 }
 0x9a6   : > { %v4131_v41 = vsel %vm3028_vm2, 1.0, %v5508_v1  ;;  %v4139_v62 = vsel %vm3090_vm14, 1.0, %v5508_v1 }
 0x9a7   : > { %v3058_v20 = vadd.f32 %v4134_v56, %v4131_v41 }
 0x9a9   : > { %v3061_v60 = vpop.permute.xlu1 %3060  ;;  %v3106_v16 = vpop.permute.xlu0 %3105 }
 0x9aa   : > { %vm3068_vm6 = vcmp.eq.s32.totalorder %v3061_v60, %v7017_v28  ;;  %vm3111_vm15 = vcmp.eq.s32.totalorder %v3106_v16, %v7017_v28 }
 0x9ab   : > { %v4135_v18 = vsel %vm3068_vm6, 1.0, %v5508_v1  ;;  %v4142_v10 = vsel %vm3111_vm15, 1.0, %v5508_v1 }
 0x9ac   : > { %v3077_v3 = vadd.f32 %v4135_v18, %v3056_v38  ;;  %v3099_v38 = vadd.f32 %v4139_v62, %v3078_v11 }
 0x9ad   : > { %v3067_v19 = vpop.permute.xlu1 %3066 }
 0x9ae   : > { %vm3070_vm7 = vcmp.eq.s32.totalorder %v3067_v19, %v7017_v28  ;;  %v3127_v35 = vpop.permute.xlu0 %3126  ;;  %v3120_v18 = vadd.f32 %v4142_v10, %v3099_v38 }
 0x9af   : > { %v4137_v21 = vsel %vm3070_vm7, 1.0, %v5508_v1  ;;  %vm3132_vm1 = vcmp.eq.s32.totalorder %v3127_v35, %v7017_v28 }
 0x9b0   : > { %v3079_v22 = vadd.f32 %v4137_v21, %v3058_v20  ;;  %v4145_v41 = vsel %vm3132_vm1, 1.0, %v5508_v1 }
 0x9b1   : > { %v3141_v56 = vadd.f32 %v4145_v41, %v3120_v18 }
 0x9b2   : > { %v3082_v23 = vpop.permute.xlu1 %3081  ;;  %v4473_v7 = vpop.f32.mrb[122].mxu0 }
 0x9b3   : > { %vm3089_vm8 = vcmp.eq.s32.totalorder %v3082_v23, %v7017_v28  ;;  %v4474_v46 = vpop.f32.mrb[123].mxu0  ;;  %v3148_v40 = vpop.permute.xlu0 %3147 }
 0x9b4   : > { %v4138_v58 = vsel %vm3089_vm8, 1.0, %v5508_v1  ;;  %v4475_v48 = vadd.f32 %v4474_v46, %v4473_v7  ;;  %vm3153_vm2 = vcmp.eq.s32.totalorder %v3148_v40, %v7017_v28 }
 0x9b5   : > { %v3098_v26 = vadd.f32 %v4138_v58, %v3077_v3  ;;  %v4148_v51 = vsel %vm3153_vm2, 1.0, %v5508_v1 }
 0x9b6   : > { %v7041_v27 = vadd.f32 %v4475_v48, %v3665_v44  ;;  %v3088_v4 = vpop.permute.xlu1 %3087  ;;  %v3162_v21 = vadd.f32 %v4148_v51, %v3141_v56 }
 0x9b7   : > { %vm3091_vm9 = vcmp.eq.s32.totalorder %v3088_v4, %v7017_v28 }
 0x9b8   : > { %v4140_v63 = vsel %vm3091_vm9, 1.0, %v5508_v1  ;;  %v3169_v15 = vpop.permute.xlu0 %3168 }
 0x9b9   : > { %v3100_v31 = vadd.f32 %v4140_v63, %v3079_v22  ;;  %vm3174_vm5 = vcmp.eq.s32.totalorder %v3169_v15, %v7017_v28 }
 0x9ba   : > { %v4151_v19 = vsel %vm3174_vm5, 1.0, %v5508_v1 }
 0x9bb   : > { %v3103_v57 = vpop.permute.xlu1 %3102  ;;  %v3183_v7 = vadd.f32 %v4151_v19, %v3162_v21 }
 0x9bc   : > { %vm3110_vm11 = vcmp.eq.s32.totalorder %v3103_v57, %v7017_v28 }
 0x9bd   : > { %v4141_v36 = vsel %vm3110_vm11, 1.0, %v5508_v1  ;;  %v3190_v25 = vpop.permute.xlu0 %3189 }
 0x9be   : > { %v7060_v37 = vadd.f32 %v4141_v36, %v3098_v26  ;;  %vm3195_vm7 = vcmp.eq.s32.totalorder %v3190_v25, %v7017_v28 }
 0x9bf   : > { %v3109_v13 = vpop.permute.xlu1 %3108  ;;  %v4154_v23 = vsel %vm3195_vm7, 1.0, %v5508_v1 }
 0x9c0   : > { %vm3112_vm12 = vcmp.eq.s32.totalorder %v3109_v13, %v7017_v28  ;;  %v3204_v63 = vadd.f32 %v4154_v23, %v3183_v7 }
 0x9c1   : > { %v4143_v8 = vsel %vm3112_vm12, 1.0, %v5508_v1 }
 0x9c2   : > { %v7065_v17 = vadd.f32 %v4143_v8, %v3100_v31  ;;  %v3211_v45 = vpop.permute.xlu0 %3210 }
 0x9c3   : > { %vm3216_vm8 = vcmp.eq.s32.totalorder %v3211_v45, %v7017_v28 }
 0x9c4   : > { %v3124_v5 = vpop.permute.xlu1 %3123  ;;  %v4157_v46 = vsel %vm3216_vm8, 1.0, %v5508_v1 }
 0x9c5   : > { %vm3131_vm6 = vcmp.eq.s32.totalorder %v3124_v5, %v7017_v28  ;;  %v3225_v32 = vadd.f32 %v4157_v46, %v3204_v63 }
 0x9c6   : > { %v4144_v22 = vsel %vm3131_vm6, 1.0, %v5508_v1 }
 0x9c7   : > { %v3232_v50 = vpop.permute.xlu0 %3231  ;;  %v3140_v26 = vadd.f32 %v4144_v22, %v7060_v37 }
 0x9c8   : > { %v3130_v33 = vpop.permute.xlu1 %3129  ;;  %vm3237_vm12 = vcmp.eq.s32.totalorder %v3232_v50, %v7017_v28 }
 0x9c9   : > { %vm3133_vm11 = vcmp.eq.s32.totalorder %v3130_v33, %v7017_v28  ;;  %v4160_v29 = vsel %vm3237_vm12, 1.0, %v5508_v1 }
 0x9ca   : > { %v4146_v4 = vsel %vm3133_vm11, 1.0, %v5508_v1  ;;  %v3246_v8 = vadd.f32 %v4160_v29, %v3225_v32 }
 0x9cb   : > { %v3142_v34 = vadd.f32 %v4146_v4, %v7065_v17 }
 0x9cc   : > { %v3253_v47 = vpop.permute.xlu0 %3252 }
 0x9cd   : > { %v3145_v14 = vpop.permute.xlu1 %3144  ;;  %vm3258_vm1 = vcmp.eq.s32.totalorder %v3253_v47, %v7017_v28 }
 0x9ce   : > { %vm3152_vm9 = vcmp.eq.s32.totalorder %v3145_v14, %v7017_v28  ;;  %v4163_v37 = vsel %vm3258_vm1, 1.0, %v5508_v1 }
 0x9cf   : > { %v4147_v58 = vsel %vm3152_vm9, 1.0, %v5508_v1  ;;  %v3267_v14 = vadd.f32 %v4163_v37, %v3246_v8 }
 0x9d0   : > { %v3161_v52 = vadd.f32 %v4147_v58, %v3140_v26 }
 0x9d1   : > { %v7067_v9 = vpop.permute.xlu1 %3150  ;;  %v3274_v49 = vpop.permute.xlu0 %3273 }
 0x9d2   : > { %vm3154_vm14 = vcmp.eq.s32.totalorder %v7067_v9, %v7017_v28  ;;  %vm3279_vm2 = vcmp.eq.s32.totalorder %v3274_v49, %v7017_v28 }
 0x9d3   : > { %v4149_v57 = vsel %vm3154_vm14, 1.0, %v5508_v1  ;;  %v4166_v5 = vsel %vm3279_vm2, 1.0, %v5508_v1 }
 0x9d4   : > { %v3163_v33 = vadd.f32 %v4149_v57, %v3142_v34 }
 0x9d6   : > { %v3166_v59 = vpop.permute.xlu1 %3165  ;;  %v3295_v20 = vpop.permute.xlu0 %3294 }
 0x9d7   : > { %vm3173_vm13 = vcmp.eq.s32.totalorder %v3166_v59, %v7017_v28  ;;  %vm3300_vm12 = vcmp.eq.s32.totalorder %v3295_v20, %v7017_v28 }
 0x9d8   : > { %v4150_v30 = vsel %vm3173_vm13, 1.0, %v5508_v1 }
 0x9d9   : > { %v3182_v13 = vadd.f32 %v4150_v30, %v3161_v52 }
 0x9da   : > { %v7069_v54 = vpop.permute.xlu1 %3171 }
 0x9db   : > { %vm3175_vm5 = vcmp.eq.s32.totalorder %v7069_v54, %v7017_v28  ;;  %v3316_v31 = vpop.permute.xlu0 %3315 }
 0x9dc   : > { %v4152_v2 = vsel %vm3175_vm5, 1.0, %v5508_v1 }
 0x9dd   : > { %v3184_v59 = vadd.f32 %v4152_v2, %v3163_v33  ;;  %v3439_v33 = vld [vmem:[%s7217_s3 + $0x2e0] sm:$0xff] }
 0x9df   : > { %v7071_v42 = vpop.permute.xlu1 %3186 }
 0x9e0   : > { %vm3194_vm15 = vcmp.eq.s32.totalorder %v7071_v42, %v7017_v28  ;;  %v3337_v35 = vpop.permute.xlu0 %3336  ;;  %v3288_v42 = vadd.f32 %v4166_v5, %v3267_v14 }
 0x9e1   : > { %v4153_v12 = vsel %vm3194_vm15, 1.0, %v5508_v1  ;;  %vm3321_vm15 = vcmp.eq.s32.totalorder %v3316_v31, %v7017_v28  ;;  %vm3342_vm5 = vcmp.eq.s32.totalorder %v3337_v35, %v7017_v28  ;;  %v3441_v35 = vld [vmem:[%s7217_s3 + $0x300] ss:$0 sm:$0xff] }
 0x9e2   : > { %v3203_v55 = vadd.f32 %v4153_v12, %v3182_v13  ;;  %v4172_v47 = vsel %vm3321_vm15, 1.0, %v5508_v1  ;;  %v4175_v49 = vsel %vm3342_vm5, 1.0, %v5508_v1 }
 0x9e3   : > { %v7073_v0 = vpop.permute.xlu1 %3192 }
 0x9e4   : > { %vm3196_vm7 = vcmp.eq.s32.totalorder %v7073_v0, %v7017_v28 }
 0x9e5   : > { %v4155_v9 = vsel %vm3196_vm7, 1.0, %v5508_v1 }
 0x9e8   : > { %v7075_v24 = vpop.permute.xlu1 %3207 }
 0x9e9   : > { %vm3215_vm6 = vcmp.eq.s32.totalorder %v7075_v24, %v7017_v28  ;;  %v3205_v24 = vadd.f32 %v4155_v9, %v3184_v59 }
 0x9ea   : > { %v4156_v17 = vsel %vm3215_vm6, 1.0, %v5508_v1 }
 0x9eb   : > { %v3224_v54 = vadd.f32 %v4156_v17, %v3203_v55  ;;  %v3440_v55 = vld [vmem:[%s7217_s3 + $0x2f0] sm:$0xff] }
 0x9ec   : > { %v7077_v44 = vpop.permute.xlu1 %3213  ;;  %v5315_v14 = vpack.c.bf16 %v3440_v55, %v3439_v33 }
 0x9ed   : > { %vm3217_vm9 = vcmp.eq.s32.totalorder %v7077_v44, %v7017_v28  ;;  %v4169_v44 = vsel %vm3300_vm12, 1.0, %v5508_v1 }
 0x9ee   : > { %v4158_v0 = vsel %vm3217_vm9, 1.0, %v5508_v1  ;;  %v3309_v11 = vadd.f32 %v4169_v44, %v3288_v42 }
 0x9f0   : > { %v3330_v41 = vadd.f32 %v4172_v47, %v3309_v11 }
 0x9f1   : > { %v7079_v43 = vpop.permute.xlu1 %3228 }
 0x9f2   : > { %vm3236_vm8 = vcmp.eq.s32.totalorder %v7079_v43, %v7017_v28  ;;  %v3351_v19 = vadd.f32 %v4175_v49, %v3330_v41 }
 0x9f3   : > { %v4159_v16 = vsel %vm3236_vm8, 1.0, %v5508_v1 }
 0x9f4   : > { %v3245_v25 = vadd.f32 %v4159_v16, %v3224_v54 }
 0x9f5   : > { %v7081_v53 = vpop.permute.xlu1 %3234 }
 0x9f6   : > { %vm3238_vm13 = vcmp.eq.s32.totalorder %v7081_v53, %v7017_v28  ;;  %v3226_v53 = vadd.f32 %v4158_v0, %v3205_v24 }
 0x9f7   : > { %v4161_v45 = vsel %vm3238_vm13, 1.0, %v5508_v1 }
 0x9f8   : > { %v3247_v62 = vadd.f32 %v4161_v45, %v3226_v53 }
 0x9fa   : > { %v7083_v61 = vpop.permute.xlu1 %3249 }
 0x9fb   : > { %vm3257_vm11 = vcmp.eq.s32.totalorder %v7083_v61, %v7017_v28 }
 0x9fc   : > { %v4162_v15 = vsel %vm3257_vm11, 1.0, %v5508_v1 }
 0x9fd   : > { %v3266_v50 = vadd.f32 %v4162_v15, %v3245_v25 }
 0x9fe   : > { %v7087_v6 = vpop.permute.xlu1 %3255 }
 0x9ff   : > { %vm3259_vm1 = vcmp.eq.s32.totalorder %v7087_v6, %v7017_v28 }
 0xa00   : > { %v4164_v6 = vsel %vm3259_vm1, 1.0, %v5508_v1 }
 0xa01   : > { %v3268_v18 = vadd.f32 %v4164_v6, %v3247_v62 }
 0xa03   : > { %v7095_v60 = vpop.permute.xlu1 %3270 }
 0xa04   : > { %vm3278_vm14 = vcmp.eq.s32.totalorder %v7095_v60, %v7017_v28 }
 0xa05   : > { %v4165_v43 = vsel %vm3278_vm14, 1.0, %v5508_v1 }
 0xa06   : > { %v3287_v10 = vadd.f32 %v4165_v43, %v3266_v50 }
 0xa07   : > { %v7102_v3 = vpop.permute.xlu1 %3276 }
 0xa08   : > { %vm3280_vm6 = vcmp.eq.s32.totalorder %v7102_v3, %v7017_v28 }
 0xa09   : > { %v4167_v60 = vsel %vm3280_vm6, 1.0, %v5508_v1 }
 0xa0a   : > { %v3289_v20 = vadd.f32 %v4167_v60, %v3268_v18 }
 0xa0c   : > { %v3292_v48 = vpop.permute.xlu1 %3291 }
 0xa0d   : > { %vm3299_vm2 = vcmp.eq.s32.totalorder %v3292_v48, %v7017_v28  ;;  %v3354_v48 = vsel %vm1024_vm3, %v3351_v19, 0.0 }
 0xa0e   : > { %v4168_v39 = vsel %vm3299_vm2, 1.0, %v5508_v1 }
 0xa0f   : > { %v3308_v51 = vadd.f32 %v4168_v39, %v3287_v10 }
 0xa10   : > { %v3298_v36 = vpop.permute.xlu1 %3297 }
 0xa11   : > { %vm3301_vm8 = vcmp.eq.s32.totalorder %v3298_v36, %v7017_v28 }
 0xa12   : > { %v4170_v3 = vsel %vm3301_vm8, 1.0, %v5508_v1 }
 0xa13   : > { %v3310_v7 = vadd.f32 %v4170_v3, %v3289_v20 }
 0xa15   : > { %v3313_v40 = vpop.permute.xlu1 %3312 }
 0xa16   : > { %vm3320_vm7 = vcmp.eq.s32.totalorder %v3313_v40, %v7017_v28 }
 0xa17   : > { %v4171_v38 = vsel %vm3320_vm7, 1.0, %v5508_v1 }
 0xa18   : > { %v3329_v21 = vadd.f32 %v4171_v38, %v3308_v51 }
 0xa19   : > { %v3319_v61 = vpop.permute.xlu1 %3318 }
 0xa1a   : > { %vm3322_vm9 = vcmp.eq.s32.totalorder %v3319_v61, %v7017_v28 }
 0xa1b   : > { %v4173_v22 = vsel %vm3322_vm9, 1.0, %v5508_v1 }
 0xa1c   : > { %v3331_v26 = vadd.f32 %v4173_v22, %v3310_v7 }
 0xa1e   : > { %v3334_v56 = vpop.permute.xlu1 %3333 }
 0xa1f   : > { %vm3341_vm11 = vcmp.eq.s32.totalorder %v3334_v56, %v7017_v28 }
 0xa20   : > { %v4174_v23 = vsel %vm3341_vm11, 1.0, %v5508_v1 }
 0xa21   : > { %v3350_v46 = vadd.f32 %v4174_v23, %v3329_v21 }
 0xa22   : > { %v3340_v58 = vpop.permute.xlu1 %3339 }
 0xa23   : > { %v3353_v4 = vsel %vm1024_vm3, %v3350_v46, 0.0  ;;  %vm3343_vm12 = vcmp.eq.s32.totalorder %v3340_v58, %v7017_v28  ;;  %v3433_v28 = vld [vmem:[%s7217_s3 + $0x280] ss:$0 sm:$0xff] }
 0xa24   : > { %v3355_v63 = vadd.f32 %v3354_v48, %v3353_v4  ;;  %v4176_v29 = vsel %vm3343_vm12, 1.0, %v5508_v1  ;;  %v3739_v8 = vadd.f32 %v7041_v27, %v3433_v28  ;;  %v3438_v27 = vld [vmem:[%s7217_s3 + $0x2d0] ss:$0 sm:$0xff] }
 0xa25   : > { %v3352_v30 = vadd.f32 %v4176_v29, %v3331_v26 }
 0xa26   : > { %v3740_v5 = vmax.f32 %v3739_v8, 0.0 }
 0xa27   : > { %v3356_v52 = vsel %vm2962_vm10, %v3352_v30, 0.0 }
 0xa28   : > { %v3357_v31 = vadd.f32 %v3356_v52, %v3355_v63 }
 0xa2a   : > { %v3358_v32 = vrot.slane %v3357_v31, 4 }
 0xa2c   : > { %v3359_v34 = vadd.f32 %v3358_v32, %v3357_v31 }
 0xa2e   : > { %v3360_v57 = vrot.slane %v3359_v34, 2 }
 0xa30   : > { %v3361_v12 = vadd.f32 %v3360_v57, %v3359_v34 }
 0xa32   : > { %v3362_v36 = vrot.slane %v3361_v12, 1 }
 0xa34   : > { %v3363_v37 = vadd.f32 %v3362_v36, %v3361_v12 }
 0xa36   : > { %v3364_v13 = vmul.f32 0.003125, %v3363_v37 }
 0xa38   : > { %3742 = vrot.lane.b32.xlu1 %v3364_v13, %s5509_s25 }
 0xaaa   : > { %v3743_v2 = vpop.permute.xlu1 %3742 }
 0xaab   : > { %v3745_v17 = vsel %vm1024_vm3, %v3740_v5, %v3743_v2 }
 0xaac   : > { %5010 = vmatmul.mubr.msk.f32.vlgmr.msra.gmra.mrb[110].mxu1 %vm1030_vm4, %v3745_v17 }
 0xaad   : > { %5016 = vmatprep.mubr.msk.f32.mxu1 %vm5507_vm0, %v5508_v1  ;;  %5316 = vmatpush3.bf16.msra.mxu1 %v5315_v14  ;;  %vm3903_vm0 = vcmask 7168  }
 0xb7f   : > { %v3815_v9 = vpop.f32.mrb[110].mxu1 }
 0xb80   : > { %v3816_v16 = vadd.f32 %v3815_v9, %v3438_v27  ;;  %v5011_v59 = vpop.f32.mrb[111].mxu1 }
 0xb82   : > { %5462 = vtanh.f32 %v3816_v16 }
 0xb8c   : > { %v5463_v1 = vpop.eup %5462 }
 0xb8d   : > { %5017 = vmatmul.mubr.msk.f32.vlgmr.msra.gmra.mrb[112].mxu1 %vm1024_vm3, %v5463_v1  ;;  %vm3905_vm3 = vcmask 8192  }
 0xc60   : > { %v3889_v54 = vpop.f32.mrb[112].mxu1 }
 0xc61   : > { %v3890_v40 = vadd.f32 %v3889_v54, %v3441_v35  ;;  %v5018_v42 = vpop.f32.mrb[113].mxu1 }
 0xc63   : > { %3900 = vrot.lane.b32.xlu0 %v3890_v40, %s5531_s27  ;;  %v4182_v0 = vmul.f32 -1.442695, %v3890_v40 }
 0xc65   : > { %5464 = vpow2.f32 %v4182_v0 }
 0xc6f   : > { %v5465_v15 = vpop.eup %5464 }
 0xc70   : > { %v3896_v24 = vadd.f32 1.0, %v5465_v15 }
 0xc72   : > { %5466 = vrcp.f32 %v3896_v24 }
 0xc7c   : > { %v5467_v25 = vpop.eup %5466 }
 0xcd5   : > { %v3901_v44 = vpop.permute.xlu0 %3900 }
 0xcd6   : > { %v3904_v45 = vsel %vm3903_vm0, %v5467_v25, %v3901_v44 }
 0xcd7   : > { %3906 = vst.msk [vmem:[%s213_s6] sm:$0x1] %vm3905_vm3, %v3904_v45 }
 0xcd8 PF: > { %s14_s15 = sadd.s32 1, %s5504_s15  }
 0xcd9   : > { %p11_p4 = scmp.ge.s32.totalorder %s14_s15, 6  }
 0xcdb   :  { %13 = sbr.rel (!%p11_p4) target bundleno = 1 (0x1), region = 74 }

</bundles_post_ra>
